<compile_context>
chip_gen: v7x
topology: tpu7x:2x2x1
jax: 0.10.0
libtpu: 0.0.40
codegen_flags: <defaults>
</compile_context>

<pallas_src>
import functools

import jax
import jax.numpy as jnp
from jax.experimental import pallas as pl
from jax.experimental.pallas import tpu as pltpu

BN_EPS = 1e-5  # torch BatchNorm2d default


def _round_up(x, m):
    return (x + m - 1) // m * m


# ---------------------------------------------------------------------------
# Fused (optional ReLU-in) matmul + per-channel scale/shift (+ optional PReLU)
# ---------------------------------------------------------------------------
def _fused_matmul_kernel(x_ref, w_ref, scale_ref, shift_ref, alpha_ref, o_ref,
                         *, relu_in, prelu, mxu_dtype):
    x = x_ref[...].astype(jnp.float32)                    # [tm, K]
    if relu_in:
        x = jnp.maximum(x, 0.0)
    # bf16 MXU operands, f32 accumulation (per perf review).
    y = jnp.dot(x.astype(mxu_dtype), w_ref[...].astype(mxu_dtype),
                preferred_element_type=jnp.float32)       # [tm, tn]
    # Folded BN/bias epilogue in f32 (scale/shift precomputed in the wrapper).
    y = y * scale_ref[...] + shift_ref[...]
    if prelu:
        y = jnp.where(y >= 0.0, y, alpha_ref[...] * y)
    o_ref[...] = y.astype(o_ref.dtype)


def fused_matmul(x, w, scale, shift, alpha=None, *, relu_in, prelu,
                 mxu_dtype=jnp.bfloat16, tm=256, tn=128):
    """y = prelu(maybe_relu(x) @ w * scale + shift).  x:[M,K], w:[K,N] -> [M,N] f32."""
    M, K = x.shape
    K2, N = w.shape
    assert K == K2

    tm_eff = min(tm, _round_up(M, 8))          # sublane-aligned M tile
    tn_eff = tn                                # lane-dense (multiple of 128) N tile
    Mp = _round_up(M, tm_eff)
    Np = _round_up(N, tn_eff)

    xp = jnp.pad(x, ((0, Mp - M), (0, 0)))
    wp = jnp.pad(w, ((0, 0), (0, Np - N)))

    def _pad_vec(v):
        return jnp.pad(v.reshape(1, N).astype(jnp.float32), ((0, 0), (0, Np - N)))

    scale_p = _pad_vec(scale)
    shift_p = _pad_vec(shift)
    alpha_p = _pad_vec(alpha if alpha is not None else jnp.zeros((N,), jnp.float32))

    grid = (Mp // tm_eff, Np // tn_eff)
    kernel = functools.partial(_fused_matmul_kernel,
                               relu_in=relu_in, prelu=prelu, mxu_dtype=mxu_dtype)

    out = pl.pallas_call(
        kernel,
        out_shape=jax.ShapeDtypeStruct((Mp, Np), jnp.float32),
        grid=grid,
        in_specs=[
            pl.BlockSpec((tm_eff, K), lambda i, j: (i, 0)),   # K kept whole per block
            pl.BlockSpec((K, tn_eff), lambda i, j: (0, j)),
            pl.BlockSpec((1, tn_eff), lambda i, j: (0, j)),
            pl.BlockSpec((1, tn_eff), lambda i, j: (0, j)),
            pl.BlockSpec((1, tn_eff), lambda i, j: (0, j)),
        ],
        out_specs=pl.BlockSpec((tm_eff, tn_eff), lambda i, j: (i, j)),
        compiler_params=pltpu.CompilerParams(
            dimension_semantics=("parallel", "parallel"),
            vmem_limit_bytes=32 * 1024 * 1024,
        ),
    )(xp, wp, scale_p, shift_p, alpha_p)
    return out[:M, :N]


def _fused_matmul_ref(x, w, scale, shift, alpha=None, *, relu_in, prelu,
                      mxu_dtype=jnp.bfloat16, tm=256, tn=128):
    """Pure-XLA reference with identical precision semantics."""
    xin = jnp.maximum(x, 0.0) if relu_in else x
    y = jnp.dot(xin.astype(mxu_dtype), w.astype(mxu_dtype),
                preferred_element_type=jnp.float32)
    y = y * scale[None, :] + shift[None, :]
    if prelu:
        y = jnp.where(y >= 0.0, y, alpha[None, :] * y)
    return y


# ---------------------------------------------------------------------------
# Per-expert softmax + uncertainty-weighted fusion kernel
# ---------------------------------------------------------------------------
def _softmax_fuse_kernel(logits_ref, w_ref, o_ref, *, num_experts):
    acc = jnp.zeros(o_ref.shape, jnp.float32)
    for e in range(num_experts):                          # static unroll (small E)
        s = logits_ref[e].astype(jnp.float32)             # [B, C]
        m = jnp.max(s, axis=-1, keepdims=True)
        p = jnp.exp(s - m)
        p = p / jnp.sum(p, axis=-1, keepdims=True)
        acc = acc + p * w_ref[e]                          # w_ref[e]: [B, 1]
    o_ref[...] = acc.astype(o_ref.dtype)


def softmax_fuse(logits, weights):
    """logits:[E,B,C], weights:[E,B,1] -> sum_e softmax(logits[e]) * weights[e]."""
    E, B, C = logits.shape
    return pl.pallas_call(
        functools.partial(_softmax_fuse_kernel, num_experts=E),
        out_shape=jax.ShapeDtypeStruct((B, C), jnp.float32),
        in_specs=[
            pl.BlockSpec((E, B, C), lambda: (0, 0, 0)),
            pl.BlockSpec((E, B, 1), lambda: (0, 0, 0)),
        ],
        out_specs=pl.BlockSpec((B, C), lambda: (0, 0)),
    )(logits, weights)


# ---------------------------------------------------------------------------
# Conv block: im2col (layout) -> fused matmul kernel (conv+BN+bias+PReLU) -> pool
# ---------------------------------------------------------------------------
def _im2col_nhwc(x, kh, kw):
    """x:[B,H,W,C] -> patches [B,Ho,Wo,C*kh*kw] (ordering matches torch weight flatten)."""
    B, H, W, C = x.shape
    Ho, Wo = H - kh + 1, W - kw + 1
    cols = [x[:, di:di + Ho, dj:dj + Wo, :] for di in range(kh) for dj in range(kw)]
    p = jnp.stack(cols, axis=3)                  # [B, Ho, Wo, kh*kw, C]
    p = jnp.transpose(p, (0, 1, 2, 4, 3))        # [B, Ho, Wo, C, kh*kw]
    return p.reshape(B, Ho, Wo, C * kh * kw)


def conv_bn_prelu_pool(x_nhwc, conv_w, conv_b, bn, prelu_alpha, *, use_pallas, mxu_dtype):
    B = x_nhwc.shape[0]
    Cout, Cin, kh, kw = conv_w.shape
    patches = _im2col_nhwc(x_nhwc, kh, kw)                       # [B,Ho,Wo,K]
    Ho, Wo, K = patches.shape[1], patches.shape[2], patches.shape[3]
    w2d = conv_w.reshape(Cout, K).T                              # [K, Cout]

    # Hoisted (once, in the wrapper): fold BatchNorm(eval) + conv bias into a
    # per-output-channel scale/shift applied in the kernel epilogue.
    inv_std = 1.0 / jnp.sqrt(bn["var"] + BN_EPS)
    scale = bn["gamma"] * inv_std
    shift = scale * (conv_b - bn["mean"]) + bn["beta"]

    mm = fused_matmul if use_pallas else _fused_matmul_ref
    y = mm(patches.reshape(B * Ho * Wo, K), w2d, scale, shift, alpha=prelu_alpha,
           relu_in=False, prelu=True, mxu_dtype=mxu_dtype)
    y = y.reshape(B, Ho, Wo, Cout)

    # TODO(synk): Dropout2d is identity at inference; training-mode channel dropout
    # (RNG mask) is not implemented here.

    # AvgPool2d(kernel=(1,3)) with default stride (1,3), floor mode.
    Wp = Wo // 3
    y = y[:, :, :Wp * 3, :].reshape(B, Ho, Wp, 3, Cout).mean(axis=3)
    return y                                                     # [B, Ho, Wp, Cout]


# ---------------------------------------------------------------------------
# Full EMGBranchNaive forward (inference)
# ---------------------------------------------------------------------------
def emg_branch_forward(params, x, *, classes, num_experts, fusion, gen_uncertainty,
                       use_pallas, mxu_dtype):
    B = x.shape[0]
    h = x[..., None]                                             # unsqueeze channel (NHWC)
    h = conv_bn_prelu_pool(h, params["conv1_w"], params["conv1_b"], params["bn1"],
                           params["prelu1"], use_pallas=use_pallas, mxu_dtype=mxu_dtype)

    mm = fused_matmul if use_pallas else _fused_matmul_ref
    outs = []
    for ep in params["experts"]:
        xe = conv_bn_prelu_pool(h, ep["conv_w"], ep["conv_b"], ep["bn"], ep["prelu"],
                                use_pallas=use_pallas, mxu_dtype=mxu_dtype)
        # torch .flatten(1) flattens NCHW -> (c, h, w): transpose to NCHW first.
        xe = jnp.transpose(xe, (0, 3, 1, 2)).reshape(B, -1)
        hid = mm(xe, ep["fc1_w"], jnp.ones_like(ep["fc1_b"]), ep["fc1_b"],
                 relu_in=True, prelu=False, mxu_dtype=mxu_dtype)
        logit = mm(hid, ep["fc2_w"], jnp.ones_like(ep["fc2_b"]), ep["fc2_b"],
                   relu_in=True, prelu=False, mxu_dtype=mxu_dtype)
        outs.append(logit)

    feat = jax.lax.stop_gradient(outs[0])                        # feat = outs[0].detach().clone()
    logits = jnp.stack(outs, axis=0)                             # [E, B, C]

    if fusion:
        # mirrors the torch.no_grad() uncertainty weighting
        inv_u = jnp.stack([1.0 / gen_uncertainty(outs[i]) ** 2
                           for i in range(num_experts)], axis=0)  # [E, B]
        inv_u = jax.lax.stop_gradient(inv_u)
        wts = inv_u / jnp.sum(inv_u, axis=0, keepdims=True)
    else:
        wts = jnp.full((num_experts, B), 1.0 / num_experts, jnp.float32)

    if use_pallas:
        fused = softmax_fuse(logits, wts[..., None])
    else:
        probs = jax.nn.softmax(logits, axis=-1)
        fused = jnp.sum(probs * wts[..., None], axis=0)
    return fused, feat, []                                       # (sum(normalized_outs), feat, W)


# ---------------------------------------------------------------------------
# Parameter init (kaiming_normal_ weights, zero-ish biases, BN eval stats)
# ---------------------------------------------------------------------------
def _kaiming_normal(key, shape, fan_in):
    return jax.random.normal(key, shape, jnp.float32) * jnp.sqrt(2.0 / fan_in)


def _init_bn(key, c):
    k1, k2, k3 = jax.random.split(key, 3)
    return {  # mildly randomized running stats, as if trained (eval-mode BN)
        "gamma": 1.0 + 0.1 * jax.random.normal(k1, (c,), jnp.float32),
        "beta": 0.1 * jax.random.normal(k2, (c,), jnp.float32),
        "mean": 0.1 * jax.random.normal(k3, (c,), jnp.float32),
        "var": jnp.ones((c,), jnp.float32),
    }


def init_params(key, classes, num_experts, in_dim=64 * 12 * 3, hidden=512):
    ks = iter(jax.random.split(key, 8 + 10 * num_experts))
    p = {
        "conv1_w": _kaiming_normal(next(ks), (32, 1, 3, 5), 1 * 3 * 5),
        "conv1_b": 0.01 * jax.random.normal(next(ks), (32,), jnp.float32),
        "bn1": _init_bn(next(ks), 32),
        "prelu1": jnp.full((32,), 0.25, jnp.float32),
        "experts": [],
    }
    for _ in range(num_experts):
        ep = {
            "conv_w": _kaiming_normal(next(ks), (64, 32, 3, 5), 32 * 3 * 5),
            "conv_b": 0.01 * jax.random.normal(next(ks), (64,), jnp.float32),
            "bn": _init_bn(next(ks), 64),
            "prelu": jnp.full((64,), 0.25, jnp.float32),
            "fc1_w": _kaiming_normal(next(ks), (in_dim, hidden), in_dim),    # torch weight.T
            "fc1_b": 0.01 * jax.random.normal(next(ks), (hidden,), jnp.float32),
            "fc2_w": _kaiming_normal(next(ks), (hidden, classes), hidden),   # torch weight.T
            "fc2_b": 0.01 * jax.random.normal(next(ks), (classes,), jnp.float32),
        }
        p["experts"].append(ep)
    return p


if __name__ == "__main__":
    key = jax.random.PRNGKey(0)
    kx, kp = jax.random.split(key)

    # Shapes implied by the hard-coded flatten dim 64*12*3: input H=16, W=43.
    batch, H, W = 2, 16, 43
    classes, num_experts = 8, 2

    x = jax.random.normal(kx, (batch, H, W), dtype=jnp.float32)
    params = init_params(kp, classes, num_experts)

    def gen_uncertainty(logits):
        # TODO(synk): gen_uncertainty is supplied externally in the PyTorch module;
        # this is a stand-in EDL-style uncertainty (u = K / (sum(relu(logits)) + K)).
        evidence = jnp.maximum(logits, 0.0)
        return classes / (jnp.sum(evidence, axis=-1) + classes)

    fwd = functools.partial(emg_branch_forward, classes=classes, num_experts=num_experts,
                            fusion=True, gen_uncertainty=gen_uncertainty)
    run_pallas = jax.jit(functools.partial(fwd, use_pallas=True, mxu_dtype=jnp.bfloat16))
    run_ref_bf16 = jax.jit(functools.partial(fwd, use_pallas=False, mxu_dtype=jnp.bfloat16))
    run_ref_f32 = jax.jit(functools.partial(fwd, use_pallas=False, mxu_dtype=jnp.float32))

    fused, feat, Wlist = jax.block_until_ready(run_pallas(params, x))
    fused_rb, feat_rb, _ = jax.block_until_ready(run_ref_bf16(params, x))
    fused_rf, _, _ = jax.block_until_ready(run_ref_f32(params, x))

    assert fused.shape == (batch, classes) and feat.shape == (batch, classes)
    assert Wlist == []
    assert bool(jnp.all(jnp.isfinite(fused)))
    # fused probabilities sum to 1 (expert weights sum to 1)
    assert bool(jnp.allclose(jnp.sum(fused, axis=-1), 1.0, atol=1e-3))
    # Pallas kernels vs identical-precision XLA reference (tight)
    assert bool(jnp.allclose(fused, fused_rb, atol=2e-3, rtol=2e-3)), "fused mismatch vs bf16 ref"
    assert bool(jnp.allclose(feat, feat_rb, atol=2e-2, rtol=2e-2)), "feat mismatch vs bf16 ref"
    # bf16-MXU Pallas path vs full-f32 reference (loose sanity bound)
    assert bool(jnp.allclose(fused, fused_rf, atol=8e-2)), "fused mismatch vs f32 ref"

    print("KERNEL_OK")
</pallas_src>

<mosaic_0001>
module attributes {stable_mosaic.version = 11 : i64} {
  func.func @_fused_matmul_kernel(%arg0: i32, %arg1: i32, %arg2: memref<256x15xf32, #tpu.memory_space<vmem>>, %arg3: memref<15x128xf32, #tpu.memory_space<vmem>>, %arg4: memref<1x128xf32, #tpu.memory_space<vmem>>, %arg5: memref<1x128xf32, #tpu.memory_space<vmem>>, %arg6: memref<1x128xf32, #tpu.memory_space<vmem>>, %arg7: memref<256x128xf32, #tpu.memory_space<vmem>>) attributes {dimension_semantics = [#tpu.dimension_semantics<parallel>, #tpu.dimension_semantics<parallel>], iteration_bounds = array<i64: 5, 1>, scalar_prefetch = 0 : i64, scratch_operands = 0 : i64, tpu.core_type = #tpu.core_type<tc>, window_params = [{transform_indices = @transform_0, window_bounds = array<i64: 256, 15>}, {transform_indices = @transform_1, window_bounds = array<i64: 15, 128>}, {transform_indices = @transform_2, window_bounds = array<i64: 1, 128>}, {transform_indices = @transform_3, window_bounds = array<i64: 1, 128>}, {transform_indices = @transform_4, window_bounds = array<i64: 1, 128>}, {transform_indices = @transform_5, window_bounds = array<i64: 256, 128>}]} {
    %c0 = arith.constant 0 : index
    %c0_0 = arith.constant 0 : index
    %0 = vector.load %arg2[%c0, %c0_0] : memref<256x15xf32, #tpu.memory_space<vmem>>, vector<256x15xf32>
    %1 = arith.truncf %0 : vector<256x15xf32> to vector<256x15xbf16>
    %c0_1 = arith.constant 0 : index
    %c0_2 = arith.constant 0 : index
    %2 = vector.load %arg3[%c0_1, %c0_2] : memref<15x128xf32, #tpu.memory_space<vmem>>, vector<15x128xf32>
    %3 = arith.truncf %2 : vector<15x128xf32> to vector<15x128xbf16>
    %cst = arith.constant dense<0.000000e+00> : vector<256x128xf32>
    %4 = tpu.matmul %1, %3, %cst {dimension_numbers = #tpu.dot_dimension_numbers<[1], [0], [0], [1], [0, 0, 1, 1], [], []>} : vector<256x15xbf16>, vector<15x128xbf16>, vector<256x128xf32> -> vector<256x128xf32>
    %c0_3 = arith.constant 0 : index
    %c0_4 = arith.constant 0 : index
    %5 = vector.load %arg4[%c0_3, %c0_4] : memref<1x128xf32, #tpu.memory_space<vmem>>, vector<1x128xf32>
    %6 = vector.broadcast %5 : vector<1x128xf32> to vector<256x128xf32>
    %7 = arith.mulf %4, %6 : vector<256x128xf32>
    %c0_5 = arith.constant 0 : index
    %c0_6 = arith.constant 0 : index
    %8 = vector.load %arg5[%c0_5, %c0_6] : memref<1x128xf32, #tpu.memory_space<vmem>>, vector<1x128xf32>
    %9 = vector.broadcast %8 : vector<1x128xf32> to vector<256x128xf32>
    %10 = arith.addf %7, %9 : vector<256x128xf32>
    %cst_7 = arith.constant 0.000000e+00 : f32
    %11 = vector.broadcast %cst_7 : f32 to vector<256x128xf32>
    %12 = arith.cmpf oge, %10, %11 : vector<256x128xf32>
    %c0_8 = arith.constant 0 : index
    %c0_9 = arith.constant 0 : index
    %13 = vector.load %arg6[%c0_8, %c0_9] : memref<1x128xf32, #tpu.memory_space<vmem>>, vector<1x128xf32>
    %14 = vector.broadcast %13 : vector<1x128xf32> to vector<256x128xf32>
    %15 = arith.mulf %14, %10 : vector<256x128xf32>
    %16 = arith.select %12, %10, %15 : vector<256x128xi1>, vector<256x128xf32>
    %c0_10 = arith.constant 0 : index
    %c0_11 = arith.constant 0 : index
    %17 = vector.load %arg7[%c0_10, %c0_11] : memref<256x128xf32, #tpu.memory_space<vmem>>, vector<256x128xf32>
    tpu.vector_store %arg7[%c0_10, %c0_11], %16 {strides = array<i32>} : memref<256x128xf32, #tpu.memory_space<vmem>>, vector<256x128xf32>,
    return
  }
  func.func @transform_0(%arg0: i32, %arg1: i32) -> (i32, i32) {
    %c0_i32 = arith.constant 0 : i32
    %c0_i32_0 = arith.constant 0 : i32
    return %arg0, %c0_i32 : i32, i32
  }
  func.func @transform_1(%arg0: i32, %arg1: i32) -> (i32, i32) {
    %c0_i32 = arith.constant 0 : i32
    %c0_i32_0 = arith.constant 0 : i32
    return %c0_i32, %arg1 : i32, i32
  }
  func.func @transform_2(%arg0: i32, %arg1: i32) -> (i32, i32) {
    %c0_i32 = arith.constant 0 : i32
    %c0_i32_0 = arith.constant 0 : i32
    return %c0_i32, %arg1 : i32, i32
  }
  func.func @transform_3(%arg0: i32, %arg1: i32) -> (i32, i32) {
    %c0_i32 = arith.constant 0 : i32
    %c0_i32_0 = arith.constant 0 : i32
    return %c0_i32, %arg1 : i32, i32
  }
  func.func @transform_4(%arg0: i32, %arg1: i32) -> (i32, i32) {
    %c0_i32 = arith.constant 0 : i32
    %c0_i32_0 = arith.constant 0 : i32
    return %c0_i32, %arg1 : i32, i32
  }
  func.func @transform_5(%arg0: i32, %arg1: i32) -> (i32, i32) {
    %c0_i32 = arith.constant 0 : i32
    return %arg0, %arg1 : i32, i32
  }
}

module attributes {stable_mosaic.version = 11 : i64} {
  func.func @_fused_matmul_kernel(%arg0: i32, %arg1: i32, %arg2: memref<216x480xf32, #tpu.memory_space<vmem>>, %arg3: memref<480x128xf32, #tpu.memory_space<vmem>>, %arg4: memref<1x128xf32, #tpu.memory_space<vmem>>, %arg5: memref<1x128xf32, #tpu.memory_space<vmem>>, %arg6: memref<1x128xf32, #tpu.memory_space<vmem>>, %arg7: memref<216x128xf32, #tpu.memory_space<vmem>>) attributes {dimension_semantics = [#tpu.dimension_semantics<parallel>, #tpu.dimension_semantics<parallel>], iteration_bounds = array<i64: 1, 1>, scalar_prefetch = 0 : i64, scratch_operands = 0 : i64, tpu.core_type = #tpu.core_type<tc>, window_params = [{transform_indices = @transform_0, window_bounds = array<i64: 216, 480>}, {transform_indices = @transform_1, window_bounds = array<i64: 480, 128>}, {transform_indices = @transform_2, window_bounds = array<i64: 1, 128>}, {transform_indices = @transform_3, window_bounds = array<i64: 1, 128>}, {transform_indices = @transform_4, window_bounds = array<i64: 1, 128>}, {transform_indices = @transform_5, window_bounds = array<i64: 216, 128>}]} {
    %c0 = arith.constant 0 : index
    %c0_0 = arith.constant 0 : index
    %0 = vector.load %arg2[%c0, %c0_0] : memref<216x480xf32, #tpu.memory_space<vmem>>, vector<216x480xf32>
    %1 = arith.truncf %0 : vector<216x480xf32> to vector<216x480xbf16>
    %c0_1 = arith.constant 0 : index
    %c0_2 = arith.constant 0 : index
    %2 = vector.load %arg3[%c0_1, %c0_2] : memref<480x128xf32, #tpu.memory_space<vmem>>, vector<480x128xf32>
    %3 = arith.truncf %2 : vector<480x128xf32> to vector<480x128xbf16>
    %cst = arith.constant dense<0.000000e+00> : vector<216x128xf32>
    %4 = tpu.matmul %1, %3, %cst {dimension_numbers = #tpu.dot_dimension_numbers<[1], [0], [0], [1], [0, 0, 1, 1], [], []>} : vector<216x480xbf16>, vector<480x128xbf16>, vector<216x128xf32> -> vector<216x128xf32>
    %c0_3 = arith.constant 0 : index
    %c0_4 = arith.constant 0 : index
    %5 = vector.load %arg4[%c0_3, %c0_4] : memref<1x128xf32, #tpu.memory_space<vmem>>, vector<1x128xf32>
    %6 = vector.broadcast %5 : vector<1x128xf32> to vector<216x128xf32>
    %7 = arith.mulf %4, %6 : vector<216x128xf32>
    %c0_5 = arith.constant 0 : index
    %c0_6 = arith.constant 0 : index
    %8 = vector.load %arg5[%c0_5, %c0_6] : memref<1x128xf32, #tpu.memory_space<vmem>>, vector<1x128xf32>
    %9 = vector.broadcast %8 : vector<1x128xf32> to vector<216x128xf32>
    %10 = arith.addf %7, %9 : vector<216x128xf32>
    %cst_7 = arith.constant 0.000000e+00 : f32
    %11 = vector.broadcast %cst_7 : f32 to vector<216x128xf32>
    %12 = arith.cmpf oge, %10, %11 : vector<216x128xf32>
    %c0_8 = arith.constant 0 : index
    %c0_9 = arith.constant 0 : index
    %13 = vector.load %arg6[%c0_8, %c0_9] : memref<1x128xf32, #tpu.memory_space<vmem>>, vector<1x128xf32>
    %14 = vector.broadcast %13 : vector<1x128xf32> to vector<216x128xf32>
    %15 = arith.mulf %14, %10 : vector<216x128xf32>
    %16 = arith.select %12, %10, %15 : vector<216x128xi1>, vector<216x128xf32>
    %c0_10 = arith.constant 0 : index
    %c0_11 = arith.constant 0 : index
    %17 = vector.load %arg7[%c0_10, %c0_11] : memref<216x128xf32, #tpu.memory_space<vmem>>, vector<216x128xf32>
    tpu.vector_store %arg7[%c0_10, %c0_11], %16 {strides = array<i32>} : memref<216x128xf32, #tpu.memory_space<vmem>>, vector<216x128xf32>,
    return
  }
  func.func @transform_0(%arg0: i32, %arg1: i32) -> (i32, i32) {
    %c0_i32 = arith.constant 0 : i32
    %c0_i32_0 = arith.constant 0 : i32
    return %arg0, %c0_i32 : i32, i32
  }
  func.func @transform_1(%arg0: i32, %arg1: i32) -> (i32, i32) {
    %c0_i32 = arith.constant 0 : i32
    %c0_i32_0 = arith.constant 0 : i32
    return %c0_i32, %arg1 : i32, i32
  }
  func.func @transform_2(%arg0: i32, %arg1: i32) -> (i32, i32) {
    %c0_i32 = arith.constant 0 : i32
    %c0_i32_0 = arith.constant 0 : i32
    return %c0_i32, %arg1 : i32, i32
  }
  func.func @transform_3(%arg0: i32, %arg1: i32) -> (i32, i32) {
    %c0_i32 = arith.constant 0 : i32
    %c0_i32_0 = arith.constant 0 : i32
    return %c0_i32, %arg1 : i32, i32
  }
  func.func @transform_4(%arg0: i32, %arg1: i32) -> (i32, i32) {
    %c0_i32 = arith.constant 0 : i32
    %c0_i32_0 = arith.constant 0 : i32
    return %c0_i32, %arg1 : i32, i32
  }
  func.func @transform_5(%arg0: i32, %arg1: i32) -> (i32, i32) {
    %c0_i32 = arith.constant 0 : i32
    return %arg0, %arg1 : i32, i32
  }
}

module attributes {stable_mosaic.version = 11 : i64} {
  func.func @_fused_matmul_kernel(%arg0: i32, %arg1: i32, %arg2: memref<8x2304xf32, #tpu.memory_space<vmem>>, %arg3: memref<2304x128xf32, #tpu.memory_space<vmem>>, %arg4: memref<1x128xf32, #tpu.memory_space<vmem>>, %arg5: memref<1x128xf32, #tpu.memory_space<vmem>>, %arg6: memref<1x128xf32, #tpu.memory_space<vmem>>, %arg7: memref<8x128xf32, #tpu.memory_space<vmem>>) attributes {dimension_semantics = [#tpu.dimension_semantics<parallel>, #tpu.dimension_semantics<parallel>], iteration_bounds = array<i64: 1, 4>, scalar_prefetch = 0 : i64, scratch_operands = 0 : i64, tpu.core_type = #tpu.core_type<tc>, window_params = [{transform_indices = @transform_0, window_bounds = array<i64: 8, 2304>}, {transform_indices = @transform_1, window_bounds = array<i64: 2304, 128>}, {transform_indices = @transform_2, window_bounds = array<i64: 1, 128>}, {transform_indices = @transform_3, window_bounds = array<i64: 1, 128>}, {transform_indices = @transform_4, window_bounds = array<i64: 1, 128>}, {transform_indices = @transform_5, window_bounds = array<i64: 8, 128>}]} {
    %c0 = arith.constant 0 : index
    %c0_0 = arith.constant 0 : index
    %0 = vector.load %arg2[%c0, %c0_0] : memref<8x2304xf32, #tpu.memory_space<vmem>>, vector<8x2304xf32>
    %cst = arith.constant 0.000000e+00 : f32
    %1 = vector.broadcast %cst : f32 to vector<8x2304xf32>
    %2 = arith.maximumf %0, %1 : vector<8x2304xf32>
    %3 = arith.truncf %2 : vector<8x2304xf32> to vector<8x2304xbf16>
    %c0_1 = arith.constant 0 : index
    %c0_2 = arith.constant 0 : index
    %4 = vector.load %arg3[%c0_1, %c0_2] : memref<2304x128xf32, #tpu.memory_space<vmem>>, vector<2304x128xf32>
    %5 = arith.truncf %4 : vector<2304x128xf32> to vector<2304x128xbf16>
    %cst_3 = arith.constant dense<0.000000e+00> : vector<8x128xf32>
    %6 = tpu.matmul %3, %5, %cst_3 {dimension_numbers = #tpu.dot_dimension_numbers<[1], [0], [0], [1], [0, 0, 1, 1], [], []>} : vector<8x2304xbf16>, vector<2304x128xbf16>, vector<8x128xf32> -> vector<8x128xf32>
    %c0_4 = arith.constant 0 : index
    %c0_5 = arith.constant 0 : index
    %7 = vector.load %arg4[%c0_4, %c0_5] : memref<1x128xf32, #tpu.memory_space<vmem>>, vector<1x128xf32>
    %8 = vector.broadcast %7 : vector<1x128xf32> to vector<8x128xf32>
    %9 = arith.mulf %6, %8 : vector<8x128xf32>
    %c0_6 = arith.constant 0 : index
    %c0_7 = arith.constant 0 : index
    %10 = vector.load %arg5[%c0_6, %c0_7] : memref<1x128xf32, #tpu.memory_space<vmem>>, vector<1x128xf32>
    %11 = vector.broadcast %10 : vector<1x128xf32> to vector<8x128xf32>
    %12 = arith.addf %9, %11 : vector<8x128xf32>
    %c0_8 = arith.constant 0 : index
    %c0_9 = arith.constant 0 : index
    %13 = vector.load %arg7[%c0_8, %c0_9] : memref<8x128xf32, #tpu.memory_space<vmem>>, vector<8x128xf32>
    tpu.vector_store %arg7[%c0_8, %c0_9], %12 {strides = array<i32>} : memref<8x128xf32, #tpu.memory_space<vmem>>, vector<8x128xf32>,
    return
  }
  func.func @transform_0(%arg0: i32, %arg1: i32) -> (i32, i32) {
    %c0_i32 = arith.constant 0 : i32
    %c0_i32_0 = arith.constant 0 : i32
    return %arg0, %c0_i32 : i32, i32
  }
  func.func @transform_1(%arg0: i32, %arg1: i32) -> (i32, i32) {
    %c0_i32 = arith.constant 0 : i32
    %c0_i32_0 = arith.constant 0 : i32
    return %c0_i32, %arg1 : i32, i32
  }
  func.func @transform_2(%arg0: i32, %arg1: i32) -> (i32, i32) {
    %c0_i32 = arith.constant 0 : i32
    %c0_i32_0 = arith.constant 0 : i32
    return %c0_i32, %arg1 : i32, i32
  }
  func.func @transform_3(%arg0: i32, %arg1: i32) -> (i32, i32) {
    %c0_i32 = arith.constant 0 : i32
    %c0_i32_0 = arith.constant 0 : i32
    return %c0_i32, %arg1 : i32, i32
  }
  func.func @transform_4(%arg0: i32, %arg1: i32) -> (i32, i32) {
    %c0_i32 = arith.constant 0 : i32
    %c0_i32_0 = arith.constant 0 : i32
    return %c0_i32, %arg1 : i32, i32
  }
  func.func @transform_5(%arg0: i32, %arg1: i32) -> (i32, i32) {
    %c0_i32 = arith.constant 0 : i32
    return %arg0, %arg1 : i32, i32
  }
}

module attributes {stable_mosaic.version = 11 : i64} {
  func.func @_fused_matmul_kernel(%arg0: i32, %arg1: i32, %arg2: memref<8x512xf32, #tpu.memory_space<vmem>>, %arg3: memref<512x128xf32, #tpu.memory_space<vmem>>, %arg4: memref<1x128xf32, #tpu.memory_space<vmem>>, %arg5: memref<1x128xf32, #tpu.memory_space<vmem>>, %arg6: memref<1x128xf32, #tpu.memory_space<vmem>>, %arg7: memref<8x128xf32, #tpu.memory_space<vmem>>) attributes {dimension_semantics = [#tpu.dimension_semantics<parallel>, #tpu.dimension_semantics<parallel>], iteration_bounds = array<i64: 1, 1>, scalar_prefetch = 0 : i64, scratch_operands = 0 : i64, tpu.core_type = #tpu.core_type<tc>, window_params = [{transform_indices = @transform_0, window_bounds = array<i64: 8, 512>}, {transform_indices = @transform_1, window_bounds = array<i64: 512, 128>}, {transform_indices = @transform_2, window_bounds = array<i64: 1, 128>}, {transform_indices = @transform_3, window_bounds = array<i64: 1, 128>}, {transform_indices = @transform_4, window_bounds = array<i64: 1, 128>}, {transform_indices = @transform_5, window_bounds = array<i64: 8, 128>}]} {
    %c0 = arith.constant 0 : index
    %c0_0 = arith.constant 0 : index
    %0 = vector.load %arg2[%c0, %c0_0] : memref<8x512xf32, #tpu.memory_space<vmem>>, vector<8x512xf32>
    %cst = arith.constant 0.000000e+00 : f32
    %1 = vector.broadcast %cst : f32 to vector<8x512xf32>
    %2 = arith.maximumf %0, %1 : vector<8x512xf32>
    %3 = arith.truncf %2 : vector<8x512xf32> to vector<8x512xbf16>
    %c0_1 = arith.constant 0 : index
    %c0_2 = arith.constant 0 : index
    %4 = vector.load %arg3[%c0_1, %c0_2] : memref<512x128xf32, #tpu.memory_space<vmem>>, vector<512x128xf32>
    %5 = arith.truncf %4 : vector<512x128xf32> to vector<512x128xbf16>
    %cst_3 = arith.constant dense<0.000000e+00> : vector<8x128xf32>
    %6 = tpu.matmul %3, %5, %cst_3 {dimension_numbers = #tpu.dot_dimension_numbers<[1], [0], [0], [1], [0, 0, 1, 1], [], []>} : vector<8x512xbf16>, vector<512x128xbf16>, vector<8x128xf32> -> vector<8x128xf32>
    %c0_4 = arith.constant 0 : index
    %c0_5 = arith.constant 0 : index
    %7 = vector.load %arg4[%c0_4, %c0_5] : memref<1x128xf32, #tpu.memory_space<vmem>>, vector<1x128xf32>
    %8 = vector.broadcast %7 : vector<1x128xf32> to vector<8x128xf32>
    %9 = arith.mulf %6, %8 : vector<8x128xf32>
    %c0_6 = arith.constant 0 : index
    %c0_7 = arith.constant 0 : index
    %10 = vector.load %arg5[%c0_6, %c0_7] : memref<1x128xf32, #tpu.memory_space<vmem>>, vector<1x128xf32>
    %11 = vector.broadcast %10 : vector<1x128xf32> to vector<8x128xf32>
    %12 = arith.addf %9, %11 : vector<8x128xf32>
    %c0_8 = arith.constant 0 : index
    %c0_9 = arith.constant 0 : index
    %13 = vector.load %arg7[%c0_8, %c0_9] : memref<8x128xf32, #tpu.memory_space<vmem>>, vector<8x128xf32>
    tpu.vector_store %arg7[%c0_8, %c0_9], %12 {strides = array<i32>} : memref<8x128xf32, #tpu.memory_space<vmem>>, vector<8x128xf32>,
    return
  }
  func.func @transform_0(%arg0: i32, %arg1: i32) -> (i32, i32) {
    %c0_i32 = arith.constant 0 : i32
    %c0_i32_0 = arith.constant 0 : i32
    return %arg0, %c0_i32 : i32, i32
  }
  func.func @transform_1(%arg0: i32, %arg1: i32) -> (i32, i32) {
    %c0_i32 = arith.constant 0 : i32
    %c0_i32_0 = arith.constant 0 : i32
    return %c0_i32, %arg1 : i32, i32
  }
  func.func @transform_2(%arg0: i32, %arg1: i32) -> (i32, i32) {
    %c0_i32 = arith.constant 0 : i32
    %c0_i32_0 = arith.constant 0 : i32
    return %c0_i32, %arg1 : i32, i32
  }
  func.func @transform_3(%arg0: i32, %arg1: i32) -> (i32, i32) {
    %c0_i32 = arith.constant 0 : i32
    %c0_i32_0 = arith.constant 0 : i32
    return %c0_i32, %arg1 : i32, i32
  }
  func.func @transform_4(%arg0: i32, %arg1: i32) -> (i32, i32) {
    %c0_i32 = arith.constant 0 : i32
    %c0_i32_0 = arith.constant 0 : i32
    return %c0_i32, %arg1 : i32, i32
  }
  func.func @transform_5(%arg0: i32, %arg1: i32) -> (i32, i32) {
    %c0_i32 = arith.constant 0 : i32
    return %arg0, %arg1 : i32, i32
  }
}

module attributes {stable_mosaic.version = 11 : i64} {
  func.func @_softmax_fuse_kernel(%arg0: memref<2x2x8xf32, #tpu.memory_space<vmem>>, %arg1: memref<2x2x1xf32, #tpu.memory_space<vmem>>, %arg2: memref<2x8xf32, #tpu.memory_space<vmem>>) attributes {dimension_semantics = [], scalar_prefetch = 0 : i64, scratch_operands = 0 : i64, tpu.core_type = #tpu.core_type<tc>} {
    %cst = arith.constant 0.000000e+00 : f32
    %0 = vector.broadcast %cst : f32 to vector<2x8xf32>
    %c0 = arith.constant 0 : index
    %c0_0 = arith.constant 0 : index
    %c0_1 = arith.constant 0 : index
    %1 = vector.load %arg0[%c0, %c0_0, %c0_1] : memref<2x2x8xf32, #tpu.memory_space<vmem>>, vector<1x2x8xf32>
    %2 = vector.shape_cast %1 : vector<1x2x8xf32> to vector<2x8xf32>
    %cst_2 = arith.constant dense<0xFF800000> : vector<2xf32>
    %3 = vector.multi_reduction <maximumf>, %2, %cst_2 [1] : vector<2x8xf32> to vector<2xf32>
    %4 = vector.shape_cast %3 : vector<2xf32> to vector<2x1xf32>
    %5 = vector.broadcast %4 : vector<2x1xf32> to vector<2x8xf32>
    %6 = arith.subf %2, %5 : vector<2x8xf32>
    %7 = math.exp %6 : vector<2x8xf32>
    %cst_3 = arith.constant dense<0.000000e+00> : vector<2xf32>
    %8 = vector.multi_reduction <add>, %7, %cst_3 [1] : vector<2x8xf32> to vector<2xf32>
    %9 = vector.shape_cast %8 : vector<2xf32> to vector<2x1xf32>
    %10 = vector.broadcast %9 : vector<2x1xf32> to vector<2x8xf32>
    %11 = arith.divf %7, %10 : vector<2x8xf32>
    %c0_4 = arith.constant 0 : index
    %c0_5 = arith.constant 0 : index
    %c0_6 = arith.constant 0 : index
    %12 = vector.load %arg1[%c0_4, %c0_5, %c0_6] : memref<2x2x1xf32, #tpu.memory_space<vmem>>, vector<1x2x1xf32>
    %13 = vector.shape_cast %12 : vector<1x2x1xf32> to vector<2x1xf32>
    %14 = vector.broadcast %13 : vector<2x1xf32> to vector<2x8xf32>
    %15 = arith.mulf %11, %14 : vector<2x8xf32>
    %16 = arith.addf %0, %15 : vector<2x8xf32>
    %c1 = arith.constant 1 : index
    %c0_7 = arith.constant 0 : index
    %c0_8 = arith.constant 0 : index
    %17 = vector.load %arg0[%c1, %c0_7, %c0_8] : memref<2x2x8xf32, #tpu.memory_space<vmem>>, vector<1x2x8xf32>
    %18 = vector.shape_cast %17 : vector<1x2x8xf32> to vector<2x8xf32>
    %cst_9 = arith.constant dense<0xFF800000> : vector<2xf32>
    %19 = vector.multi_reduction <maximumf>, %18, %cst_9 [1] : vector<2x8xf32> to vector<2xf32>
    %20 = vector.shape_cast %19 : vector<2xf32> to vector<2x1xf32>
    %21 = vector.broadcast %20 : vector<2x1xf32> to vector<2x8xf32>
    %22 = arith.subf %18, %21 : vector<2x8xf32>
    %23 = math.exp %22 : vector<2x8xf32>
    %cst_10 = arith.constant dense<0.000000e+00> : vector<2xf32>
    %24 = vector.multi_reduction <add>, %23, %cst_10 [1] : vector<2x8xf32> to vector<2xf32>
    %25 = vector.shape_cast %24 : vector<2xf32> to vector<2x1xf32>
    %26 = vector.broadcast %25 : vector<2x1xf32> to vector<2x8xf32>
    %27 = arith.divf %23, %26 : vector<2x8xf32>
    %c1_11 = arith.constant 1 : index
    %c0_12 = arith.constant 0 : index
    %c0_13 = arith.constant 0 : index
    %28 = vector.load %arg1[%c1_11, %c0_12, %c0_13] : memref<2x2x1xf32, #tpu.memory_space<vmem>>, vector<1x2x1xf32>
    %29 = vector.shape_cast %28 : vector<1x2x1xf32> to vector<2x1xf32>
    %30 = vector.broadcast %29 : vector<2x1xf32> to vector<2x8xf32>
    %31 = arith.mulf %27, %30 : vector<2x8xf32>
    %32 = arith.addf %16, %31 : vector<2x8xf32>
    %c0_14 = arith.constant 0 : index
    %c0_15 = arith.constant 0 : index
    %33 = vector.load %arg2[%c0_14, %c0_15] : memref<2x8xf32, #tpu.memory_space<vmem>>, vector<2x8xf32>
    tpu.vector_store %arg2[%c0_14, %c0_15], %32 {strides = array<i32>} : memref<2x8xf32, #tpu.memory_space<vmem>>, vector<2x8xf32>,
    return
  }
}

</mosaic_0001>

<bundles_post_ra>
// kernel: emg_branch_forward.8
= control target key start
LH: loop header
LB: loop body
LE: loop exit
PB: predicated region body
PF: predicated region fallthrough
CT: control target
= control target key end

     0   :  { %s1082_s18 = smov 0   ;;  %s1084_s19 = smov 0   ;;  %s1324_s0 = inlined_call_operand.vmem [shape: f32[1280,15], index: 0, kind: input, shape index: {}]   ;;  %s1325_s1 = inlined_call_operand.vmem [shape: f32[15,128], index: 1, kind: input, shape index: {}]   ;;  %s1326_s2 = inlined_call_operand.vmem [shape: f32[1,128], index: 2, kind: input, shape index: {}]   ;;  %s1327_s3 = inlined_call_operand.vmem [shape: f32[1,128], index: 3, kind: input, shape index: {}]   ;;  %s1328_s4 = inlined_call_operand.vmem [shape: f32[1,128], index: 4, kind: input, shape index: {}]   ;;  %s1329_s5 = inlined_call_operand.vmem [shape: f32[1280,128], index: 5, kind: output, shape index: {}]  }
   0x1   :  { %s1086_s20 = smov 0  }
   0x2 LB: > { %s27_s21 = sadd.s32 1, %s1045_s19  ;;  %p923_p0 = scmp.ge.s32.totalorder %s1049_s20, 1  ;;  %s1049_s20 = sphi %s1086_s20, %s15_s20   ;;  %s1045_s19 = sphi %s1084_s19, %s1331_s19   ;;  %s1041_s18 = sphi %s1082_s18, %s1330_s18  }
   0x3   : > { %p29_p1 = scmp.ge.s32.totalorder %s27_s21, 5  ;;  %p235_p2 = scmp.lt.s32.totalorder %s1049_s20, 6 }
   0x5   : > { %s1333_s21 = smov (%p29_p1, %s27_s21), 0  ;;  %p236_p3 = pnand %p923_p0, %p235_p2 }
   0x6   : > { %v356_v0 = vld [vmem:[%s1325_s1] sm:$0xff] (!%p236_p3)  ;;  %v357_v1 = vld [vmem:[%s1325_s1 + $0x8] sm:$0x7f] (!%p236_p3)  ;;  %vm408_vm0 = vcmask (!%p236_p3), 1046528   ;;  %vm409_vm1 = vcmask (!%p236_p3), 1047552   ;;  %v1051_v3 = vmov (!%p236_p3), 65535  }
   0x7   : > { %239 = sbr.rel (%p236_p3) target bundleno = 278 (0x116), region = 40  ;;  %v358_v2 = vpack.c.bf16 (!%p236_p3), %v357_v1, %v356_v0  ;;  %v410_v4 = vsel (!%p236_p3), %vm408_vm0, 4294967295, %v1051_v3  ;;  %s924_s26 = sshll.u32 (!%p236_p3), %s1041_s18, 5  ;;  %vm359_vm2 = vcmask (!%p236_p3), 121856   ;;  %v1167_v55 = vld [vmem:[%s1326_s2] ss:$0 sm:$0xff] (!%p236_p3) }
   0x8   : > { %v411_v5 = vsel (!%p236_p3), %vm409_vm1, %v410_v4, 0  ;;  %p280_p4 = scmp.lt.s32.totalorder (!%p236_p3), %s924_s26, 159  ;;  %v1172_v57 = vld [vmem:[%s1327_s3] ss:$0 sm:$0xff] (!%p236_p3) }
   0x9   : > { %v413_v6 = vand.u32 (!%p236_p3), %v411_v5, %v358_v2  ;;  %v1178_v61 = vld [vmem:[%s1328_s4] ss:$0 sm:$0xff] (!%p236_p3) }
   0xb   : > { %966 = vmatprep.subr.bf16.mxu0 (!%p236_p3), %v413_v6  ;;  %1000 = vmatprep.subr.bf16.mxu1 (!%p236_p3), %v413_v6 }
   0xc   : > { %967 = vmatpush3.bf16.msra.mxu0 (!%p236_p3), %v413_v6  ;;  %1001 = vmatpush3.bf16.msra.mxu1 (!%p236_p3), %v413_v6 }
   0xe   : > { %s1335_s26 = smov (!%p280_p4, %s924_s26), 159 }
   0xf   : > { %s925_s27 = sshll.u32 %s1335_s26, 3 }
  0x10   : > { %s1114_s30 = scalar_lea.vmem %s1324_s0, %s925_s27  ;;  %s1194_s14 = scalar_lea.vmem %s1329_s5, %s925_s27 }
  0x11   : > { %v308_v7 = vld [vmem:[%s1114_s30] sm:$0xff]  ;;  %v309_v8 = vld [vmem:[%s1114_s30 + $0x8] sm:$0xff]  ;;  %v310_v12 = vld [vmem:[%s1114_s30 + $0x10] sm:$0xff] }
  0x12   : > { %v324_v9 = vld [vmem:[%s1114_s30 + $0x80] sm:$0xff]  ;;  %v340_v10 = vpack.c.bf16 %v309_v8, %v308_v7  ;;  %v325_v11 = vld [vmem:[%s1114_s30 + $0x88] sm:$0xff]  ;;  %v311_v13 = vld [vmem:[%s1114_s30 + $0x18] sm:$0xff] }
  0x13   : > { %v348_v14 = vpack.c.bf16 %v325_v11, %v324_v9  ;;  %v341_v15 = vpack.c.bf16 %v311_v13, %v310_v12  ;;  %v326_v16 = vld [vmem:[%s1114_s30 + $0x90] sm:$0xff]  ;;  %v327_v17 = vld [vmem:[%s1114_s30 + $0x98] sm:$0xff]  ;;  %v312_v18 = vld [vmem:[%s1114_s30 + $0x20] sm:$0xff] }
  0x14   : > { %968 = vmatprep.mubr.msk.bf16.mxu0 %vm359_vm2, %v340_v10  ;;  %v349_v19 = vpack.c.bf16 %v327_v17, %v326_v16  ;;  %v313_v20 = vld [vmem:[%s1114_s30 + $0x28] sm:$0xff]  ;;  %v328_v21 = vld [vmem:[%s1114_s30 + $0xa0] sm:$0xff]  ;;  %v314_v25 = vld [vmem:[%s1114_s30 + $0x30] sm:$0xff] }
  0x15   : > { %v329_v22 = vld [vmem:[%s1114_s30 + $0xa8] sm:$0xff]  ;;  %984 = vmatprep.mubr.msk.bf16.mxu1 %vm359_vm2, %v348_v14  ;;  %969 = vmatmul.mubr.msk.bf16.vlgmr.msra.gmra.mrb[0].mxu0 %vm359_vm2, %v341_v15  ;;  %v342_v23 = vpack.c.bf16 %v313_v20, %v312_v18  ;;  %v315_v26 = vld [vmem:[%s1114_s30 + $0x38] sm:$0xff]  ;;  %v330_v27 = vld [vmem:[%s1114_s30 + $0xb0] sm:$0xff] }
  0x16   : > { %v350_v24 = vpack.c.bf16 %v329_v22, %v328_v21  ;;  %985 = vmatmul.mubr.msk.bf16.vlgmr.msra.gmra.mrb[0].mxu1 %vm359_vm2, %v349_v19  ;;  %v331_v28 = vld [vmem:[%s1114_s30 + $0xb8] sm:$0xff]  ;;  %v316_v29 = vld [vmem:[%s1114_s30 + $0x40] sm:$0xff]  ;;  %v317_v30 = vld [vmem:[%s1114_s30 + $0x48] sm:$0xff]  ;;  %v343_v33 = vpack.c.bf16 %v315_v26, %v314_v25 }
  0x17   : > { %972 = vmatprep.mubr.msk.bf16.mxu0 %vm359_vm2, %v342_v23  ;;  %v332_v31 = vld [vmem:[%s1114_s30 + $0xc0] sm:$0xff]  ;;  %v333_v32 = vld [vmem:[%s1114_s30 + $0xc8] sm:$0xff]  ;;  %v351_v34 = vpack.c.bf16 %v331_v28, %v330_v27  ;;  %v344_v35 = vpack.c.bf16 %v317_v30, %v316_v29  ;;  %v318_v37 = vld [vmem:[%s1114_s30 + $0x50] sm:$0xff] }
  0x18   : > { %988 = vmatprep.mubr.msk.bf16.mxu1 %vm359_vm2, %v350_v24  ;;  %v352_v36 = vpack.c.bf16 %v333_v32, %v332_v31  ;;  %v319_v38 = vld [vmem:[%s1114_s30 + $0x58] sm:$0xff]  ;;  %v334_v39 = vld [vmem:[%s1114_s30 + $0xd0] sm:$0xff]  ;;  %v320_v41 = vld [vmem:[%s1114_s30 + $0x60] sm:$0xff] }
  0x19   : > { %v335_v40 = vld [vmem:[%s1114_s30 + $0xd8] sm:$0xff]  ;;  %v321_v42 = vld [vmem:[%s1114_s30 + $0x68] sm:$0xff]  ;;  %v336_v43 = vld [vmem:[%s1114_s30 + $0xe0] sm:$0xff]  ;;  %v345_v45 = vpack.c.bf16 %v319_v38, %v318_v37 }
  0x1a   : > { %v337_v44 = vld [vmem:[%s1114_s30 + $0xe8] sm:$0xff]  ;;  %v353_v46 = vpack.c.bf16 %v335_v40, %v334_v39  ;;  %v346_v47 = vpack.c.bf16 %v321_v42, %v320_v41  ;;  %v322_v49 = vld [vmem:[%s1114_s30 + $0x70] sm:$0xff]  ;;  %v323_v50 = vld [vmem:[%s1114_s30 + $0x78] sm:$0xff] }
  0x1b   : > { %v354_v48 = vpack.c.bf16 %v337_v44, %v336_v43  ;;  %v338_v51 = vld [vmem:[%s1114_s30 + $0xf0] sm:$0xff]  ;;  %v339_v52 = vld [vmem:[%s1114_s30 + $0xf8] sm:$0xff]  ;;  %v347_v53 = vpack.c.bf16 %v323_v50, %v322_v49 }
  0x1c   : > { %v355_v54 = vpack.c.bf16 %v339_v52, %v338_v51 }
  0x1d   : > { %973 = vmatmul.mubr.msk.bf16.gmra.mrb[4].mxu0 %vm359_vm2, %v343_v33 }
  0x1e   : > { %989 = vmatmul.mubr.msk.bf16.gmra.mrb[4].mxu1 %vm359_vm2, %v351_v34  ;;  %976 = vmatprep.mubr.msk.bf16.mxu0 %vm359_vm2, %v344_v35 }
  0x1f   : > { %992 = vmatprep.mubr.msk.bf16.mxu1 %vm359_vm2, %v352_v36 }
  0x25   : > { %977 = vmatmul.mubr.msk.bf16.gmra.mrb[8].mxu0 %vm359_vm2, %v345_v45 }
  0x26   : > { %993 = vmatmul.mubr.msk.bf16.gmra.mrb[8].mxu1 %vm359_vm2, %v353_v46  ;;  %980 = vmatprep.mubr.msk.bf16.mxu0 %vm359_vm2, %v346_v47 }
  0x27   : > { %996 = vmatprep.mubr.msk.bf16.mxu1 %vm359_vm2, %v354_v48 }
  0x2d   : > { %981 = vmatmul.mubr.msk.bf16.gmra.mrb[12].mxu0 %vm359_vm2, %v347_v53 }
  0x2e   : > { %997 = vmatmul.mubr.msk.bf16.gmra.mrb[12].mxu1 %vm359_vm2, %v355_v54 }
  0xe8   : > { %v970_v56 = vpop.f32.mrb[0].mxu0 }
  0xe9   : > { %v585_v58 = vmul.f32 %v970_v56, %v1167_v55  ;;  %v986_v59 = vpop.f32.mrb[0].mxu1  ;;  %v449_v60 = vpop.f32.mrb[1].mxu0 }
  0xea   : > { %v601_v62 = vmul.f32 %v986_v59, %v1167_v55  ;;  %v583_v63 = vmul.f32 %v1167_v55, %v449_v60  ;;  %v513_v0 = vpop.f32.mrb[1].mxu1  ;;  %v971_v1 = vpop.f32.mrb[2].mxu0 }
  0xeb   : > { %v624_v2 = vadd.f32 %v1172_v57, %v585_v58  ;;  %v599_v3 = vmul.f32 %v1167_v55, %v513_v0  ;;  %v586_v4 = vmul.f32 %v971_v1, %v1167_v55  ;;  %v987_v5 = vpop.f32.mrb[2].mxu1  ;;  %v452_v6 = vpop.f32.mrb[3].mxu0 }
  0xec   : > { %v640_v7 = vadd.f32 %v1172_v57, %v601_v62  ;;  %v622_v8 = vadd.f32 %v1172_v57, %v583_v63  ;;  %v602_v9 = vmul.f32 %v987_v5, %v1167_v55  ;;  %v584_v10 = vmul.f32 %v1167_v55, %v452_v6  ;;  %v516_v11 = vpop.f32.mrb[3].mxu1 }
  0xed   : > { %vm656_vm3 = vcmp.ge.f32.partialorder %v624_v2, 0.0  ;;  %v695_v12 = vmul.f32 %v1178_v61, %v624_v2  ;;  %v638_v13 = vadd.f32 %v1172_v57, %v599_v3  ;;  %v625_v14 = vadd.f32 %v1172_v57, %v586_v4 }
  0xee   : > { %vm672_vm4 = vcmp.ge.f32.partialorder %v640_v7, 0.0  ;;  %v711_v15 = vmul.f32 %v1178_v61, %v640_v7  ;;  %vm654_vm5 = vcmp.ge.f32.partialorder %v622_v8, 0.0  ;;  %v693_v16 = vmul.f32 %v1178_v61, %v622_v8 }
  0xef   : > { %v727_v17 = vsel %vm656_vm3, %v624_v2, %v695_v12  ;;  %vm670_vm6 = vcmp.ge.f32.partialorder %v638_v13, 0.0  ;;  %v709_v18 = vmul.f32 %v1178_v61, %v638_v13  ;;  %vm657_vm7 = vcmp.ge.f32.partialorder %v625_v14, 0.0 }
  0xf0   : > { %759 = vst [vmem:[%s1194_s14 + $0x10] sm:$0xff] %v727_v17  ;;  %v743_v19 = vsel %vm672_vm4, %v640_v7, %v711_v15  ;;  %v725_v20 = vsel %vm654_vm5, %v622_v8, %v693_v16  ;;  %v696_v21 = vmul.f32 %v1178_v61, %v625_v14  ;;  %v641_v22 = vadd.f32 %v1172_v57, %v602_v9  ;;  %v974_v23 = vpop.f32.mrb[4].mxu0 }
  0xf1   : > { %775 = vst [vmem:[%s1194_s14 + $0x90] sm:$0xff] %v743_v19  ;;  %757 = vst [vmem:[%s1194_s14] sm:$0xff] %v725_v20  ;;  %v741_v24 = vsel %vm670_vm6, %v638_v13, %v709_v18  ;;  %v623_v25 = vadd.f32 %v1172_v57, %v584_v10  ;;  %v600_v26 = vmul.f32 %v1167_v55, %v516_v11  ;;  %v990_v28 = vpop.f32.mrb[4].mxu1  ;;  %v465_v29 = vpop.f32.mrb[5].mxu0 }
  0xf2   : > { %v589_v27 = vmul.f32 %v974_v23, %v1167_v55  ;;  %773 = vst [vmem:[%s1194_s14 + $0x80] sm:$0xff] %v741_v24  ;;  %v728_v30 = vsel %vm657_vm7, %v625_v14, %v696_v21  ;;  %vm673_vm8 = vcmp.ge.f32.partialorder %v641_v22, 0.0  ;;  %v712_v31 = vmul.f32 %v1178_v61, %v641_v22  ;;  %v529_v33 = vpop.f32.mrb[5].mxu1  ;;  %v975_v34 = vpop.f32.mrb[6].mxu0 }
  0xf3   : > { %v605_v32 = vmul.f32 %v990_v28, %v1167_v55  ;;  %760 = vst [vmem:[%s1194_s14 + $0x18] sm:$0xff] %v728_v30  ;;  %vm655_vm9 = vcmp.ge.f32.partialorder %v623_v25, 0.0  ;;  %v694_v35 = vmul.f32 %v1178_v61, %v623_v25  ;;  %v639_v36 = vadd.f32 %v1172_v57, %v600_v26  ;;  %v991_v38 = vpop.f32.mrb[6].mxu1  ;;  %v468_v39 = vpop.f32.mrb[7].mxu0 }
  0xf4   : > { %v628_v37 = vadd.f32 %v1172_v57, %v589_v27  ;;  %v744_v40 = vsel %vm673_vm8, %v641_v22, %v712_v31  ;;  %v587_v42 = vmul.f32 %v1167_v55, %v465_v29  ;;  %v603_v43 = vmul.f32 %v1167_v55, %v529_v33  ;;  %v532_v44 = vpop.f32.mrb[7].mxu1 }
  0xf5   : > { %v644_v41 = vadd.f32 %v1172_v57, %v605_v32  ;;  %776 = vst [vmem:[%s1194_s14 + $0x98] sm:$0xff] %v744_v40  ;;  %v726_v45 = vsel %vm655_vm9, %v623_v25, %v694_v35  ;;  %vm671_vm10 = vcmp.ge.f32.partialorder %v639_v36, 0.0  ;;  %v710_v46 = vmul.f32 %v1178_v61, %v639_v36 }
  0xf6   : > { %vm660_vm11 = vcmp.ge.f32.partialorder %v628_v37, 0.0  ;;  %758 = vst [vmem:[%s1194_s14 + $0x8] sm:$0xff] %v726_v45  ;;  %v699_v47 = vmul.f32 %v1178_v61, %v628_v37  ;;  %v626_v49 = vadd.f32 %v1172_v57, %v587_v42  ;;  %v642_v51 = vadd.f32 %v1172_v57, %v603_v43 }
  0xf7   : > { %vm676_vm12 = vcmp.ge.f32.partialorder %v644_v41, 0.0  ;;  %v715_v48 = vmul.f32 %v1178_v61, %v644_v41  ;;  %v742_v50 = vsel %vm671_vm10, %v639_v36, %v710_v46  ;;  %v590_v52 = vmul.f32 %v975_v34, %v1167_v55 }
  0xf8   : > { %v606_v53 = vmul.f32 %v991_v38, %v1167_v55  ;;  %774 = vst [vmem:[%s1194_s14 + $0x88] sm:$0xff] %v742_v50  ;;  %v731_v54 = vsel %vm660_vm11, %v628_v37, %v699_v47  ;;  %vm658_vm13 = vcmp.ge.f32.partialorder %v626_v49, 0.0  ;;  %v697_v58 = vmul.f32 %v1178_v61, %v626_v49  ;;  %v978_v59 = vpop.f32.mrb[8].mxu0 }
  0xf9   : > { %v747_v56 = vsel %vm676_vm12, %v644_v41, %v715_v48  ;;  %763 = vst [vmem:[%s1194_s14 + $0x30] sm:$0xff] %v731_v54  ;;  %vm674_vm14 = vcmp.ge.f32.partialorder %v642_v51, 0.0  ;;  %v713_v60 = vmul.f32 %v1178_v61, %v642_v51  ;;  %v629_v62 = vadd.f32 %v1172_v57, %v590_v52  ;;  %v994_v0 = vpop.f32.mrb[8].mxu1  ;;  %v481_v1 = vpop.f32.mrb[9].mxu0 }
  0xfa   : > { %779 = vst [vmem:[%s1194_s14 + $0xb0] sm:$0xff] %v747_v56  ;;  %v645_v63 = vadd.f32 %v1172_v57, %v606_v53  ;;  %v729_v2 = vsel %vm658_vm13, %v626_v49, %v697_v58  ;;  %v588_v3 = vmul.f32 %v1167_v55, %v468_v39  ;;  %v604_v4 = vmul.f32 %v1167_v55, %v532_v44  ;;  %v545_v6 = vpop.f32.mrb[9].mxu1  ;;  %v979_v7 = vpop.f32.mrb[10].mxu0 }
  0xfb   : > { %v593_v5 = vmul.f32 %v978_v59, %v1167_v55  ;;  %761 = vst [vmem:[%s1194_s14 + $0x20] sm:$0xff] %v729_v2  ;;  %v745_v8 = vsel %vm674_vm14, %v642_v51, %v713_v60  ;;  %vm661_vm15 = vcmp.ge.f32.partialorder %v629_v62, 0.0  ;;  %v700_v9 = vmul.f32 %v1178_v61, %v629_v62  ;;  %v995_v10 = vpop.f32.mrb[10].mxu1  ;;  %v484_v11 = vpop.f32.mrb[11].mxu0 }
  0xfc   : > { %vm677_vm0 = vcmp.ge.f32.partialorder %v645_v63, 0.0  ;;  %777 = vst [vmem:[%s1194_s14 + $0xa0] sm:$0xff] %v745_v8  ;;  %v716_v12 = vmul.f32 %v1178_v61, %v645_v63  ;;  %v627_v13 = vadd.f32 %v1172_v57, %v588_v3  ;;  %v643_v14 = vadd.f32 %v1172_v57, %v604_v4  ;;  %v548_v16 = vpop.f32.mrb[11].mxu1 }
  0xfd   : > { %v632_v15 = vadd.f32 %v1172_v57, %v593_v5  ;;  %v732_v17 = vsel %vm661_vm15, %v629_v62, %v700_v9  ;;  %v609_v18 = vmul.f32 %v994_v0, %v1167_v55  ;;  %v591_v19 = vmul.f32 %v1167_v55, %v481_v1 }
  0xfe   : > { %v607_v20 = vmul.f32 %v1167_v55, %v545_v6  ;;  %764 = vst [vmem:[%s1194_s14 + $0x38] sm:$0xff] %v732_v17  ;;  %v748_v21 = vsel %vm677_vm0, %v645_v63, %v716_v12  ;;  %vm659_vm1 = vcmp.ge.f32.partialorder %v627_v13, 0.0  ;;  %v698_v22 = vmul.f32 %v1178_v61, %v627_v13 }
  0xff   : > { %vm675_vm2 = vcmp.ge.f32.partialorder %v643_v14, 0.0  ;;  %780 = vst [vmem:[%s1194_s14 + $0xb8] sm:$0xff] %v748_v21  ;;  %v714_v23 = vmul.f32 %v1178_v61, %v643_v14  ;;  %vm664_vm3 = vcmp.ge.f32.partialorder %v632_v15, 0.0  ;;  %v703_v24 = vmul.f32 %v1178_v61, %v632_v15 }
 0x100   : > { %v648_v25 = vadd.f32 %v1172_v57, %v609_v18  ;;  %v730_v26 = vsel %vm659_vm1, %v627_v13, %v698_v22  ;;  %v630_v27 = vadd.f32 %v1172_v57, %v591_v19  ;;  %v646_v28 = vadd.f32 %v1172_v57, %v607_v20  ;;  %v982_v30 = vpop.f32.mrb[12].mxu0 }
 0x101   : > { %v594_v29 = vmul.f32 %v979_v7, %v1167_v55  ;;  %762 = vst [vmem:[%s1194_s14 + $0x28] sm:$0xff] %v730_v26  ;;  %v746_v31 = vsel %vm675_vm2, %v643_v14, %v714_v23  ;;  %v735_v32 = vsel %vm664_vm3, %v632_v15, %v703_v24  ;;  %v998_v34 = vpop.f32.mrb[12].mxu1  ;;  %v497_v35 = vpop.f32.mrb[13].mxu0  ;;  %v610_v42 = vmul.f32 %v995_v10, %v1167_v55 }
 0x102   : > { %vm680_vm4 = vcmp.ge.f32.partialorder %v648_v25, 0.0  ;;  %v719_v33 = vmul.f32 %v1178_v61, %v648_v25  ;;  %778 = vst [vmem:[%s1194_s14 + $0xa8] sm:$0xff] %v746_v31  ;;  %767 = vst [vmem:[%s1194_s14 + $0x50] sm:$0xff] %v735_v32  ;;  %vm662_vm5 = vcmp.ge.f32.partialorder %v630_v27, 0.0  ;;  %v701_v36 = vmul.f32 %v1178_v61, %v630_v27  ;;  %v561_v38 = vpop.f32.mrb[13].mxu1  ;;  %v983_v39 = vpop.f32.mrb[14].mxu0 }
 0x103   : > { %vm678_vm6 = vcmp.ge.f32.partialorder %v646_v28, 0.0  ;;  %v717_v37 = vmul.f32 %v1178_v61, %v646_v28  ;;  %v633_v41 = vadd.f32 %v1172_v57, %v594_v29  ;;  %v592_v43 = vmul.f32 %v1167_v55, %v484_v11  ;;  %v999_v44 = vpop.f32.mrb[14].mxu1  ;;  %v500_v45 = vpop.f32.mrb[15].mxu0 }
 0x104   : > { %v751_v40 = vsel %vm680_vm4, %v648_v25, %v719_v33  ;;  %v733_v46 = vsel %vm662_vm5, %v630_v27, %v701_v36  ;;  %v608_v48 = vmul.f32 %v1167_v55, %v548_v16  ;;  %v597_v49 = vmul.f32 %v982_v30, %v1167_v55  ;;  %v564_v50 = vpop.f32.mrb[15].mxu1 }
 0x105   : > { %783 = vst [vmem:[%s1194_s14 + $0xd0] sm:$0xff] %v751_v40  ;;  %v749_v47 = vsel %vm678_vm6, %v646_v28, %v717_v37  ;;  %765 = vst [vmem:[%s1194_s14 + $0x40] sm:$0xff] %v733_v46  ;;  %vm665_vm7 = vcmp.ge.f32.partialorder %v633_v41, 0.0  ;;  %v704_v51 = vmul.f32 %v1178_v61, %v633_v41  ;;  %v649_v52 = vadd.f32 %v1172_v57, %v610_v42 }
 0x106   : > { %781 = vst [vmem:[%s1194_s14 + $0xc0] sm:$0xff] %v749_v47  ;;  %v631_v53 = vadd.f32 %v1172_v57, %v592_v43  ;;  %v647_v54 = vadd.f32 %v1172_v57, %v608_v48  ;;  %v636_v56 = vadd.f32 %v1172_v57, %v597_v49  ;;  %v613_v58 = vmul.f32 %v998_v34, %v1167_v55 }
 0x107   : > { %v595_v59 = vmul.f32 %v1167_v55, %v497_v35  ;;  %v736_v60 = vsel %vm665_vm7, %v633_v41, %v704_v51  ;;  %vm681_vm8 = vcmp.ge.f32.partialorder %v649_v52, 0.0  ;;  %v720_v62 = vmul.f32 %v1178_v61, %v649_v52 }
 0x108   : > { %vm663_vm9 = vcmp.ge.f32.partialorder %v631_v53, 0.0  ;;  %768 = vst [vmem:[%s1194_s14 + $0x58] sm:$0xff] %v736_v60  ;;  %v702_v63 = vmul.f32 %v1178_v61, %v631_v53  ;;  %vm679_vm10 = vcmp.ge.f32.partialorder %v647_v54, 0.0  ;;  %v718_v0 = vmul.f32 %v1178_v61, %v647_v54 }
 0x109   : > { %vm668_vm11 = vcmp.ge.f32.partialorder %v636_v56, 0.0  ;;  %v752_v1 = vsel %vm681_vm8, %v649_v52, %v720_v62  ;;  %v707_v2 = vmul.f32 %v1178_v61, %v636_v56  ;;  %v652_v3 = vadd.f32 %v1172_v57, %v613_v58 }
 0x10a   : > { %v634_v4 = vadd.f32 %v1172_v57, %v595_v59  ;;  %784 = vst [vmem:[%s1194_s14 + $0xd8] sm:$0xff] %v752_v1  ;;  %v734_v5 = vsel %vm663_vm9, %v631_v53, %v702_v63  ;;  %v750_v6 = vsel %vm679_vm10, %v647_v54, %v718_v0  ;;  %v611_v7 = vmul.f32 %v1167_v55, %v561_v38 }
 0x10b   : > { %v598_v8 = vmul.f32 %v983_v39, %v1167_v55  ;;  %766 = vst [vmem:[%s1194_s14 + $0x48] sm:$0xff] %v734_v5  ;;  %782 = vst [vmem:[%s1194_s14 + $0xc8] sm:$0xff] %v750_v6  ;;  %v739_v9 = vsel %vm668_vm11, %v636_v56, %v707_v2  ;;  %vm684_vm12 = vcmp.ge.f32.partialorder %v652_v3, 0.0  ;;  %v723_v10 = vmul.f32 %v1178_v61, %v652_v3 }
 0x10c   : > { %vm666_vm13 = vcmp.ge.f32.partialorder %v634_v4, 0.0  ;;  %771 = vst [vmem:[%s1194_s14 + $0x70] sm:$0xff] %v739_v9  ;;  %v705_v11 = vmul.f32 %v1178_v61, %v634_v4  ;;  %v650_v12 = vadd.f32 %v1172_v57, %v611_v7  ;;  %v614_v14 = vmul.f32 %v999_v44, %v1167_v55 }
 0x10d   : > { %v637_v13 = vadd.f32 %v1172_v57, %v598_v8  ;;  %v755_v15 = vsel %vm684_vm12, %v652_v3, %v723_v10  ;;  %v596_v16 = vmul.f32 %v1167_v55, %v500_v45  ;;  %v612_v17 = vmul.f32 %v1167_v55, %v564_v50 }
 0x10e   : > { %787 = vst [vmem:[%s1194_s14 + $0xf0] sm:$0xff] %v755_v15  ;;  %v737_v18 = vsel %vm666_vm13, %v634_v4, %v705_v11  ;;  %vm682_vm14 = vcmp.ge.f32.partialorder %v650_v12, 0.0  ;;  %v721_v19 = vmul.f32 %v1178_v61, %v650_v12  ;;  %v653_v21 = vadd.f32 %v1172_v57, %v614_v14 }
 0x10f   : > { %vm669_vm15 = vcmp.ge.f32.partialorder %v637_v13, 0.0  ;;  %769 = vst [vmem:[%s1194_s14 + $0x60] sm:$0xff] %v737_v18  ;;  %v708_v20 = vmul.f32 %v1178_v61, %v637_v13  ;;  %v635_v22 = vadd.f32 %v1172_v57, %v596_v16  ;;  %v651_v23 = vadd.f32 %v1172_v57, %v612_v17 }
 0x110   : > { %v753_v55 = vsel %vm682_vm14, %v650_v12, %v721_v19  ;;  %vm685_vm0 = vcmp.ge.f32.partialorder %v653_v21, 0.0  ;;  %v724_v25 = vmul.f32 %v1178_v61, %v653_v21 }
 0x111   : > { %785 = vst [vmem:[%s1194_s14 + $0xe0] sm:$0xff] %v753_v55  ;;  %v740_v24 = vsel %vm669_vm15, %v637_v13, %v708_v20  ;;  %vm667_vm1 = vcmp.ge.f32.partialorder %v635_v22, 0.0  ;;  %v706_v26 = vmul.f32 %v1178_v61, %v635_v22  ;;  %vm683_vm2 = vcmp.ge.f32.partialorder %v651_v23, 0.0 }
 0x112   : > { %772 = vst [vmem:[%s1194_s14 + $0x78] sm:$0xff] %v740_v24  ;;  %v722_v27 = vmul.f32 %v1178_v61, %v651_v23  ;;  %v756_v28 = vsel %vm685_vm0, %v653_v21, %v724_v25 }
 0x113   : > { %788 = vst [vmem:[%s1194_s14 + $0xf8] sm:$0xff] %v756_v28  ;;  %v738_v29 = vsel %vm667_vm1, %v635_v22, %v706_v26 }
 0x114   : > { %v754_v30 = vsel %vm683_vm2, %v651_v23, %v722_v27  ;;  %770 = vst [vmem:[%s1194_s14 + $0x68] sm:$0xff] %v738_v29 }
 0x115   : > { %786 = vst [vmem:[%s1194_s14 + $0xe8] sm:$0xff] %v754_v30 }
 0x116 PF: > { %s15_s20 = sadd.s32 1, %s1049_s20   ;;  %s1330_s18 = smov %s1045_s19 }
 0x117   : > { %p12_p5 = scmp.ge.s32.totalorder %s15_s20, 7   ;;  %s1331_s19 = smov %s1333_s21 }
 0x119   :  { %14 = sbr.rel (!%p12_p5) target bundleno = 2 (0x2), region = 82 }

// kernel: emg_branch_forward.12
= control target key start
LH: loop header
LB: loop body
LE: loop exit
PB: predicated region body
PF: predicated region fallthrough
CT: control target
= control target key end

     0   :  { %v939_v0 = vmov 0   ;;  %vm275_vm0 = vcmask 785408   ;;  %s1755_s1 = inlined_call_operand.vmem [shape: f32[480,128], index: 1, kind: input, shape index: {}]   ;;  %s1756_s0 = inlined_call_operand.vmem [shape: f32[216,480], index: 0, kind: input, shape index: {}]   ;;  %s1757_s2 = inlined_call_operand.vmem [shape: f32[1,128], index: 2, kind: input, shape index: {}]   ;;  %s1758_s3 = inlined_call_operand.vmem [shape: f32[1,128], index: 3, kind: input, shape index: {}]   ;;  %s1759_s4 = inlined_call_operand.vmem [shape: f32[1,128], index: 4, kind: input, shape index: {}]   ;;  %s1760_s5 = inlined_call_operand.vmem [shape: f32[216,128], index: 5, kind: output, shape index: {}]  }
   0x1   :  { %910 = vmatprep.subr.bf16.mxu1 %v939_v0  ;;  %v201_v1 = vld [vmem:[%s1755_s1 + $0x80] sm:$0xff]  ;;  %v202_v2 = vld [vmem:[%s1755_s1 + $0x88] sm:$0xff]  ;;  %v203_v10 = vld [vmem:[%s1755_s1 + $0x90] sm:$0xff] }
   0x2   :  { %v217_v3 = vld [vmem:[%s1755_s1 + $0x100] sm:$0xff]  ;;  %v253_v4 = vpack.c.bf16 %v202_v2, %v201_v1  ;;  %v218_v5 = vld [vmem:[%s1755_s1 + $0x108] sm:$0xff]  ;;  %v204_v11 = vld [vmem:[%s1755_s1 + $0x98] sm:$0xff] }
   0x3   :  { %v185_v6 = vld [vmem:[%s1755_s1] sm:$0xff]  ;;  %v186_v7 = vld [vmem:[%s1755_s1 + $0x8] sm:$0xff]  ;;  %v989_v8 = vpack.c.bf16 %v218_v5, %v217_v3  ;;  %v219_v12 = vld [vmem:[%s1755_s1 + $0x110] sm:$0xff]  ;;  %v254_v13 = vpack.c.bf16 %v204_v11, %v203_v10 }
   0x4   :  { %v245_v9 = vpack.c.bf16 %v186_v7, %v185_v6  ;;  %810 = vmatprep.subr.bf16.mxu0 %v253_v4  ;;  %v220_v14 = vld [vmem:[%s1755_s1 + $0x118] sm:$0xff]  ;;  %v187_v15 = vld [vmem:[%s1755_s1 + $0x10] sm:$0xff]  ;;  %v205_v19 = vld [vmem:[%s1755_s1 + $0xa0] sm:$0xff] }
   0x5   :  { %v188_v16 = vld [vmem:[%s1755_s1 + $0x18] sm:$0xff]  ;;  %924 = vmatpush1.bf16.msra.mxu1 %v989_v8  ;;  %v1010_v17 = vpack.c.bf16 %v220_v14, %v219_v12  ;;  %v206_v20 = vld [vmem:[%s1755_s1 + $0xa8] sm:$0xff]  ;;  %v221_v21 = vld [vmem:[%s1755_s1 + $0x120] sm:$0xff] }
   0x6   :  { %811 = vmatpush3.bf16.msra.mxu0 %v245_v9  ;;  %v246_v18 = vpack.c.bf16 %v188_v16, %v187_v15  ;;  %911 = vmatprep.subr.bf16.mxu1 %v939_v0  ;;  %v255_v22 = vpack.c.bf16 %v206_v20, %v205_v19  ;;  %v222_v23 = vld [vmem:[%s1755_s1 + $0x128] sm:$0xff]  ;;  %v189_v24 = vld [vmem:[%s1755_s1 + $0x20] sm:$0xff]  ;;  %v207_v26 = vld [vmem:[%s1755_s1 + $0xb0] sm:$0xff] }
   0x7   :  { %812 = vmatprep.subr.bf16.mxu0 %v254_v13  ;;  %v190_v25 = vld [vmem:[%s1755_s1 + $0x28] sm:$0xff]  ;;  %v208_v27 = vld [vmem:[%s1755_s1 + $0xb8] sm:$0xff]  ;;  %v1038_v28 = vpack.c.bf16 %v222_v23, %v221_v21  ;;  %v223_v30 = vld [vmem:[%s1755_s1 + $0x130] sm:$0xff] }
   0x8   :  { %v247_v29 = vpack.c.bf16 %v190_v25, %v189_v24  ;;  %v256_v31 = vpack.c.bf16 %v208_v27, %v207_v26  ;;  %v224_v32 = vld [vmem:[%s1755_s1 + $0x138] sm:$0xff]  ;;  %v191_v33 = vld [vmem:[%s1755_s1 + $0x30] sm:$0xff]  ;;  %v209_v35 = vld [vmem:[%s1755_s1 + $0xc0] sm:$0xff] }
   0x9   :  { %925 = vmatpush1.bf16.msra.mxu1 %v1010_v17  ;;  %v192_v34 = vld [vmem:[%s1755_s1 + $0x38] sm:$0xff]  ;;  %v210_v36 = vld [vmem:[%s1755_s1 + $0xc8] sm:$0xff]  ;;  %v1060_v37 = vpack.c.bf16 %v224_v32, %v223_v30  ;;  %v225_v39 = vld [vmem:[%s1755_s1 + $0x140] sm:$0xff] }
   0xa   :  { %813 = vmatpush3.bf16.msra.mxu0 %v246_v18  ;;  %912 = vmatprep.subr.bf16.mxu1 %v939_v0  ;;  %v248_v38 = vpack.c.bf16 %v192_v34, %v191_v33  ;;  %v257_v40 = vpack.c.bf16 %v210_v36, %v209_v35  ;;  %v226_v41 = vld [vmem:[%s1755_s1 + $0x148] sm:$0xff]  ;;  %v193_v42 = vld [vmem:[%s1755_s1 + $0x40] sm:$0xff]  ;;  %v211_v44 = vld [vmem:[%s1755_s1 + $0xd0] sm:$0xff] }
   0xb   :  { %814 = vmatprep.subr.bf16.mxu0 %v255_v22  ;;  %v194_v43 = vld [vmem:[%s1755_s1 + $0x48] sm:$0xff]  ;;  %v212_v45 = vld [vmem:[%s1755_s1 + $0xd8] sm:$0xff]  ;;  %v1082_v46 = vpack.c.bf16 %v226_v41, %v225_v39  ;;  %v227_v48 = vld [vmem:[%s1755_s1 + $0x150] sm:$0xff] }
   0xc   :  { %v249_v47 = vpack.c.bf16 %v194_v43, %v193_v42  ;;  %v22_v49 = vld [vmem:[%s1756_s0 + $0x8] sm:$0xff]  ;;  %v258_v51 = vpack.c.bf16 %v212_v45, %v211_v44  ;;  %v228_v52 = vld [vmem:[%s1755_s1 + $0x158] sm:$0xff]  ;;  %v195_v53 = vld [vmem:[%s1755_s1 + $0x50] sm:$0xff] }
   0xd   :  { %926 = vmatpush1.bf16.msra.mxu1 %v1038_v28  ;;  %v26_v50 = vld [vmem:[%s1756_s0 + $0x28] sm:$0xff]  ;;  %v196_v54 = vld [vmem:[%s1755_s1 + $0x58] sm:$0xff]  ;;  %v213_v56 = vld [vmem:[%s1755_s1 + $0xe0] sm:$0xff]  ;;  %v1110_v58 = vpack.c.bf16 %v228_v52, %v227_v48 }
   0xe   :  { %815 = vmatpush3.bf16.msra.mxu0 %v247_v29  ;;  %913 = vmatprep.subr.bf16.mxu1 %v939_v0  ;;  %v130_v55 = vpack.c.bf16 %v26_v50, %v22_v49  ;;  %v214_v57 = vld [vmem:[%s1755_s1 + $0xe8] sm:$0xff]  ;;  %v250_v59 = vpack.c.bf16 %v196_v54, %v195_v53  ;;  %v229_v60 = vld [vmem:[%s1755_s1 + $0x160] sm:$0xff]  ;;  %v215_v2 = vld [vmem:[%s1755_s1 + $0xf0] sm:$0xff] }
   0xf   :  { %816 = vmatprep.subr.bf16.mxu0 %v256_v31  ;;  %v259_v61 = vpack.c.bf16 %v214_v57, %v213_v56  ;;  %v230_v62 = vld [vmem:[%s1755_s1 + $0x168] sm:$0xff]  ;;  %v197_v63 = vld [vmem:[%s1755_s1 + $0x60] sm:$0xff]  ;;  %v216_v3 = vld [vmem:[%s1755_s1 + $0xf8] sm:$0xff] }
  0x10   :  { %350 = vmatprep.mubr.bf16.mxu0 %v130_v55  ;;  %v198_v1 = vld [vmem:[%s1755_s1 + $0x68] sm:$0xff]  ;;  %v1132_v4 = vpack.c.bf16 %v230_v62, %v229_v60  ;;  %v231_v6 = vld [vmem:[%s1755_s1 + $0x170] sm:$0xff]  ;;  %v32_v7 = vld [vmem:[%s1756_s0 + $0x58] sm:$0xff]  ;;  %v260_v10 = vpack.c.bf16 %v216_v3, %v215_v2 }
  0x11   :  { %927 = vmatpush1.bf16.msra.mxu1 %v1060_v37  ;;  %v251_v5 = vpack.c.bf16 %v198_v1, %v197_v63  ;;  %v36_v9 = vld [vmem:[%s1756_s0 + $0x78] sm:$0xff]  ;;  %v199_v12 = vld [vmem:[%s1755_s1 + $0x70] sm:$0xff]  ;;  %v21_v18 = vld [vmem:[%s1756_s0] sm:$0xff] }
  0x12   :  { %817 = vmatpush3.bf16.msra.mxu0 %v248_v38  ;;  %914 = vmatprep.subr.bf16.mxu1 %v939_v0  ;;  %v232_v11 = vld [vmem:[%s1755_s1 + $0x178] sm:$0xff]  ;;  %v136_v14 = vpack.c.bf16 %v36_v9, %v32_v7  ;;  %v25_v19 = vld [vmem:[%s1756_s0 + $0x20] sm:$0xff]  ;;  %v234_v21 = vld [vmem:[%s1755_s1 + $0x188] sm:$0xff] }
  0x13   :  { %818 = vmatprep.subr.bf16.mxu0 %v257_v40  ;;  %v200_v13 = vld [vmem:[%s1755_s1 + $0x78] sm:$0xff]  ;;  %v1155_v15 = vpack.c.bf16 %v232_v11, %v231_v6  ;;  %v233_v20 = vld [vmem:[%s1755_s1 + $0x180] sm:$0xff]  ;;  %v30_v22 = vld [vmem:[%s1756_s0 + $0x48] sm:$0xff]  ;;  %v129_v24 = vpack.c.bf16 %v25_v19, %v21_v18 }
  0x14   :  { %794 = vmatprep.mubr.msk.bf16.mxu1 %vm275_vm0, %v136_v14  ;;  %v252_v16 = vpack.c.bf16 %v200_v13, %v199_v12  ;;  %v34_v23 = vld [vmem:[%s1756_s0 + $0x68] sm:$0xff]  ;;  %v1177_v25 = vpack.c.bf16 %v234_v21, %v233_v20  ;;  %v235_v26 = vld [vmem:[%s1755_s1 + $0x190] sm:$0xff]  ;;  %v236_v27 = vld [vmem:[%s1755_s1 + $0x198] sm:$0xff] }
  0x15   :  { %928 = vmatpush1.bf16.msra.mxu1 %v1082_v46  ;;  %v134_v29 = vpack.c.bf16 %v34_v23, %v30_v22  ;;  %v1188_v30 = vpack.c.bf16 %v236_v27, %v235_v26  ;;  %v29_v31 = vld [vmem:[%s1756_s0 + $0x40] sm:$0xff]  ;;  %v238_v34 = vld [vmem:[%s1755_s1 + $0x1a8] sm:$0xff]  ;;  %v239_v40 = vld [vmem:[%s1755_s1 + $0x1b0] sm:$0xff] }
  0x16   :  { %819 = vmatpush3.bf16.msra.mxu0 %v249_v47  ;;  %915 = vmatprep.subr.bf16.mxu1 %v939_v0  ;;  %v33_v32 = vld [vmem:[%s1756_s0 + $0x60] sm:$0xff]  ;;  %v42_v35 = vld [vmem:[%s1756_s0 + $0xa8] sm:$0xff]  ;;  %v240_v41 = vld [vmem:[%s1755_s1 + $0x1b8] sm:$0xff] }
  0x17   :  { %820 = vmatprep.subr.bf16.mxu0 %v258_v51  ;;  %v237_v33 = vld [vmem:[%s1755_s1 + $0x1a0] sm:$0xff]  ;;  %v133_v36 = vpack.c.bf16 %v33_v32, %v29_v31  ;;  %v1224_v42 = vpack.c.bf16 %v240_v41, %v239_v40  ;;  %v242_v45 = vld [vmem:[%s1755_s1 + $0x1c8] sm:$0xff]  ;;  %v244_v52 = vld [vmem:[%s1755_s1 + $0x1d8] sm:$0xff] }
  0x18   :  { %v1212_v38 = vpack.c.bf16 %v238_v34, %v237_v33  ;;  %v41_v43 = vld [vmem:[%s1756_s0 + $0xa0] sm:$0xff]  ;;  %v46_v47 = vld [vmem:[%s1756_s0 + $0xc8] sm:$0xff]  ;;  %v31_v53 = vld [vmem:[%s1756_s0 + $0x50] sm:$0xff] }
  0x19   :  { %929 = vmatpush1.bf16.msra.mxu1 %v1110_v58  ;;  %v241_v44 = vld [vmem:[%s1755_s1 + $0x1c0] sm:$0xff]  ;;  %v50_v48 = vld [vmem:[%s1756_s0 + $0xe8] sm:$0xff]  ;;  %v35_v54 = vld [vmem:[%s1756_s0 + $0x70] sm:$0xff] }
  0x1a   :  { %821 = vmatpush3.bf16.msra.mxu0 %v250_v59  ;;  %916 = vmatprep.subr.bf16.mxu1 %v939_v0  ;;  %v1248_v50 = vpack.c.bf16 %v242_v45, %v241_v44  ;;  %v142_v51 = vpack.c.bf16 %v50_v48, %v46_v47  ;;  %v49_v56 = vld [vmem:[%s1756_s0 + $0xe0] sm:$0xff]  ;;  %v40_v57 = vld [vmem:[%s1756_s0 + $0x98] sm:$0xff]  ;;  %v54_v60 = vld [vmem:[%s1756_s0 + $0x108] sm:$0xff]  ;;  %v135_v62 = vpack.c.bf16 %v35_v54, %v31_v53 }
  0x1b   :  { %822 = vmatprep.subr.bf16.mxu0 %v259_v61  ;;  %v44_v59 = vld [vmem:[%s1756_s0 + $0xb8] sm:$0xff]  ;;  %v58_v61 = vld [vmem:[%s1756_s0 + $0x128] sm:$0xff]  ;;  %v39_v3 = vld [vmem:[%s1756_s0 + $0x90] sm:$0xff] }
  0x1c   :  { %v140_v1 = vpack.c.bf16 %v44_v59, %v40_v57  ;;  %v146_v2 = vpack.c.bf16 %v58_v61, %v54_v60  ;;  %v48_v6 = vld [vmem:[%s1756_s0 + $0xd8] sm:$0xff]  ;;  %v62_v9 = vld [vmem:[%s1756_s0 + $0x148] sm:$0xff]  ;;  %v61_v18 = vld [vmem:[%s1756_s0 + $0x140] sm:$0xff] }
  0x1d   :  { %930 = vmatpush1.bf16.msra.mxu1 %v1132_v4  ;;  %v52_v7 = vld [vmem:[%s1756_s0 + $0xf8] sm:$0xff]  ;;  %v70_v21 = vld [vmem:[%s1756_s0 + $0x188] sm:$0xff]  ;;  %v69_v31 = vld [vmem:[%s1756_s0 + $0x180] sm:$0xff] }
  0x1e   :  { %823 = vmatpush3.bf16.msra.mxu0 %v251_v5  ;;  %917 = vmatprep.subr.bf16.mxu1 %v939_v0  ;;  %v53_v5 = vld [vmem:[%s1756_s0 + $0x100] sm:$0xff]  ;;  %v144_v13 = vpack.c.bf16 %v52_v7, %v48_v6  ;;  %v56_v19 = vld [vmem:[%s1756_s0 + $0x118] sm:$0xff]  ;;  %v74_v22 = vld [vmem:[%s1756_s0 + $0x1a8] sm:$0xff] }
  0x1f   :  { %824 = vmatprep.subr.bf16.mxu0 %v260_v10  ;;  %v66_v10 = vld [vmem:[%s1756_s0 + $0x168] sm:$0xff]  ;;  %v60_v20 = vld [vmem:[%s1756_s0 + $0x138] sm:$0xff]  ;;  %v154_v27 = vpack.c.bf16 %v74_v22, %v70_v21  ;;  %v63_v41 = vld [vmem:[%s1756_s0 + $0x150] sm:$0xff] }
  0x20   :  { %v150_v14 = vpack.c.bf16 %v66_v10, %v62_v9  ;;  %v148_v26 = vpack.c.bf16 %v60_v20, %v56_v19  ;;  %v64_v32 = vld [vmem:[%s1756_s0 + $0x158] sm:$0xff]  ;;  %v78_v34 = vld [vmem:[%s1756_s0 + $0x1c8] sm:$0xff]  ;;  %v75_v53 = vld [vmem:[%s1756_s0 + $0x1b0] sm:$0xff] }
  0x21   :  { %931 = vmatpush1.bf16.msra.mxu1 %v1155_v15  ;;  %v68_v33 = vld [vmem:[%s1756_s0 + $0x178] sm:$0xff]  ;;  %v86_v45 = vld [vmem:[%s1756_s0 + $0x208] sm:$0xff] }
  0x22   :  { %825 = vmatpush3.bf16.msra.mxu0 %v252_v16  ;;  %918 = vmatprep.subr.bf16.mxu1 %v939_v0  ;;  %v47_v16 = vld [vmem:[%s1756_s0 + $0xd0] sm:$0xff]  ;;  %v76_v44 = vld [vmem:[%s1756_s0 + $0x1b8] sm:$0xff]  ;;  %v90_v47 = vld [vmem:[%s1756_s0 + $0x228] sm:$0xff] }
  0x23   :  { %462 = vmatprep.subr.bf16.mxu0 %v939_v0  ;;  %v80_v54 = vld [vmem:[%s1756_s0 + $0x1d8] sm:$0xff] }
  0x25   :  { %351 = vmatmul.mubr.bf16.vlgmr.msra.gmra.mrb[0].mxu0 %v129_v24  ;;  %932 = vmatpush1.bf16.msra.mxu1 %v1177_v25 }
  0x26   :  { %463 = vmatpush1.bf16.msra.mxu0 %v989_v8  ;;  %919 = vmatprep.subr.bf16.mxu1 %v939_v0  ;;  %v38_v8 = vld [vmem:[%s1756_s0 + $0x88] sm:$0xff] }
  0x27   :  { %358 = vmatprep.mubr.bf16.mxu0 %v134_v29  ;;  %464 = vmatprep.subr.bf16.mxu0 %v939_v0  ;;  %v138_v39 = vpack.c.bf16 %v42_v35, %v38_v8  ;;  %v55_v29 = vld [vmem:[%s1756_s0 + $0x110] sm:$0xff]  ;;  %v82_v8 = vld [vmem:[%s1756_s0 + $0x1e8] sm:$0xff] }
  0x28   :  { %v158_v40 = vpack.c.bf16 %v82_v8, %v78_v34 }
  0x29   :  { %933 = vmatpush1.bf16.msra.mxu1 %v1188_v30 }
  0x2a   :  { %465 = vmatpush1.bf16.msra.mxu0 %v1010_v17  ;;  %920 = vmatprep.subr.bf16.mxu1 %v939_v0  ;;  %v37_v17 = vld [vmem:[%s1756_s0 + $0x80] sm:$0xff] }
  0x2b   :  { %466 = vmatprep.subr.bf16.mxu0 %v939_v0  ;;  %v137_v49 = vpack.c.bf16 %v41_v43, %v37_v17  ;;  %v77_v17 = vld [vmem:[%s1756_s0 + $0x1c0] sm:$0xff]  ;;  %v72_v43 = vld [vmem:[%s1756_s0 + $0x198] sm:$0xff] }
  0x2d   :  { %359 = vmatmul.mubr.bf16.gmra.mrb[4].mxu0 %v133_v36  ;;  %934 = vmatpush1.bf16.msra.mxu1 %v1212_v38 }
  0x2e   :  { %366 = vmatprep.mubr.bf16.mxu0 %v138_v39  ;;  %921 = vmatprep.subr.bf16.mxu1 %v939_v0  ;;  %v152_v39 = vpack.c.bf16 %v68_v33, %v64_v32 }
  0x2f   :  { %467 = vmatpush1.bf16.msra.mxu0 %v1038_v28  ;;  %v243_v28 = vld [vmem:[%s1755_s1 + $0x1d0] sm:$0xff] }
  0x30   :  { %468 = vmatprep.subr.bf16.mxu0 %v939_v0  ;;  %v1266_v55 = vpack.c.bf16 %v244_v52, %v243_v28  ;;  %v162_v28 = vpack.c.bf16 %v90_v47, %v86_v45  ;;  %v71_v52 = vld [vmem:[%s1756_s0 + $0x190] sm:$0xff] }
  0x31   :  { %935 = vmatpush1.bf16.msra.mxu1 %v1224_v42  ;;  %v155_v57 = vpack.c.bf16 %v75_v53, %v71_v52  ;;  %v111_v47 = vld [vmem:[%s1756_s0 + $0x2d0] sm:$0xff]  ;;  %v24_v52 = vld [vmem:[%s1756_s0 + $0x18] sm:$0xff] }
  0x32   :  { %922 = vmatprep.subr.bf16.mxu1 %v939_v0  ;;  %v28_v53 = vld [vmem:[%s1756_s0 + $0x38] sm:$0xff] }
  0x33   :  { %469 = vmatpush1.bf16.msra.mxu0 %v1060_v37  ;;  %v45_v37 = vld [vmem:[%s1756_s0 + $0xc0] sm:$0xff] }
  0x34   :  { %470 = vmatprep.subr.bf16.mxu0 %v939_v0  ;;  %v141_v63 = vpack.c.bf16 %v49_v56, %v45_v37  ;;  %v94_v37 = vld [vmem:[%s1756_s0 + $0x248] sm:$0xff] }
  0x35   :  { %367 = vmatmul.mubr.bf16.gmra.mrb[8].mxu0 %v137_v49  ;;  %936 = vmatpush1.bf16.msra.mxu1 %v1248_v50  ;;  %v98_v56 = vld [vmem:[%s1756_s0 + $0x268] sm:$0xff] }
  0x36   :  { %374 = vmatprep.mubr.bf16.mxu0 %v142_v51  ;;  %923 = vmatprep.subr.bf16.mxu1 %v939_v0  ;;  %v156_v51 = vpack.c.bf16 %v76_v44, %v72_v43  ;;  %v166_v61 = vpack.c.bf16 %v98_v56, %v94_v37  ;;  %v119_v37 = vld [vmem:[%s1756_s0 + $0x310] sm:$0xff] }
  0x37   :  { %471 = vmatpush1.bf16.msra.mxu0 %v1082_v46  ;;  %v43_v46 = vld [vmem:[%s1756_s0 + $0xb0] sm:$0xff] }
  0x38   :  { %472 = vmatprep.subr.bf16.mxu0 %v939_v0  ;;  %v139_v11 = vpack.c.bf16 %v43_v46, %v39_v3  ;;  %v88_v3 = vld [vmem:[%s1756_s0 + $0x218] sm:$0xff]  ;;  %v123_v56 = vld [vmem:[%s1756_s0 + $0x330] sm:$0xff] }
  0x39   :  { %937 = vmatpush1.bf16.msra.mxu1 %v1266_v55  ;;  %v92_v46 = vld [vmem:[%s1756_s0 + $0x238] sm:$0xff] }
  0x3a   :  { %v164_v9 = vpack.c.bf16 %v92_v46, %v88_v3 }
  0x3b   :  { %473 = vmatpush1.bf16.msra.mxu0 %v1110_v58  ;;  %v57_v58 = vld [vmem:[%s1756_s0 + $0x120] sm:$0xff] }
  0x3c   :  { %474 = vmatprep.subr.bf16.mxu0 %v939_v0  ;;  %503 = vmatmul.mubr.bf16.vlgmr.msra.gmra.mrb[0].mxu1 %v135_v62  ;;  %v145_v12 = vpack.c.bf16 %v57_v58, %v53_v5  ;;  %v79_v62 = vld [vmem:[%s1756_s0 + $0x1d0] sm:$0xff]  ;;  %v102_v5 = vld [vmem:[%s1756_s0 + $0x288] sm:$0xff] }
  0x3d   :  { %375 = vmatmul.mubr.bf16.gmra.mrb[12].mxu0 %v141_v63  ;;  %795 = vmatprep.mubr.msk.bf16.mxu1 %vm275_vm0, %v140_v1  ;;  %v83_v63 = vld [vmem:[%s1756_s0 + $0x1f0] sm:$0xff]  ;;  %v93_v1 = vld [vmem:[%s1756_s0 + $0x240] sm:$0xff]  ;;  %v106_v58 = vld [vmem:[%s1756_s0 + $0x2a8] sm:$0xff] }
  0x3e   :  { %382 = vmatprep.mubr.bf16.mxu0 %v146_v2  ;;  %v97_v2 = vld [vmem:[%s1756_s0 + $0x260] sm:$0xff]  ;;  %v159_v6 = vpack.c.bf16 %v83_v63, %v79_v62  ;;  %v170_v10 = vpack.c.bf16 %v106_v58, %v102_v5 }
  0x3f   :  { %475 = vmatpush1.bf16.msra.mxu0 %v1132_v4  ;;  %v51_v4 = vld [vmem:[%s1756_s0 + $0xf0] sm:$0xff]  ;;  %v165_v7 = vpack.c.bf16 %v97_v2, %v93_v1 }
  0x40   :  { %476 = vmatprep.subr.bf16.mxu0 %v939_v0  ;;  %v143_v23 = vpack.c.bf16 %v51_v4, %v47_v16  ;;  %v96_v16 = vld [vmem:[%s1756_s0 + $0x258] sm:$0xff]  ;;  %v127_v1 = vld [vmem:[%s1756_s0 + $0x350] sm:$0xff] }
  0x41   :  { %v100_v4 = vld [vmem:[%s1756_s0 + $0x278] sm:$0xff]  ;;  %v183_v2 = vpack.c.bf16 %v127_v1, %v127_v1 }
  0x42   :  { %v168_v21 = vpack.c.bf16 %v100_v4, %v96_v16 }
  0x43   :  { %477 = vmatpush1.bf16.msra.mxu0 %v1155_v15  ;;  %v65_v15 = vld [vmem:[%s1756_s0 + $0x160] sm:$0xff] }
  0x44   :  { %478 = vmatprep.subr.bf16.mxu0 %v939_v0  ;;  %511 = vmatmul.mubr.bf16.gmra.mrb[4].mxu1 %v139_v11  ;;  %v149_v24 = vpack.c.bf16 %v65_v15, %v61_v18  ;;  %v87_v11 = vld [vmem:[%s1756_s0 + $0x210] sm:$0xff]  ;;  %v110_v18 = vld [vmem:[%s1756_s0 + $0x2c8] sm:$0xff] }
  0x45   :  { %383 = vmatmul.mubr.bf16.gmra.mrb[16].mxu0 %v145_v12  ;;  %796 = vmatprep.mubr.msk.bf16.mxu1 %vm275_vm0, %v144_v13  ;;  %v91_v12 = vld [vmem:[%s1756_s0 + $0x230] sm:$0xff]  ;;  %v101_v13 = vld [vmem:[%s1756_s0 + $0x280] sm:$0xff]  ;;  %v114_v15 = vld [vmem:[%s1756_s0 + $0x2e8] sm:$0xff] }
  0x46   :  { %390 = vmatprep.mubr.bf16.mxu0 %v150_v14  ;;  %v105_v14 = vld [vmem:[%s1756_s0 + $0x2a0] sm:$0xff]  ;;  %v163_v19 = vpack.c.bf16 %v91_v12, %v87_v11  ;;  %v174_v22 = vpack.c.bf16 %v114_v15, %v110_v18 }
  0x47   :  { %479 = vmatpush1.bf16.msra.mxu0 %v1177_v25  ;;  %v59_v25 = vld [vmem:[%s1756_s0 + $0x130] sm:$0xff]  ;;  %v169_v20 = vpack.c.bf16 %v105_v14, %v101_v13 }
  0x48   :  { %480 = vmatprep.subr.bf16.mxu0 %v939_v0  ;;  %v147_v35 = vpack.c.bf16 %v59_v25, %v55_v29  ;;  %v104_v29 = vld [vmem:[%s1756_s0 + $0x298] sm:$0xff] }
  0x49   :  { %v108_v25 = vld [vmem:[%s1756_s0 + $0x2b8] sm:$0xff] }
  0x4a   :  { %v172_v34 = vpack.c.bf16 %v108_v25, %v104_v29  ;;  %v1584_v29 = vld [vmem:[%s1758_s3] ss:$0 sm:$0xff] }
  0x4b   :  { %481 = vmatpush1.bf16.msra.mxu0 %v1188_v30  ;;  %v73_v30 = vld [vmem:[%s1756_s0 + $0x1a0] sm:$0xff] }
  0x4c   :  { %482 = vmatprep.subr.bf16.mxu0 %v939_v0  ;;  %519 = vmatmul.mubr.bf16.gmra.mrb[8].mxu1 %v143_v23  ;;  %v153_v36 = vpack.c.bf16 %v73_v30, %v69_v31  ;;  %v95_v23 = vld [vmem:[%s1756_s0 + $0x250] sm:$0xff]  ;;  %v118_v31 = vld [vmem:[%s1756_s0 + $0x308] sm:$0xff] }
  0x4d   :  { %391 = vmatmul.mubr.bf16.gmra.mrb[20].mxu0 %v149_v24  ;;  %797 = vmatprep.mubr.msk.bf16.mxu1 %vm275_vm0, %v148_v26  ;;  %v99_v24 = vld [vmem:[%s1756_s0 + $0x270] sm:$0xff]  ;;  %v109_v26 = vld [vmem:[%s1756_s0 + $0x2c0] sm:$0xff]  ;;  %v122_v30 = vld [vmem:[%s1756_s0 + $0x328] sm:$0xff] }
  0x4e   :  { %398 = vmatprep.mubr.bf16.mxu0 %v154_v27  ;;  %v113_v27 = vld [vmem:[%s1756_s0 + $0x2e0] sm:$0xff]  ;;  %v167_v32 = vpack.c.bf16 %v99_v24, %v95_v23  ;;  %v178_v8 = vpack.c.bf16 %v122_v30, %v118_v31 }
  0x4f   :  { %483 = vmatpush1.bf16.msra.mxu0 %v1212_v38  ;;  %v67_v38 = vld [vmem:[%s1756_s0 + $0x170] sm:$0xff]  ;;  %v173_v33 = vpack.c.bf16 %v113_v27, %v109_v26 }
  0x50   :  { %484 = vmatprep.subr.bf16.mxu0 %v939_v0  ;;  %v151_v48 = vpack.c.bf16 %v67_v38, %v63_v41  ;;  %v112_v41 = vld [vmem:[%s1756_s0 + $0x2d8] sm:$0xff] }
  0x51   :  { %v116_v38 = vld [vmem:[%s1756_s0 + $0x2f8] sm:$0xff] }
  0x52   :  { %v176_v44 = vpack.c.bf16 %v116_v38, %v112_v41 }
  0x53   :  { %485 = vmatpush1.bf16.msra.mxu0 %v1224_v42  ;;  %v81_v42 = vld [vmem:[%s1756_s0 + $0x1e0] sm:$0xff] }
  0x54   :  { %486 = vmatprep.subr.bf16.mxu0 %v939_v0  ;;  %527 = vmatmul.mubr.bf16.gmra.mrb[12].mxu1 %v147_v35  ;;  %v157_v49 = vpack.c.bf16 %v81_v42, %v77_v17  ;;  %v103_v35 = vld [vmem:[%s1756_s0 + $0x290] sm:$0xff]  ;;  %v126_v17 = vld [vmem:[%s1756_s0 + $0x348] sm:$0xff] }
  0x55   :  { %399 = vmatmul.mubr.bf16.gmra.mrb[24].mxu0 %v153_v36  ;;  %798 = vmatprep.mubr.msk.bf16.mxu1 %vm275_vm0, %v152_v39  ;;  %v107_v36 = vld [vmem:[%s1756_s0 + $0x2b0] sm:$0xff]  ;;  %v117_v39 = vld [vmem:[%s1756_s0 + $0x300] sm:$0xff]  ;;  %v182_v45 = vpack.c.bf16 %v126_v17, %v126_v17 }
  0x56   :  { %406 = vmatprep.mubr.bf16.mxu0 %v158_v40  ;;  %v121_v40 = vld [vmem:[%s1756_s0 + $0x320] sm:$0xff]  ;;  %v171_v42 = vpack.c.bf16 %v107_v36, %v103_v35 }
  0x57   :  { %487 = vmatpush1.bf16.msra.mxu0 %v1248_v50  ;;  %v89_v50 = vld [vmem:[%s1756_s0 + $0x220] sm:$0xff]  ;;  %v177_v43 = vpack.c.bf16 %v121_v40, %v117_v39 }
  0x58   :  { %488 = vmatprep.subr.bf16.mxu0 %v939_v0  ;;  %v85_v0 = vld [vmem:[%s1756_s0 + $0x200] sm:$0xff] }
  0x59   :  { %v161_v59 = vpack.c.bf16 %v89_v50, %v85_v0  ;;  %v1590_v35 = vld [vmem:[%s1759_s4] ss:$0 sm:$0xff] }
  0x5b   :  { %489 = vmatpush1.bf16.msra.mxu0 %v1266_v55  ;;  %v84_v55 = vld [vmem:[%s1756_s0 + $0x1f8] sm:$0xff] }
  0x5c   :  { %535 = vmatmul.mubr.bf16.gmra.mrb[16].mxu1 %v151_v48  ;;  %v160_v60 = vpack.c.bf16 %v84_v55, %v80_v54  ;;  %v115_v48 = vld [vmem:[%s1756_s0 + $0x2f0] sm:$0xff]  ;;  %v132_v55 = vpack.c.bf16 %v28_v53, %v24_v52 }
  0x5d   :  { %407 = vmatmul.mubr.bf16.gmra.mrb[28].mxu0 %v157_v49  ;;  %799 = vmatprep.mubr.msk.bf16.mxu1 %vm275_vm0, %v156_v51  ;;  %v125_v49 = vld [vmem:[%s1756_s0 + $0x340] sm:$0xff]  ;;  %v120_v51 = vld [vmem:[%s1756_s0 + $0x318] sm:$0xff]  ;;  %v175_v0 = vpack.c.bf16 %v115_v48, %v111_v47 }
  0x5e   :  { %414 = vmatprep.mubr.bf16.mxu0 %v162_v28  ;;  %v124_v28 = vld [vmem:[%s1756_s0 + $0x338] sm:$0xff]  ;;  %v181_v50 = vpack.c.bf16 %v125_v49, %v125_v49 }
  0x5f   :  { %v180_v54 = vpack.c.bf16 %v124_v28, %v120_v51 }
  0x64   :  { %543 = vmatmul.mubr.bf16.gmra.mrb[20].mxu1 %v155_v57  ;;  %v23_v57 = vld [vmem:[%s1756_s0 + $0x10] sm:$0xff] }
  0x65   :  { %415 = vmatmul.mubr.bf16.gmra.mrb[32].mxu0 %v161_v59  ;;  %800 = vmatprep.mubr.msk.bf16.mxu1 %vm275_vm0, %v160_v60  ;;  %v27_v59 = vld [vmem:[%s1756_s0 + $0x30] sm:$0xff]  ;;  %v128_v60 = vld [vmem:[%s1756_s0 + $0x358] sm:$0xff] }
  0x66   :  { %422 = vmatprep.mubr.bf16.mxu0 %v166_v61  ;;  %v179_v61 = vpack.c.bf16 %v123_v56, %v119_v37  ;;  %v131_v62 = vpack.c.bf16 %v27_v59, %v23_v57  ;;  %v184_v63 = vpack.c.bf16 %v128_v60, %v128_v60 }
  0x6c   :  { %551 = vmatmul.mubr.bf16.gmra.mrb[24].mxu1 %v159_v6 }
  0x6d   :  { %423 = vmatmul.mubr.bf16.gmra.mrb[36].mxu0 %v165_v7  ;;  %801 = vmatprep.mubr.msk.bf16.mxu1 %vm275_vm0, %v164_v9 }
  0x6e   :  { %430 = vmatprep.mubr.bf16.mxu0 %v170_v10 }
  0x74   :  { %559 = vmatmul.mubr.bf16.gmra.mrb[28].mxu1 %v163_v19 }
  0x75   :  { %431 = vmatmul.mubr.bf16.gmra.mrb[40].mxu0 %v169_v20  ;;  %802 = vmatprep.mubr.msk.bf16.mxu1 %vm275_vm0, %v168_v21 }
  0x76   :  { %438 = vmatprep.mubr.bf16.mxu0 %v174_v22  ;;  %v1579_v22 = vld [vmem:[%s1757_s2] ss:$0 sm:$0xff] }
  0x7c   :  { %567 = vmatmul.mubr.bf16.gmra.mrb[32].mxu1 %v167_v32 }
  0x7d   :  { %439 = vmatmul.mubr.bf16.gmra.mrb[44].mxu0 %v173_v33  ;;  %803 = vmatprep.mubr.msk.bf16.mxu1 %vm275_vm0, %v172_v34 }
  0x7e   :  { %446 = vmatprep.mubr.bf16.mxu0 %v178_v8 }
  0x84   :  { %575 = vmatmul.mubr.bf16.gmra.mrb[36].mxu1 %v171_v42 }
  0x85   :  { %447 = vmatmul.mubr.bf16.gmra.mrb[48].mxu0 %v177_v43  ;;  %804 = vmatprep.mubr.msk.bf16.mxu1 %vm275_vm0, %v176_v44 }
  0x86   :  { %454 = vmatprep.mubr.bf16.mxu0 %v182_v45 }
  0x8c   :  { %583 = vmatmul.mubr.bf16.gmra.mrb[40].mxu1 %v175_v0 }
  0x8d   :  { %455 = vmatmul.mubr.bf16.gmra.mrb[52].mxu0 %v181_v50  ;;  %805 = vmatprep.mubr.msk.bf16.mxu1 %vm275_vm0, %v180_v54 }
  0x8e   :  { %793 = vmatprep.mubr.msk.bf16.mxu0 %vm275_vm0, %v132_v55 }
  0x94   :  { %591 = vmatmul.mubr.bf16.gmra.mrb[44].mxu1 %v179_v61 }
  0x95   :  { %495 = vmatmul.mubr.bf16.vlgmr.msra.gmra.mrb[56].mxu0 %v131_v62  ;;  %806 = vmatprep.mubr.msk.bf16.mxu1 %vm275_vm0, %v184_v63 }
  0x9c   :  { %599 = vmatmul.mubr.bf16.gmra.mrb[48].mxu1 %v183_v2 }
  0xf8   :  { %v826_v3 = vpop.f32.mrb[0].mxu0 }
  0xf9   :  { %v827_v46 = vpop.f32.mrb[1].mxu0 }
  0xfa   :  { %v1572_v5 = vadd.f32 %v827_v46, %v826_v3  ;;  %v829_v58 = vpop.f32.mrb[2].mxu0 }
  0xfb   :  { %v830_v6 = vpop.f32.mrb[3].mxu0 }
  0xfc   :  { %v1574_v7 = vadd.f32 %v830_v6, %v829_v58 }
 0x100   :  { %v832_v9 = vpop.f32.mrb[4].mxu0 }
 0x101   :  { %v833_v10 = vpop.f32.mrb[5].mxu0 }
 0x102   :  { %v834_v11 = vadd.f32 %v833_v10, %v832_v9  ;;  %v835_v12 = vpop.f32.mrb[6].mxu0 }
 0x103   :  { %v836_v13 = vpop.f32.mrb[7].mxu0 }
 0x104   :  { %v837_v14 = vadd.f32 %v836_v13, %v835_v12 }
 0x108   :  { %v838_v16 = vpop.f32.mrb[8].mxu0 }
 0x109   :  { %v839_v4 = vpop.f32.mrb[9].mxu0 }
 0x10a   :  { %v840_v18 = vadd.f32 %v839_v4, %v838_v16  ;;  %v841_v15 = vpop.f32.mrb[10].mxu0 }
 0x10b   :  { %v842_v19 = vpop.f32.mrb[11].mxu0 }
 0x10c   :  { %v843_v20 = vadd.f32 %v842_v19, %v841_v15 }
 0x10f   :  { %v504_v21 = vpop.f32.mrb[0].mxu1 }
 0x110   :  { %v844_v23 = vpop.f32.mrb[12].mxu0  ;;  %v505_v24 = vadd.f32 %v834_v11, %v504_v21  ;;  %v506_v26 = vpop.f32.mrb[1].mxu1 }
 0x111   :  { %v845_v27 = vpop.f32.mrb[13].mxu0  ;;  %v507_v25 = vpop.f32.mrb[2].mxu1 }
 0x112   :  { %v846_v31 = vadd.f32 %v845_v27, %v844_v23  ;;  %v847_v30 = vpop.f32.mrb[14].mxu0  ;;  %v615_v32 = vmul.f32 %v1579_v22, %v505_v24  ;;  %v508_v33 = vadd.f32 %v837_v14, %v507_v25  ;;  %v509_v34 = vpop.f32.mrb[3].mxu1 }
 0x113   :  { %v848_v8 = vpop.f32.mrb[15].mxu0 }
 0x114   :  { %v849_v36 = vadd.f32 %v848_v8, %v847_v30  ;;  %v649_v39 = vadd.f32 %v1584_v29, %v615_v32  ;;  %v616_v40 = vmul.f32 %v1579_v22, %v508_v33 }
 0x116   :  { %vm676_vm1 = vcmp.ge.f32.partialorder %v649_v39, 0.0  ;;  %v710_v41 = vmul.f32 %v1590_v35, %v649_v39  ;;  %v650_v38 = vadd.f32 %v1584_v29, %v616_v40 }
 0x117   :  { %v512_v17 = vpop.f32.mrb[4].mxu1 }
 0x118   :  { %v850_v42 = vpop.f32.mrb[16].mxu0  ;;  %v737_v43 = vsel %vm676_vm1, %v649_v39, %v710_v41  ;;  %vm677_vm2 = vcmp.ge.f32.partialorder %v650_v38, 0.0  ;;  %v711_v44 = vmul.f32 %v1590_v35, %v650_v38  ;;  %v513_v45 = vadd.f32 %v840_v18, %v512_v17  ;;  %v514_v47 = vpop.f32.mrb[5].mxu1 }
 0x119   :  { %v851_v48 = vpop.f32.mrb[17].mxu0  ;;  %764 = vst [vmem:[%s1760_s5 + $0x10] sm:$0xff] %v737_v43  ;;  %v515_v49 = vpop.f32.mrb[6].mxu1 }
 0x11a   :  { %v852_v51 = vadd.f32 %v851_v48, %v850_v42  ;;  %v853_v28 = vpop.f32.mrb[18].mxu0  ;;  %v738_v52 = vsel %vm677_vm2, %v650_v38, %v711_v44  ;;  %v617_v53 = vmul.f32 %v1579_v22, %v513_v45  ;;  %v516_v0 = vadd.f32 %v843_v20, %v515_v49  ;;  %v517_v50 = vpop.f32.mrb[7].mxu1 }
 0x11b   :  { %v854_v54 = vpop.f32.mrb[19].mxu0  ;;  %765 = vst [vmem:[%s1760_s5 + $0x18] sm:$0xff] %v738_v52 }
 0x11c   :  { %v855_v55 = vadd.f32 %v854_v54, %v853_v28  ;;  %v651_v37 = vadd.f32 %v1584_v29, %v617_v53  ;;  %v618_v56 = vmul.f32 %v1579_v22, %v516_v0 }
 0x11e   :  { %vm678_vm3 = vcmp.ge.f32.partialorder %v651_v37, 0.0  ;;  %v712_v57 = vmul.f32 %v1590_v35, %v651_v37  ;;  %v652_v59 = vadd.f32 %v1584_v29, %v618_v56 }
 0x11f   :  { %v520_v60 = vpop.f32.mrb[8].mxu1 }
 0x120   :  { %v856_v61 = vpop.f32.mrb[20].mxu0  ;;  %v739_v62 = vsel %vm678_vm3, %v651_v37, %v712_v57  ;;  %vm679_vm4 = vcmp.ge.f32.partialorder %v652_v59, 0.0  ;;  %v713_v63 = vmul.f32 %v1590_v35, %v652_v59  ;;  %v521_v1 = vadd.f32 %v846_v31, %v520_v60  ;;  %v522_v2 = vpop.f32.mrb[9].mxu1 }
 0x121   :  { %v857_v3 = vpop.f32.mrb[21].mxu0  ;;  %766 = vst [vmem:[%s1760_s5 + $0x20] sm:$0xff] %v739_v62  ;;  %v523_v46 = vpop.f32.mrb[10].mxu1 }
 0x122   :  { %v858_v58 = vadd.f32 %v857_v3, %v856_v61  ;;  %v859_v6 = vpop.f32.mrb[22].mxu0  ;;  %v740_v9 = vsel %vm679_vm4, %v652_v59, %v713_v63  ;;  %v619_v10 = vmul.f32 %v1579_v22, %v521_v1  ;;  %v524_v11 = vadd.f32 %v849_v36, %v523_v46  ;;  %v525_v12 = vpop.f32.mrb[11].mxu1 }
 0x123   :  { %v860_v13 = vpop.f32.mrb[23].mxu0  ;;  %767 = vst [vmem:[%s1760_s5 + $0x28] sm:$0xff] %v740_v9 }
 0x124   :  { %v861_v14 = vadd.f32 %v860_v13, %v859_v6  ;;  %v653_v16 = vadd.f32 %v1584_v29, %v619_v10  ;;  %v620_v4 = vmul.f32 %v1579_v22, %v524_v11 }
 0x126   :  { %vm680_vm5 = vcmp.ge.f32.partialorder %v653_v16, 0.0  ;;  %v714_v18 = vmul.f32 %v1590_v35, %v653_v16  ;;  %v654_v15 = vadd.f32 %v1584_v29, %v620_v4 }
 0x127   :  { %v528_v19 = vpop.f32.mrb[12].mxu1 }
 0x128   :  { %v862_v20 = vpop.f32.mrb[24].mxu0  ;;  %v741_v21 = vsel %vm680_vm5, %v653_v16, %v714_v18  ;;  %vm681_vm6 = vcmp.ge.f32.partialorder %v654_v15, 0.0  ;;  %v715_v23 = vmul.f32 %v1590_v35, %v654_v15  ;;  %v529_v24 = vadd.f32 %v852_v51, %v528_v19  ;;  %v530_v26 = vpop.f32.mrb[13].mxu1 }
 0x129   :  { %v863_v27 = vpop.f32.mrb[25].mxu0  ;;  %768 = vst [vmem:[%s1760_s5 + $0x30] sm:$0xff] %v741_v21  ;;  %v531_v25 = vpop.f32.mrb[14].mxu1 }
 0x12a   :  { %v864_v31 = vadd.f32 %v863_v27, %v862_v20  ;;  %v865_v30 = vpop.f32.mrb[26].mxu0  ;;  %v742_v32 = vsel %vm681_vm6, %v654_v15, %v715_v23  ;;  %v621_v33 = vmul.f32 %v1579_v22, %v529_v24  ;;  %v532_v34 = vadd.f32 %v855_v55, %v531_v25  ;;  %v533_v8 = vpop.f32.mrb[15].mxu1 }
 0x12b   :  { %v866_v36 = vpop.f32.mrb[27].mxu0  ;;  %769 = vst [vmem:[%s1760_s5 + $0x38] sm:$0xff] %v742_v32 }
 0x12c   :  { %v867_v39 = vadd.f32 %v866_v36, %v865_v30  ;;  %v655_v40 = vadd.f32 %v1584_v29, %v621_v33  ;;  %v622_v41 = vmul.f32 %v1579_v22, %v532_v34 }
 0x12e   :  { %vm682_vm7 = vcmp.ge.f32.partialorder %v655_v40, 0.0  ;;  %v716_v38 = vmul.f32 %v1590_v35, %v655_v40  ;;  %v656_v17 = vadd.f32 %v1584_v29, %v622_v41 }
 0x12f   :  { %v536_v42 = vpop.f32.mrb[16].mxu1 }
 0x130   :  { %v868_v43 = vpop.f32.mrb[28].mxu0  ;;  %v743_v44 = vsel %vm682_vm7, %v655_v40, %v716_v38  ;;  %vm683_vm8 = vcmp.ge.f32.partialorder %v656_v17, 0.0  ;;  %v717_v45 = vmul.f32 %v1590_v35, %v656_v17  ;;  %v537_v47 = vadd.f32 %v858_v58, %v536_v42  ;;  %v538_v48 = vpop.f32.mrb[17].mxu1 }
 0x131   :  { %v869_v49 = vpop.f32.mrb[29].mxu0  ;;  %770 = vst [vmem:[%s1760_s5 + $0x40] sm:$0xff] %v743_v44  ;;  %v539_v51 = vpop.f32.mrb[18].mxu1 }
 0x132   :  { %v870_v28 = vadd.f32 %v869_v49, %v868_v43  ;;  %v871_v52 = vpop.f32.mrb[30].mxu0  ;;  %v744_v53 = vsel %vm683_vm8, %v656_v17, %v717_v45  ;;  %v623_v0 = vmul.f32 %v1579_v22, %v537_v47  ;;  %v540_v50 = vadd.f32 %v861_v14, %v539_v51  ;;  %v541_v54 = vpop.f32.mrb[19].mxu1 }
 0x133   :  { %v872_v55 = vpop.f32.mrb[31].mxu0  ;;  %771 = vst [vmem:[%s1760_s5 + $0x48] sm:$0xff] %v744_v53 }
 0x134   :  { %v873_v37 = vadd.f32 %v872_v55, %v871_v52  ;;  %v657_v56 = vadd.f32 %v1584_v29, %v623_v0  ;;  %v624_v57 = vmul.f32 %v1579_v22, %v540_v50 }
 0x136   :  { %vm684_vm9 = vcmp.ge.f32.partialorder %v657_v56, 0.0  ;;  %v718_v59 = vmul.f32 %v1590_v35, %v657_v56  ;;  %v658_v60 = vadd.f32 %v1584_v29, %v624_v57 }
 0x137   :  { %v544_v61 = vpop.f32.mrb[20].mxu1 }
 0x138   :  { %v874_v62 = vpop.f32.mrb[32].mxu0  ;;  %v745_v63 = vsel %vm684_vm9, %v657_v56, %v718_v59  ;;  %vm685_vm10 = vcmp.ge.f32.partialorder %v658_v60, 0.0  ;;  %v719_v1 = vmul.f32 %v1590_v35, %v658_v60  ;;  %v545_v2 = vadd.f32 %v864_v31, %v544_v61  ;;  %v546_v3 = vpop.f32.mrb[21].mxu1 }
 0x139   :  { %v875_v46 = vpop.f32.mrb[33].mxu0  ;;  %772 = vst [vmem:[%s1760_s5 + $0x50] sm:$0xff] %v745_v63  ;;  %v547_v58 = vpop.f32.mrb[22].mxu1 }
 0x13a   :  { %v876_v6 = vadd.f32 %v875_v46, %v874_v62  ;;  %v877_v9 = vpop.f32.mrb[34].mxu0  ;;  %v746_v10 = vsel %vm685_vm10, %v658_v60, %v719_v1  ;;  %v625_v11 = vmul.f32 %v1579_v22, %v545_v2  ;;  %v548_v12 = vadd.f32 %v867_v39, %v547_v58  ;;  %v549_v13 = vpop.f32.mrb[23].mxu1 }
 0x13b   :  { %v878_v14 = vpop.f32.mrb[35].mxu0  ;;  %773 = vst [vmem:[%s1760_s5 + $0x58] sm:$0xff] %v746_v10 }
 0x13c   :  { %v879_v16 = vadd.f32 %v878_v14, %v877_v9  ;;  %v659_v4 = vadd.f32 %v1584_v29, %v625_v11  ;;  %v626_v18 = vmul.f32 %v1579_v22, %v548_v12 }
 0x13e   :  { %vm686_vm11 = vcmp.ge.f32.partialorder %v659_v4, 0.0  ;;  %v720_v15 = vmul.f32 %v1590_v35, %v659_v4  ;;  %v660_v19 = vadd.f32 %v1584_v29, %v626_v18 }
 0x13f   :  { %v552_v20 = vpop.f32.mrb[24].mxu1 }
 0x140   :  { %v880_v21 = vpop.f32.mrb[36].mxu0  ;;  %v747_v23 = vsel %vm686_vm11, %v659_v4, %v720_v15  ;;  %vm687_vm12 = vcmp.ge.f32.partialorder %v660_v19, 0.0  ;;  %v721_v24 = vmul.f32 %v1590_v35, %v660_v19  ;;  %v553_v26 = vadd.f32 %v870_v28, %v552_v20  ;;  %v554_v27 = vpop.f32.mrb[25].mxu1 }
 0x141   :  { %v881_v25 = vpop.f32.mrb[37].mxu0  ;;  %774 = vst [vmem:[%s1760_s5 + $0x60] sm:$0xff] %v747_v23  ;;  %v555_v31 = vpop.f32.mrb[26].mxu1 }
 0x142   :  { %v882_v30 = vadd.f32 %v881_v25, %v880_v21  ;;  %v883_v32 = vpop.f32.mrb[38].mxu0  ;;  %v748_v33 = vsel %vm687_vm12, %v660_v19, %v721_v24  ;;  %v627_v34 = vmul.f32 %v1579_v22, %v553_v26  ;;  %v556_v8 = vadd.f32 %v873_v37, %v555_v31  ;;  %v557_v36 = vpop.f32.mrb[27].mxu1 }
 0x143   :  { %v884_v39 = vpop.f32.mrb[39].mxu0  ;;  %775 = vst [vmem:[%s1760_s5 + $0x68] sm:$0xff] %v748_v33 }
 0x144   :  { %v885_v40 = vadd.f32 %v884_v39, %v883_v32  ;;  %v661_v41 = vadd.f32 %v1584_v29, %v627_v34  ;;  %v628_v38 = vmul.f32 %v1579_v22, %v556_v8 }
 0x146   :  { %vm688_vm13 = vcmp.ge.f32.partialorder %v661_v41, 0.0  ;;  %v722_v17 = vmul.f32 %v1590_v35, %v661_v41  ;;  %v662_v42 = vadd.f32 %v1584_v29, %v628_v38 }
 0x147   :  { %v560_v43 = vpop.f32.mrb[28].mxu1 }
 0x148   :  { %v886_v44 = vpop.f32.mrb[40].mxu0  ;;  %v749_v45 = vsel %vm688_vm13, %v661_v41, %v722_v17  ;;  %vm689_vm14 = vcmp.ge.f32.partialorder %v662_v42, 0.0  ;;  %v723_v47 = vmul.f32 %v1590_v35, %v662_v42  ;;  %v561_v48 = vadd.f32 %v876_v6, %v560_v43  ;;  %v562_v49 = vpop.f32.mrb[29].mxu1 }
 0x149   :  { %v887_v51 = vpop.f32.mrb[41].mxu0  ;;  %776 = vst [vmem:[%s1760_s5 + $0x70] sm:$0xff] %v749_v45  ;;  %v563_v28 = vpop.f32.mrb[30].mxu1 }
 0x14a   :  { %v888_v52 = vadd.f32 %v887_v51, %v886_v44  ;;  %v889_v53 = vpop.f32.mrb[42].mxu0  ;;  %v750_v0 = vsel %vm689_vm14, %v662_v42, %v723_v47  ;;  %v629_v50 = vmul.f32 %v1579_v22, %v561_v48  ;;  %v564_v54 = vadd.f32 %v879_v16, %v563_v28  ;;  %v565_v55 = vpop.f32.mrb[31].mxu1 }
 0x14b   :  { %v890_v37 = vpop.f32.mrb[43].mxu0  ;;  %777 = vst [vmem:[%s1760_s5 + $0x78] sm:$0xff] %v750_v0 }
 0x14c   :  { %v891_v56 = vadd.f32 %v890_v37, %v889_v53  ;;  %v663_v57 = vadd.f32 %v1584_v29, %v629_v50  ;;  %v630_v59 = vmul.f32 %v1579_v22, %v564_v54 }
 0x14e   :  { %vm690_vm15 = vcmp.ge.f32.partialorder %v663_v57, 0.0  ;;  %v724_v60 = vmul.f32 %v1590_v35, %v663_v57  ;;  %v664_v61 = vadd.f32 %v1584_v29, %v630_v59 }
 0x14f   :  { %v568_v62 = vpop.f32.mrb[32].mxu1 }
 0x150   :  { %v892_v63 = vpop.f32.mrb[44].mxu0  ;;  %v751_v1 = vsel %vm690_vm15, %v663_v57, %v724_v60  ;;  %vm691_vm0 = vcmp.ge.f32.partialorder %v664_v61, 0.0  ;;  %v725_v2 = vmul.f32 %v1590_v35, %v664_v61  ;;  %v569_v3 = vadd.f32 %v882_v30, %v568_v62  ;;  %v570_v46 = vpop.f32.mrb[33].mxu1 }
 0x151   :  { %v893_v58 = vpop.f32.mrb[45].mxu0  ;;  %778 = vst [vmem:[%s1760_s5 + $0x80] sm:$0xff] %v751_v1  ;;  %v571_v6 = vpop.f32.mrb[34].mxu1 }
 0x152   :  { %v894_v9 = vadd.f32 %v893_v58, %v892_v63  ;;  %v895_v10 = vpop.f32.mrb[46].mxu0  ;;  %v752_v11 = vsel %vm691_vm0, %v664_v61, %v725_v2  ;;  %v631_v12 = vmul.f32 %v1579_v22, %v569_v3  ;;  %v572_v13 = vadd.f32 %v885_v40, %v571_v6  ;;  %v573_v14 = vpop.f32.mrb[35].mxu1 }
 0x153   :  { %v896_v16 = vpop.f32.mrb[47].mxu0  ;;  %779 = vst [vmem:[%s1760_s5 + $0x88] sm:$0xff] %v752_v11 }
 0x154   :  { %v897_v4 = vadd.f32 %v896_v16, %v895_v10  ;;  %v665_v18 = vadd.f32 %v1584_v29, %v631_v12  ;;  %v632_v15 = vmul.f32 %v1579_v22, %v572_v13 }
 0x156   :  { %vm692_vm1 = vcmp.ge.f32.partialorder %v665_v18, 0.0  ;;  %v726_v19 = vmul.f32 %v1590_v35, %v665_v18  ;;  %v666_v20 = vadd.f32 %v1584_v29, %v632_v15 }
 0x157   :  { %v576_v21 = vpop.f32.mrb[36].mxu1 }
 0x158   :  { %v898_v23 = vpop.f32.mrb[48].mxu0  ;;  %v753_v24 = vsel %vm692_vm1, %v665_v18, %v726_v19  ;;  %vm693_vm2 = vcmp.ge.f32.partialorder %v666_v20, 0.0  ;;  %v727_v26 = vmul.f32 %v1590_v35, %v666_v20  ;;  %v577_v27 = vadd.f32 %v888_v52, %v576_v21  ;;  %v578_v25 = vpop.f32.mrb[37].mxu1 }
 0x159   :  { %v899_v31 = vpop.f32.mrb[49].mxu0  ;;  %780 = vst [vmem:[%s1760_s5 + $0x90] sm:$0xff] %v753_v24  ;;  %v579_v30 = vpop.f32.mrb[38].mxu1 }
 0x15a   :  { %v900_v32 = vadd.f32 %v899_v31, %v898_v23  ;;  %v901_v33 = vpop.f32.mrb[50].mxu0  ;;  %v754_v34 = vsel %vm693_vm2, %v666_v20, %v727_v26  ;;  %v633_v8 = vmul.f32 %v1579_v22, %v577_v27  ;;  %v580_v36 = vadd.f32 %v891_v56, %v579_v30  ;;  %v581_v39 = vpop.f32.mrb[39].mxu1 }
 0x15b   :  { %v902_v40 = vpop.f32.mrb[51].mxu0  ;;  %781 = vst [vmem:[%s1760_s5 + $0x98] sm:$0xff] %v754_v34 }
 0x15c   :  { %v903_v41 = vadd.f32 %v902_v40, %v901_v33  ;;  %v667_v38 = vadd.f32 %v1584_v29, %v633_v8  ;;  %v634_v17 = vmul.f32 %v1579_v22, %v580_v36 }
 0x15e   :  { %vm694_vm3 = vcmp.ge.f32.partialorder %v667_v38, 0.0  ;;  %v728_v42 = vmul.f32 %v1590_v35, %v667_v38  ;;  %v668_v43 = vadd.f32 %v1584_v29, %v634_v17 }
 0x15f   :  { %v584_v44 = vpop.f32.mrb[40].mxu1 }
 0x160   :  { %v904_v45 = vpop.f32.mrb[52].mxu0  ;;  %v755_v47 = vsel %vm694_vm3, %v667_v38, %v728_v42  ;;  %vm695_vm4 = vcmp.ge.f32.partialorder %v668_v43, 0.0  ;;  %v729_v48 = vmul.f32 %v1590_v35, %v668_v43  ;;  %v585_v49 = vadd.f32 %v894_v9, %v584_v44  ;;  %v586_v51 = vpop.f32.mrb[41].mxu1 }
 0x161   :  { %v905_v28 = vpop.f32.mrb[53].mxu0  ;;  %782 = vst [vmem:[%s1760_s5 + $0xa0] sm:$0xff] %v755_v47  ;;  %v587_v52 = vpop.f32.mrb[42].mxu1 }
 0x162   :  { %v906_v53 = vadd.f32 %v905_v28, %v904_v45  ;;  %v907_v0 = vpop.f32.mrb[54].mxu0  ;;  %v756_v50 = vsel %vm695_vm4, %v668_v43, %v729_v48  ;;  %v635_v54 = vmul.f32 %v1579_v22, %v585_v49  ;;  %v588_v55 = vadd.f32 %v897_v4, %v587_v52  ;;  %v589_v37 = vpop.f32.mrb[43].mxu1 }
 0x163   :  { %v908_v56 = vpop.f32.mrb[55].mxu0  ;;  %783 = vst [vmem:[%s1760_s5 + $0xa8] sm:$0xff] %v756_v50 }
 0x164   :  { %v669_v57 = vadd.f32 %v1584_v29, %v635_v54  ;;  %v636_v59 = vmul.f32 %v1579_v22, %v588_v55 }
 0x166   :  { %vm696_vm5 = vcmp.ge.f32.partialorder %v669_v57, 0.0  ;;  %v730_v60 = vmul.f32 %v1590_v35, %v669_v57  ;;  %v670_v61 = vadd.f32 %v1584_v29, %v636_v59 }
 0x167   :  { %v592_v62 = vpop.f32.mrb[44].mxu1 }
 0x168   :  { %v496_v63 = vpop.f32.mrb[56].mxu0  ;;  %v757_v1 = vsel %vm696_vm5, %v669_v57, %v730_v60  ;;  %vm697_vm6 = vcmp.ge.f32.partialorder %v670_v61, 0.0  ;;  %v731_v2 = vmul.f32 %v1590_v35, %v670_v61  ;;  %v593_v3 = vadd.f32 %v900_v32, %v592_v62  ;;  %v594_v46 = vpop.f32.mrb[45].mxu1 }
 0x169   :  { %v498_v58 = vpop.f32.mrb[57].mxu0  ;;  %784 = vst [vmem:[%s1760_s5 + $0xb0] sm:$0xff] %v757_v1  ;;  %v497_v6 = vadd.f32 %v1572_v5, %v496_v63  ;;  %v595_v9 = vpop.f32.mrb[46].mxu1 }
 0x16a   :  { %v499_v10 = vpop.f32.mrb[58].mxu0  ;;  %v758_v11 = vsel %vm697_vm6, %v670_v61, %v731_v2  ;;  %v637_v12 = vmul.f32 %v1579_v22, %v593_v3  ;;  %v596_v13 = vadd.f32 %v903_v41, %v595_v9  ;;  %v597_v16 = vpop.f32.mrb[47].mxu1 }
 0x16b   :  { %v500_v14 = vadd.f32 %v1574_v7, %v499_v10  ;;  %v501_v4 = vpop.f32.mrb[59].mxu0  ;;  %785 = vst [vmem:[%s1760_s5 + $0xb8] sm:$0xff] %v758_v11  ;;  %v613_v18 = vmul.f32 %v1579_v22, %v497_v6 }
 0x16c   :  { %v671_v15 = vadd.f32 %v1584_v29, %v637_v12  ;;  %v638_v5 = vmul.f32 %v1579_v22, %v596_v13 }
 0x16d   :  { %v614_v19 = vmul.f32 %v1579_v22, %v500_v14  ;;  %v647_v20 = vadd.f32 %v1584_v29, %v613_v18 }
 0x16e   :  { %vm698_vm7 = vcmp.ge.f32.partialorder %v671_v15, 0.0  ;;  %v732_v21 = vmul.f32 %v1590_v35, %v671_v15  ;;  %v672_v7 = vadd.f32 %v1584_v29, %v638_v5 }
 0x16f   :  { %v648_v23 = vadd.f32 %v1584_v29, %v614_v19  ;;  %vm674_vm8 = vcmp.ge.f32.partialorder %v647_v20, 0.0  ;;  %v708_v24 = vmul.f32 %v1590_v35, %v647_v20  ;;  %v600_v26 = vpop.f32.mrb[48].mxu1 }
 0x170   :  { %v759_v27 = vsel %vm698_vm7, %v671_v15, %v732_v21  ;;  %vm699_vm9 = vcmp.ge.f32.partialorder %v672_v7, 0.0  ;;  %v733_v25 = vmul.f32 %v1590_v35, %v672_v7  ;;  %v602_v31 = vpop.f32.mrb[49].mxu1  ;;  %v601_v33 = vadd.f32 %v906_v53, %v600_v26 }
 0x171   :  { %vm675_vm10 = vcmp.ge.f32.partialorder %v648_v23, 0.0  ;;  %786 = vst [vmem:[%s1760_s5 + $0xc0] sm:$0xff] %v759_v27  ;;  %v735_v30 = vsel %vm674_vm8, %v647_v20, %v708_v24  ;;  %v709_v32 = vmul.f32 %v1590_v35, %v648_v23  ;;  %v603_v34 = vpop.f32.mrb[50].mxu1 }
 0x172   :  { %762 = vst [vmem:[%s1760_s5] sm:$0xff] %v735_v30  ;;  %v760_v8 = vsel %vm699_vm9, %v672_v7, %v733_v25  ;;  %v604_v36 = vpop.f32.mrb[51].mxu1  ;;  %v639_v40 = vmul.f32 %v1579_v22, %v601_v33 }
 0x173   :  { %787 = vst [vmem:[%s1760_s5 + $0xc8] sm:$0xff] %v760_v8  ;;  %v736_v39 = vsel %vm675_vm10, %v648_v23, %v709_v32 }
 0x174   :  { %763 = vst [vmem:[%s1760_s5 + $0x8] sm:$0xff] %v736_v39  ;;  %v673_v41 = vadd.f32 %v1584_v29, %v639_v40 }
 0x176   :  { %vm700_vm11 = vcmp.ge.f32.partialorder %v673_v41, 0.0  ;;  %v734_v38 = vmul.f32 %v1590_v35, %v673_v41 }
 0x178   :  { %v761_v17 = vsel %vm700_vm11, %v673_v41, %v734_v38 }
 0x179   :  { %788 = vst [vmem:[%s1760_s5 + $0xd0] sm:$0xff] %v761_v17 }

// kernel: emg_branch_forward.11
= control target key start
LH: loop header
LB: loop body
LE: loop exit
PB: predicated region body
PF: predicated region fallthrough
CT: control target
= control target key end

     0   :  { %s519_s1 = inlined_call_operand.vmem [shape: f32[512,128], index: 1, kind: input, shape index: {}]   ;;  %s520_s4 = inlined_call_operand.vmem [shape: f32[1,128], index: 4, kind: input, shape index: {}]   ;;  %s521_s0 = inlined_call_operand.vmem [shape: f32[8,512], index: 0, kind: input, shape index: {}]   ;;  %s522_s2 = inlined_call_operand.vmem [shape: f32[1,128], index: 2, kind: input, shape index: {}]   ;;  %s523_s3 = inlined_call_operand.vmem [shape: f32[1,128], index: 3, kind: input, shape index: {}]   ;;  %s524_s5 = inlined_call_operand.vmem [shape: f32[8,128], index: 5, kind: output, shape index: {}]  }
   0x1   :  { %v49_v0 = vld [vmem:[%s519_s1 + $0x80] sm:$0xff]  ;;  %v50_v1 = vld [vmem:[%s519_s1 + $0x88] sm:$0xff]  ;;  %v51_v11 = vld [vmem:[%s519_s1 + $0x90] sm:$0xff] }
   0x2   :  { %v81_v2 = vld [vmem:[%s519_s1 + $0x180] sm:$0xff]  ;;  %v105_v3 = vpack.c.bf16 %v50_v1, %v49_v0  ;;  %v82_v4 = vld [vmem:[%s519_s1 + $0x188] sm:$0xff]  ;;  %v52_v13 = vld [vmem:[%s519_s1 + $0x98] sm:$0xff] }
   0x3   :  { %v33_v5 = vld [vmem:[%s519_s1] sm:$0xff]  ;;  %v34_v6 = vld [vmem:[%s519_s1 + $0x8] sm:$0xff]  ;;  %v121_v7 = vpack.c.bf16 %v82_v4, %v81_v2  ;;  %v83_v14 = vld [vmem:[%s519_s1 + $0x190] sm:$0xff]  ;;  %v106_v16 = vpack.c.bf16 %v52_v13, %v51_v11 }
   0x4   :  { %v97_v8 = vpack.c.bf16 %v34_v6, %v33_v5  ;;  %v65_v9 = vld [vmem:[%s519_s1 + $0x100] sm:$0xff]  ;;  %v66_v10 = vld [vmem:[%s519_s1 + $0x108] sm:$0xff]  ;;  %232 = vmatprep.subr.bf16.mxu0 %v105_v3  ;;  %v84_v15 = vld [vmem:[%s519_s1 + $0x198] sm:$0xff] }
   0x5   :  { %v113_v12 = vpack.c.bf16 %v66_v10, %v65_v9  ;;  %254 = vmatprep.subr.bf16.mxu1 %v121_v7  ;;  %v122_v17 = vpack.c.bf16 %v84_v15, %v83_v14  ;;  %v35_v18 = vld [vmem:[%s519_s1 + $0x10] sm:$0xff]  ;;  %v36_v19 = vld [vmem:[%s519_s1 + $0x18] sm:$0xff]  ;;  %v53_v23 = vld [vmem:[%s519_s1 + $0xa0] sm:$0xff] }
   0x6   :  { %233 = vmatpush3.bf16.msra.mxu0 %v97_v8  ;;  %v67_v20 = vld [vmem:[%s519_s1 + $0x110] sm:$0xff]  ;;  %v98_v21 = vpack.c.bf16 %v36_v19, %v35_v18  ;;  %v68_v22 = vld [vmem:[%s519_s1 + $0x118] sm:$0xff]  ;;  %v54_v24 = vld [vmem:[%s519_s1 + $0xa8] sm:$0xff] }
   0x7   :  { %255 = vmatpush3.bf16.msra.mxu1 %v113_v12  ;;  %234 = vmatprep.subr.bf16.mxu0 %v106_v16  ;;  %v114_v25 = vpack.c.bf16 %v68_v22, %v67_v20  ;;  %v107_v26 = vpack.c.bf16 %v54_v24, %v53_v23  ;;  %v85_v27 = vld [vmem:[%s519_s1 + $0x1a0] sm:$0xff]  ;;  %v86_v28 = vld [vmem:[%s519_s1 + $0x1a8] sm:$0xff]  ;;  %v55_v35 = vld [vmem:[%s519_s1 + $0xb0] sm:$0xff] }
   0x8   :  { %256 = vmatprep.subr.bf16.mxu1 %v122_v17  ;;  %v37_v29 = vld [vmem:[%s519_s1 + $0x20] sm:$0xff]  ;;  %v123_v30 = vpack.c.bf16 %v86_v28, %v85_v27  ;;  %v38_v31 = vld [vmem:[%s519_s1 + $0x28] sm:$0xff]  ;;  %v56_v36 = vld [vmem:[%s519_s1 + $0xb8] sm:$0xff] }
   0x9   :  { %v69_v32 = vld [vmem:[%s519_s1 + $0x120] sm:$0xff]  ;;  %v70_v33 = vld [vmem:[%s519_s1 + $0x128] sm:$0xff]  ;;  %v99_v34 = vpack.c.bf16 %v38_v31, %v37_v29  ;;  %v87_v37 = vld [vmem:[%s519_s1 + $0x1b0] sm:$0xff]  ;;  %v108_v39 = vpack.c.bf16 %v56_v36, %v55_v35 }
   0xa   :  { %235 = vmatpush3.bf16.msra.mxu0 %v98_v21  ;;  %v115_v38 = vpack.c.bf16 %v70_v33, %v69_v32  ;;  %v88_v40 = vld [vmem:[%s519_s1 + $0x1b8] sm:$0xff]  ;;  %v39_v41 = vld [vmem:[%s519_s1 + $0x30] sm:$0xff]  ;;  %v57_v46 = vld [vmem:[%s519_s1 + $0xc0] sm:$0xff] }
   0xb   :  { %257 = vmatpush3.bf16.msra.mxu1 %v114_v25  ;;  %236 = vmatprep.subr.bf16.mxu0 %v107_v26  ;;  %v40_v42 = vld [vmem:[%s519_s1 + $0x38] sm:$0xff]  ;;  %v124_v43 = vpack.c.bf16 %v88_v40, %v87_v37  ;;  %v71_v44 = vld [vmem:[%s519_s1 + $0x130] sm:$0xff]  ;;  %v58_v47 = vld [vmem:[%s519_s1 + $0xc8] sm:$0xff] }
   0xc   :  { %258 = vmatprep.subr.bf16.mxu1 %v123_v30  ;;  %v72_v45 = vld [vmem:[%s519_s1 + $0x138] sm:$0xff]  ;;  %v89_v48 = vld [vmem:[%s519_s1 + $0x1c0] sm:$0xff]  ;;  %v90_v49 = vld [vmem:[%s519_s1 + $0x1c8] sm:$0xff]  ;;  %v100_v50 = vpack.c.bf16 %v40_v42, %v39_v41  ;;  %v109_v52 = vpack.c.bf16 %v58_v47, %v57_v46 }
   0xd   :  { %v116_v51 = vpack.c.bf16 %v72_v45, %v71_v44  ;;  %v41_v53 = vld [vmem:[%s519_s1 + $0x40] sm:$0xff]  ;;  %v42_v54 = vld [vmem:[%s519_s1 + $0x48] sm:$0xff]  ;;  %v125_v56 = vpack.c.bf16 %v90_v49, %v89_v48  ;;  %v59_v58 = vld [vmem:[%s519_s1 + $0xd0] sm:$0xff] }
   0xe   :  { %237 = vmatpush3.bf16.msra.mxu0 %v99_v34  ;;  %v73_v55 = vld [vmem:[%s519_s1 + $0x140] sm:$0xff]  ;;  %v74_v57 = vld [vmem:[%s519_s1 + $0x148] sm:$0xff]  ;;  %v60_v59 = vld [vmem:[%s519_s1 + $0xd8] sm:$0xff]  ;;  %v101_v62 = vpack.c.bf16 %v42_v54, %v41_v53 }
   0xf   :  { %259 = vmatpush3.bf16.msra.mxu1 %v115_v38  ;;  %238 = vmatprep.subr.bf16.mxu0 %v108_v39  ;;  %v91_v60 = vld [vmem:[%s519_s1 + $0x1d0] sm:$0xff]  ;;  %v92_v61 = vld [vmem:[%s519_s1 + $0x1d8] sm:$0xff]  ;;  %v117_v63 = vpack.c.bf16 %v74_v57, %v73_v55  ;;  %v110_v0 = vpack.c.bf16 %v60_v59, %v59_v58  ;;  %v61_v6 = vld [vmem:[%s519_s1 + $0xe0] sm:$0xff] }
  0x10   :  { %260 = vmatprep.subr.bf16.mxu1 %v124_v43  ;;  %v43_v1 = vld [vmem:[%s519_s1 + $0x50] sm:$0xff]  ;;  %v44_v2 = vld [vmem:[%s519_s1 + $0x58] sm:$0xff]  ;;  %v126_v4 = vpack.c.bf16 %v92_v61, %v91_v60  ;;  %v62_v7 = vld [vmem:[%s519_s1 + $0xe8] sm:$0xff] }
  0x11   :  { %v75_v3 = vld [vmem:[%s519_s1 + $0x150] sm:$0xff]  ;;  %v76_v5 = vld [vmem:[%s519_s1 + $0x158] sm:$0xff]  ;;  %v93_v8 = vld [vmem:[%s519_s1 + $0x1e0] sm:$0xff]  ;;  %v102_v10 = vpack.c.bf16 %v44_v2, %v43_v1  ;;  %v111_v14 = vpack.c.bf16 %v62_v7, %v61_v6 }
  0x12   :  { %239 = vmatpush3.bf16.msra.mxu0 %v100_v50  ;;  %v94_v9 = vld [vmem:[%s519_s1 + $0x1e8] sm:$0xff]  ;;  %v45_v11 = vld [vmem:[%s519_s1 + $0x60] sm:$0xff]  ;;  %v118_v13 = vpack.c.bf16 %v76_v5, %v75_v3  ;;  %v24_v17 = vld [vmem:[%s521_s0 + $0x18] sm:$0xff] }
  0x13   :  { %261 = vmatpush3.bf16.msra.mxu1 %v116_v51  ;;  %240 = vmatprep.subr.bf16.mxu0 %v109_v52  ;;  %v46_v12 = vld [vmem:[%s519_s1 + $0x68] sm:$0xff]  ;;  %v77_v15 = vld [vmem:[%s519_s1 + $0x160] sm:$0xff]  ;;  %v127_v18 = vpack.c.bf16 %v94_v9, %v93_v8  ;;  %v63_v20 = vld [vmem:[%s519_s1 + $0xf0] sm:$0xff]  ;;  %v28_v23 = vmax.f32 %v24_v17, 0.0 }
  0x14   :  { %262 = vmatprep.subr.bf16.mxu1 %v125_v56  ;;  %v22_v16 = vld [vmem:[%s521_s0 + $0x8] sm:$0xff]  ;;  %v64_v21 = vld [vmem:[%s519_s1 + $0xf8] sm:$0xff]  ;;  %v95_v24 = vld [vmem:[%s519_s1 + $0x1f0] sm:$0xff]  ;;  %v103_v26 = vpack.c.bf16 %v46_v12, %v45_v11 }
  0x15   :  { %v78_v19 = vld [vmem:[%s519_s1 + $0x168] sm:$0xff]  ;;  %v26_v22 = vmax.f32 %v22_v16, 0.0  ;;  %v96_v25 = vld [vmem:[%s519_s1 + $0x1f8] sm:$0xff]  ;;  %v32_v28 = vpack.c.bf16 %v28_v23, %v28_v23  ;;  %v21_v29 = vld [vmem:[%s521_s0] sm:$0xff]  ;;  %v112_v31 = vpack.c.bf16 %v64_v21, %v63_v20 }
  0x16   :  { %241 = vmatpush3.bf16.msra.mxu0 %v101_v62  ;;  %v119_v30 = vpack.c.bf16 %v78_v19, %v77_v15  ;;  %v47_v32 = vld [vmem:[%s519_s1 + $0x70] sm:$0xff]  ;;  %v48_v33 = vld [vmem:[%s519_s1 + $0x78] sm:$0xff]  ;;  %v128_v35 = vpack.c.bf16 %v96_v25, %v95_v24  ;;  %v25_v38 = vmax.f32 %v21_v29, 0.0  ;;  %v230_v53 = vld [vmem:[%s522_s2] ss:$0 sm:$0xff] }
  0x17   :  { %263 = vmatpush3.bf16.msra.mxu1 %v117_v63  ;;  %242 = vmatprep.subr.bf16.mxu0 %v110_v0  ;;  %v30_v27 = vpack.c.bf16 %v26_v22, %v26_v22  ;;  %v23_v34 = vld [vmem:[%s521_s0 + $0x10] sm:$0xff]  ;;  %v80_v37 = vld [vmem:[%s519_s1 + $0x178] sm:$0xff]  ;;  %v104_v39 = vpack.c.bf16 %v48_v33, %v47_v32  ;;  %v231_v56 = vld [vmem:[%s523_s3] ss:$0 sm:$0xff] }
  0x18   :  { %264 = vmatprep.subr.bf16.mxu1 %v126_v4  ;;  %v79_v36 = vld [vmem:[%s519_s1 + $0x170] sm:$0xff]  ;;  %201 = vmatprep.mubr.bf16.mxu1 %v32_v28  ;;  %v27_v40 = vmax.f32 %v23_v34, 0.0  ;;  %v29_v42 = vpack.c.bf16 %v25_v38, %v25_v38 }
  0x19   :  { %161 = vmatprep.mubr.bf16.mxu0 %v30_v27  ;;  %v120_v41 = vpack.c.bf16 %v80_v37, %v79_v36 }
  0x1a   :  { %243 = vmatpush3.bf16.msra.mxu0 %v102_v10  ;;  %v31_v43 = vpack.c.bf16 %v27_v40, %v27_v40 }
  0x1b   :  { %265 = vmatpush3.bf16.msra.mxu1 %v118_v13  ;;  %244 = vmatprep.subr.bf16.mxu0 %v111_v14 }
  0x1c   :  { %266 = vmatprep.subr.bf16.mxu1 %v127_v18 }
  0x1e   :  { %245 = vmatpush3.bf16.msra.mxu0 %v103_v26 }
  0x1f   :  { %267 = vmatpush3.bf16.msra.mxu1 %v119_v30  ;;  %246 = vmatprep.subr.bf16.mxu0 %v112_v31 }
  0x20   :  { %268 = vmatprep.subr.bf16.mxu1 %v128_v35 }
  0x22   :  { %247 = vmatpush3.bf16.msra.mxu0 %v104_v39 }
  0x23   :  { %269 = vmatpush3.bf16.msra.mxu1 %v120_v41 }
  0x25   :  { %162 = vmatmul.mubr.bf16.vlgmr.msra.gmra.mrb[0].mxu0 %v29_v42 }
  0x26   :  { %202 = vmatmul.mubr.bf16.vlgmr.msra.gmra.mrb[0].mxu1 %v31_v43 }
  0xf8   :  { %v248_v44 = vpop.f32.mrb[0].mxu0 }
  0xf9   :  { %v270_v45 = vpop.f32.mrb[0].mxu1  ;;  %v249_v46 = vpop.f32.mrb[1].mxu0 }
  0xfa   :  { %v250_v47 = vadd.f32 %v249_v46, %v248_v44  ;;  %v271_v48 = vpop.f32.mrb[1].mxu1  ;;  %v251_v49 = vpop.f32.mrb[2].mxu0 }
  0xfb   :  { %v272_v50 = vadd.f32 %v271_v48, %v270_v45  ;;  %v273_v51 = vpop.f32.mrb[2].mxu1  ;;  %v252_v52 = vpop.f32.mrb[3].mxu0 }
  0xfc   :  { %v274_v54 = vpop.f32.mrb[3].mxu1 }
  0xfd   :  { %v204_v55 = vadd.f32 %v272_v50, %v250_v47 }
  0xff   :  { %v216_v57 = vmul.f32 %v230_v53, %v204_v55 }
 0x101   :  { %v224_v58 = vadd.f32 %v231_v56, %v216_v57 }
 0x103   :  { %225 = vst [vmem:[%s524_s5] sm:$0xff] %v224_v58 }

// kernel: emg_branch_forward.13
= control target key start
LH: loop header
LB: loop body
LE: loop exit
PB: predicated region body
PF: predicated region fallthrough
CT: control target
= control target key end

     0   :  { %s2801_s18 = smov 0   ;;  %s2803_s19 = smov 0   ;;  %s3797_s0 = inlined_call_operand.vmem [shape: f32[8,2304], index: 0, kind: input, shape index: {}]   ;;  %s3798_s1 = inlined_call_operand.vmem [shape: f32[2304,512], index: 1, kind: input, shape index: {}]   ;;  %s3799_s2 = inlined_call_operand.vmem [shape: f32[1,512], index: 2, kind: input, shape index: {}]   ;;  %s3800_s3 = inlined_call_operand.vmem [shape: f32[1,512], index: 3, kind: input, shape index: {}]   ;;  %s3801_s4 = inlined_call_operand.vmem [shape: f32[1,512], index: 4, kind: input, shape index: {}]   ;;  %s3802_s5 = inlined_call_operand.vmem [shape: f32[8,512], index: 5, kind: output, shape index: {}]  }
   0x1   :  { %s2805_s20 = smov 0   ;;  %s2807_s21 = smov 0  }
   0x2   :  { %s2809_s22 = smov 0  }
   0x3 LB: > { %s24_s4 = sadd.s32 1, %s2765_s21  ;;  %p67_p1 = scmp.ne.s32.totalorder %s2757_s19, %s2753_s18  ;;  %s2769_s22 = sphi %s2809_s22, %s15_s22   ;;  %s2765_s21 = sphi %s2807_s21, %s3806_s21   ;;  %s2761_s20 = sphi %s2805_s20, %s3805_s20   ;;  %s2757_s19 = sphi %s2803_s19, %s3804_s19   ;;  %s2753_s18 = sphi %s2801_s18, %s3803_s18  }
   0x4   : > { %p25_p0 = scmp.ge.s32.totalorder %s24_s4, 4  ;;  %p68_p2 = scmp.eq.s32.totalorder %s2769_s22, 0 }
   0x5   : > { %s60_s24 = sadd.s32 1, %s2757_s19  ;;  %p2483_p5 = scmp.ge.s32.totalorder %s2769_s22, 4 }
   0x6   : > { %s3808_s4 = smov (%p25_p0, %s24_s4), 0  ;;  %p69_p3 = por %p68_p2, %p67_p1 }
   0x7   : > { %s57_s23 = ssub.s32 %s2765_s21, %s3808_s4  ;;  %207 = sbr.rel (%p2483_p5) target bundleno = 306 (0x132), region = 20 }
   0x8   : > { %p58_p4 = scmp.eq.s32.totalorder %s57_s23, 0 }
   0xa   : > { %s2836_s25 = scalar_select %p58_p4, %s2757_s19, %s60_s24  }
   0xe   : > { %210 = sbr.rel (!%p69_p3) target bundleno = 306 (0x132), region = 24  ;;  %s212_s26 = sand.u32 (%p69_p3), 1, %s2757_s19  }
   0xf   : > { %s2484_s27 = sshll.u32 (%p69_p3), %s2765_s21, 3  ;;  %s2689_s28 = smul.u32 (%p69_p3), 2304, %s212_s26 }
  0x10   : > { %s2844_s6 = scalar_lea.vmem (%p69_p3), %s3798_s1, %s2484_s27 }
  0x11   : > { %v818_v0 = vld [vmem:[%s2844_s6] sm:$0xff] (%p69_p3)  ;;  %s2852_s7 = scalar_lea.vmem (%p69_p3), [#allocation2], %s2689_s28 }
  0x12   : > { %v820_v1 = vld [vmem:[%s2844_s6 + $0x20] sm:$0xff] (%p69_p3)  ;;  %819 = vst [vmem:[%s2852_s7] sm:$0xff] (%p69_p3), %v818_v0 }
  0x13   : > { %v822_v2 = vld [vmem:[%s2844_s6 + $0x40] sm:$0xff] (%p69_p3)  ;;  %821 = vst [vmem:[%s2852_s7 + $0x8] sm:$0xff] (%p69_p3), %v820_v1 }
  0x14   : > { %v824_v3 = vld [vmem:[%s2844_s6 + $0x60] sm:$0xff] (%p69_p3)  ;;  %823 = vst [vmem:[%s2852_s7 + $0x10] sm:$0xff] (%p69_p3), %v822_v2 }
  0x15   : > { %v826_v4 = vld [vmem:[%s2844_s6 + $0x80] sm:$0xff]  ;;  %825 = vst [vmem:[%s2852_s7 + $0x18] sm:$0xff] %v824_v3 }
  0x16   : > { %v828_v5 = vld [vmem:[%s2844_s6 + $0xa0] sm:$0xff]  ;;  %827 = vst [vmem:[%s2852_s7 + $0x20] sm:$0xff] %v826_v4 }
  0x17   : > { %829 = vst [vmem:[%s2852_s7 + $0x28] sm:$0xff] %v828_v5  ;;  %v830_v6 = vld [vmem:[%s2844_s6 + $0xc0] sm:$0xff] }
  0x18   : > { %v832_v7 = vld [vmem:[%s2844_s6 + $0xe0] sm:$0xff]  ;;  %831 = vst [vmem:[%s2852_s7 + $0x30] sm:$0xff] %v830_v6 }
  0x19   : > { %v834_v8 = vld [vmem:[%s2844_s6 + $0x100] sm:$0xff]  ;;  %833 = vst [vmem:[%s2852_s7 + $0x38] sm:$0xff] %v832_v7 }
  0x1a   : > { %835 = vst [vmem:[%s2852_s7 + $0x40] sm:$0xff] %v834_v8  ;;  %v836_v9 = vld [vmem:[%s2844_s6 + $0x120] sm:$0xff] }
  0x1b   : > { %v838_v10 = vld [vmem:[%s2844_s6 + $0x140] sm:$0xff]  ;;  %837 = vst [vmem:[%s2852_s7 + $0x48] sm:$0xff] %v836_v9 }
  0x1c   : > { %v840_v11 = vld [vmem:[%s2844_s6 + $0x160] sm:$0xff]  ;;  %839 = vst [vmem:[%s2852_s7 + $0x50] sm:$0xff] %v838_v10 }
  0x1d   : > { %841 = vst [vmem:[%s2852_s7 + $0x58] sm:$0xff] %v840_v11  ;;  %v842_v12 = vld [vmem:[%s2844_s6 + $0x180] sm:$0xff] }
  0x1e   : > { %v844_v13 = vld [vmem:[%s2844_s6 + $0x1a0] sm:$0xff]  ;;  %843 = vst [vmem:[%s2852_s7 + $0x60] sm:$0xff] %v842_v12 }
  0x1f   : > { %v846_v14 = vld [vmem:[%s2844_s6 + $0x1c0] sm:$0xff]  ;;  %845 = vst [vmem:[%s2852_s7 + $0x68] sm:$0xff] %v844_v13 }
  0x20   : > { %847 = vst [vmem:[%s2852_s7 + $0x70] sm:$0xff] %v846_v14  ;;  %v848_v15 = vld [vmem:[%s2844_s6 + $0x1e0] sm:$0xff] }
  0x21   : > { %v850_v16 = vld [vmem:[%s2844_s6 + $0x200] sm:$0xff]  ;;  %849 = vst [vmem:[%s2852_s7 + $0x78] sm:$0xff] %v848_v15 }
  0x22   : > { %v852_v17 = vld [vmem:[%s2844_s6 + $0x220] sm:$0xff]  ;;  %851 = vst [vmem:[%s2852_s7 + $0x80] sm:$0xff] %v850_v16 }
  0x23   : > { %853 = vst [vmem:[%s2852_s7 + $0x88] sm:$0xff] %v852_v17  ;;  %v854_v18 = vld [vmem:[%s2844_s6 + $0x240] sm:$0xff] }
  0x24   : > { %v856_v19 = vld [vmem:[%s2844_s6 + $0x260] sm:$0xff]  ;;  %855 = vst [vmem:[%s2852_s7 + $0x90] sm:$0xff] %v854_v18 }
  0x25   : > { %v858_v20 = vld [vmem:[%s2844_s6 + $0x280] sm:$0xff]  ;;  %857 = vst [vmem:[%s2852_s7 + $0x98] sm:$0xff] %v856_v19 }
  0x26   : > { %859 = vst [vmem:[%s2852_s7 + $0xa0] sm:$0xff] %v858_v20  ;;  %v860_v21 = vld [vmem:[%s2844_s6 + $0x2a0] sm:$0xff] }
  0x27   : > { %v862_v22 = vld [vmem:[%s2844_s6 + $0x2c0] sm:$0xff]  ;;  %861 = vst [vmem:[%s2852_s7 + $0xa8] sm:$0xff] %v860_v21 }
  0x28   : > { %v864_v23 = vld [vmem:[%s2844_s6 + $0x2e0] sm:$0xff]  ;;  %863 = vst [vmem:[%s2852_s7 + $0xb0] sm:$0xff] %v862_v22 }
  0x29   : > { %865 = vst [vmem:[%s2852_s7 + $0xb8] sm:$0xff] %v864_v23  ;;  %v866_v24 = vld [vmem:[%s2844_s6 + $0x300] sm:$0xff] }
  0x2a   : > { %v868_v25 = vld [vmem:[%s2844_s6 + $0x320] sm:$0xff]  ;;  %867 = vst [vmem:[%s2852_s7 + $0xc0] sm:$0xff] %v866_v24 }
  0x2b   : > { %v870_v26 = vld [vmem:[%s2844_s6 + $0x340] sm:$0xff]  ;;  %869 = vst [vmem:[%s2852_s7 + $0xc8] sm:$0xff] %v868_v25 }
  0x2c   : > { %871 = vst [vmem:[%s2852_s7 + $0xd0] sm:$0xff] %v870_v26  ;;  %v872_v27 = vld [vmem:[%s2844_s6 + $0x360] sm:$0xff] }
  0x2d   : > { %v874_v28 = vld [vmem:[%s2844_s6 + $0x380] sm:$0xff]  ;;  %873 = vst [vmem:[%s2852_s7 + $0xd8] sm:$0xff] %v872_v27 }
  0x2e   : > { %v876_v29 = vld [vmem:[%s2844_s6 + $0x3a0] sm:$0xff]  ;;  %875 = vst [vmem:[%s2852_s7 + $0xe0] sm:$0xff] %v874_v28 }
  0x2f   : > { %877 = vst [vmem:[%s2852_s7 + $0xe8] sm:$0xff] %v876_v29  ;;  %v878_v30 = vld [vmem:[%s2844_s6 + $0x3c0] sm:$0xff] }
  0x30   : > { %v880_v31 = vld [vmem:[%s2844_s6 + $0x3e0] sm:$0xff]  ;;  %879 = vst [vmem:[%s2852_s7 + $0xf0] sm:$0xff] %v878_v30 }
  0x31   : > { %v882_v32 = vld [vmem:[%s2844_s6 + $0x400] sm:$0xff]  ;;  %881 = vst [vmem:[%s2852_s7 + $0xf8] sm:$0xff] %v880_v31 }
  0x32   : > { %883 = vst [vmem:[%s2852_s7 + $0x100] sm:$0xff] %v882_v32  ;;  %v884_v33 = vld [vmem:[%s2844_s6 + $0x420] sm:$0xff] }
  0x33   : > { %v886_v34 = vld [vmem:[%s2844_s6 + $0x440] sm:$0xff]  ;;  %885 = vst [vmem:[%s2852_s7 + $0x108] sm:$0xff] %v884_v33 }
  0x34   : > { %v888_v35 = vld [vmem:[%s2844_s6 + $0x460] sm:$0xff]  ;;  %887 = vst [vmem:[%s2852_s7 + $0x110] sm:$0xff] %v886_v34 }
  0x35   : > { %889 = vst [vmem:[%s2852_s7 + $0x118] sm:$0xff] %v888_v35  ;;  %v890_v36 = vld [vmem:[%s2844_s6 + $0x480] sm:$0xff] }
  0x36   : > { %v892_v37 = vld [vmem:[%s2844_s6 + $0x4a0] sm:$0xff]  ;;  %891 = vst [vmem:[%s2852_s7 + $0x120] sm:$0xff] %v890_v36 }
  0x37   : > { %v894_v38 = vld [vmem:[%s2844_s6 + $0x4c0] sm:$0xff]  ;;  %893 = vst [vmem:[%s2852_s7 + $0x128] sm:$0xff] %v892_v37 }
  0x38   : > { %895 = vst [vmem:[%s2852_s7 + $0x130] sm:$0xff] %v894_v38  ;;  %v896_v39 = vld [vmem:[%s2844_s6 + $0x4e0] sm:$0xff] }
  0x39   : > { %v898_v40 = vld [vmem:[%s2844_s6 + $0x500] sm:$0xff]  ;;  %897 = vst [vmem:[%s2852_s7 + $0x138] sm:$0xff] %v896_v39 }
  0x3a   : > { %v900_v41 = vld [vmem:[%s2844_s6 + $0x520] sm:$0xff]  ;;  %899 = vst [vmem:[%s2852_s7 + $0x140] sm:$0xff] %v898_v40 }
  0x3b   : > { %901 = vst [vmem:[%s2852_s7 + $0x148] sm:$0xff] %v900_v41  ;;  %v902_v42 = vld [vmem:[%s2844_s6 + $0x540] sm:$0xff] }
  0x3c   : > { %v904_v43 = vld [vmem:[%s2844_s6 + $0x560] sm:$0xff]  ;;  %903 = vst [vmem:[%s2852_s7 + $0x150] sm:$0xff] %v902_v42 }
  0x3d   : > { %v906_v44 = vld [vmem:[%s2844_s6 + $0x580] sm:$0xff]  ;;  %905 = vst [vmem:[%s2852_s7 + $0x158] sm:$0xff] %v904_v43 }
  0x3e   : > { %907 = vst [vmem:[%s2852_s7 + $0x160] sm:$0xff] %v906_v44  ;;  %v908_v45 = vld [vmem:[%s2844_s6 + $0x5a0] sm:$0xff] }
  0x3f   : > { %v910_v46 = vld [vmem:[%s2844_s6 + $0x5c0] sm:$0xff]  ;;  %909 = vst [vmem:[%s2852_s7 + $0x168] sm:$0xff] %v908_v45 }
  0x40   : > { %v912_v47 = vld [vmem:[%s2844_s6 + $0x5e0] sm:$0xff]  ;;  %911 = vst [vmem:[%s2852_s7 + $0x170] sm:$0xff] %v910_v46 }
  0x41   : > { %913 = vst [vmem:[%s2852_s7 + $0x178] sm:$0xff] %v912_v47  ;;  %v914_v48 = vld [vmem:[%s2844_s6 + $0x600] sm:$0xff] }
  0x42   : > { %v916_v49 = vld [vmem:[%s2844_s6 + $0x620] sm:$0xff]  ;;  %915 = vst [vmem:[%s2852_s7 + $0x180] sm:$0xff] %v914_v48 }
  0x43   : > { %v918_v50 = vld [vmem:[%s2844_s6 + $0x640] sm:$0xff]  ;;  %917 = vst [vmem:[%s2852_s7 + $0x188] sm:$0xff] %v916_v49 }
  0x44   : > { %919 = vst [vmem:[%s2852_s7 + $0x190] sm:$0xff] %v918_v50  ;;  %v920_v51 = vld [vmem:[%s2844_s6 + $0x660] sm:$0xff] }
  0x45   : > { %v922_v52 = vld [vmem:[%s2844_s6 + $0x680] sm:$0xff]  ;;  %921 = vst [vmem:[%s2852_s7 + $0x198] sm:$0xff] %v920_v51 }
  0x46   : > { %v924_v53 = vld [vmem:[%s2844_s6 + $0x6a0] sm:$0xff]  ;;  %923 = vst [vmem:[%s2852_s7 + $0x1a0] sm:$0xff] %v922_v52 }
  0x47   : > { %925 = vst [vmem:[%s2852_s7 + $0x1a8] sm:$0xff] %v924_v53  ;;  %v926_v54 = vld [vmem:[%s2844_s6 + $0x6c0] sm:$0xff] }
  0x48   : > { %v928_v55 = vld [vmem:[%s2844_s6 + $0x6e0] sm:$0xff]  ;;  %927 = vst [vmem:[%s2852_s7 + $0x1b0] sm:$0xff] %v926_v54 }
  0x49   : > { %v930_v56 = vld [vmem:[%s2844_s6 + $0x700] sm:$0xff]  ;;  %929 = vst [vmem:[%s2852_s7 + $0x1b8] sm:$0xff] %v928_v55 }
  0x4a   : > { %931 = vst [vmem:[%s2852_s7 + $0x1c0] sm:$0xff] %v930_v56  ;;  %v932_v57 = vld [vmem:[%s2844_s6 + $0x720] sm:$0xff] }
  0x4b   : > { %v934_v58 = vld [vmem:[%s2844_s6 + $0x740] sm:$0xff]  ;;  %933 = vst [vmem:[%s2852_s7 + $0x1c8] sm:$0xff] %v932_v57 }
  0x4c   : > { %v936_v59 = vld [vmem:[%s2844_s6 + $0x760] sm:$0xff]  ;;  %935 = vst [vmem:[%s2852_s7 + $0x1d0] sm:$0xff] %v934_v58 }
  0x4d   : > { %937 = vst [vmem:[%s2852_s7 + $0x1d8] sm:$0xff] %v936_v59  ;;  %v938_v60 = vld [vmem:[%s2844_s6 + $0x780] sm:$0xff] }
  0x4e   : > { %v940_v61 = vld [vmem:[%s2844_s6 + $0x7a0] sm:$0xff]  ;;  %939 = vst [vmem:[%s2852_s7 + $0x1e0] sm:$0xff] %v938_v60 }
  0x4f   : > { %v942_v62 = vld [vmem:[%s2844_s6 + $0x7c0] sm:$0xff]  ;;  %941 = vst [vmem:[%s2852_s7 + $0x1e8] sm:$0xff] %v940_v61 }
  0x50   : > { %943 = vst [vmem:[%s2852_s7 + $0x1f0] sm:$0xff] %v942_v62  ;;  %v944_v63 = vld [vmem:[%s2844_s6 + $0x7e0] sm:$0xff] }
  0x51   : > { %v946_v0 = vld [vmem:[%s2844_s6 + $0x800] sm:$0xff]  ;;  %945 = vst [vmem:[%s2852_s7 + $0x1f8] sm:$0xff] %v944_v63 }
  0x52   : > { %v948_v1 = vld [vmem:[%s2844_s6 + $0x820] sm:$0xff]  ;;  %947 = vst [vmem:[%s2852_s7 + $0x200] sm:$0xff] %v946_v0 }
  0x53   : > { %949 = vst [vmem:[%s2852_s7 + $0x208] sm:$0xff] %v948_v1  ;;  %v950_v2 = vld [vmem:[%s2844_s6 + $0x840] sm:$0xff] }
  0x54   : > { %v952_v3 = vld [vmem:[%s2844_s6 + $0x860] sm:$0xff]  ;;  %951 = vst [vmem:[%s2852_s7 + $0x210] sm:$0xff] %v950_v2 }
  0x55   : > { %v954_v4 = vld [vmem:[%s2844_s6 + $0x880] sm:$0xff]  ;;  %953 = vst [vmem:[%s2852_s7 + $0x218] sm:$0xff] %v952_v3 }
  0x56   : > { %955 = vst [vmem:[%s2852_s7 + $0x220] sm:$0xff] %v954_v4  ;;  %v956_v5 = vld [vmem:[%s2844_s6 + $0x8a0] sm:$0xff] }
  0x57   : > { %v958_v6 = vld [vmem:[%s2844_s6 + $0x8c0] sm:$0xff]  ;;  %957 = vst [vmem:[%s2852_s7 + $0x228] sm:$0xff] %v956_v5 }
  0x58   : > { %v960_v7 = vld [vmem:[%s2844_s6 + $0x8e0] sm:$0xff]  ;;  %959 = vst [vmem:[%s2852_s7 + $0x230] sm:$0xff] %v958_v6 }
  0x59   : > { %961 = vst [vmem:[%s2852_s7 + $0x238] sm:$0xff] %v960_v7  ;;  %v962_v8 = vld [vmem:[%s2844_s6 + $0x900] sm:$0xff] }
  0x5a   : > { %v964_v9 = vld [vmem:[%s2844_s6 + $0x920] sm:$0xff]  ;;  %963 = vst [vmem:[%s2852_s7 + $0x240] sm:$0xff] %v962_v8 }
  0x5b   : > { %v966_v10 = vld [vmem:[%s2844_s6 + $0x940] sm:$0xff]  ;;  %965 = vst [vmem:[%s2852_s7 + $0x248] sm:$0xff] %v964_v9 }
  0x5c   : > { %967 = vst [vmem:[%s2852_s7 + $0x250] sm:$0xff] %v966_v10  ;;  %v968_v11 = vld [vmem:[%s2844_s6 + $0x960] sm:$0xff] }
  0x5d   : > { %v970_v12 = vld [vmem:[%s2844_s6 + $0x980] sm:$0xff]  ;;  %969 = vst [vmem:[%s2852_s7 + $0x258] sm:$0xff] %v968_v11 }
  0x5e   : > { %v972_v13 = vld [vmem:[%s2844_s6 + $0x9a0] sm:$0xff]  ;;  %971 = vst [vmem:[%s2852_s7 + $0x260] sm:$0xff] %v970_v12 }
  0x5f   : > { %973 = vst [vmem:[%s2852_s7 + $0x268] sm:$0xff] %v972_v13  ;;  %v974_v14 = vld [vmem:[%s2844_s6 + $0x9c0] sm:$0xff] }
  0x60   : > { %v976_v15 = vld [vmem:[%s2844_s6 + $0x9e0] sm:$0xff]  ;;  %975 = vst [vmem:[%s2852_s7 + $0x270] sm:$0xff] %v974_v14 }
  0x61   : > { %v978_v16 = vld [vmem:[%s2844_s6 + $0xa00] sm:$0xff]  ;;  %977 = vst [vmem:[%s2852_s7 + $0x278] sm:$0xff] %v976_v15 }
  0x62   : > { %979 = vst [vmem:[%s2852_s7 + $0x280] sm:$0xff] %v978_v16  ;;  %v980_v17 = vld [vmem:[%s2844_s6 + $0xa20] sm:$0xff] }
  0x63   : > { %v982_v18 = vld [vmem:[%s2844_s6 + $0xa40] sm:$0xff]  ;;  %981 = vst [vmem:[%s2852_s7 + $0x288] sm:$0xff] %v980_v17 }
  0x64   : > { %v984_v19 = vld [vmem:[%s2844_s6 + $0xa60] sm:$0xff]  ;;  %983 = vst [vmem:[%s2852_s7 + $0x290] sm:$0xff] %v982_v18 }
  0x65   : > { %985 = vst [vmem:[%s2852_s7 + $0x298] sm:$0xff] %v984_v19  ;;  %v986_v20 = vld [vmem:[%s2844_s6 + $0xa80] sm:$0xff] }
  0x66   : > { %v988_v21 = vld [vmem:[%s2844_s6 + $0xaa0] sm:$0xff]  ;;  %987 = vst [vmem:[%s2852_s7 + $0x2a0] sm:$0xff] %v986_v20 }
  0x67   : > { %v990_v22 = vld [vmem:[%s2844_s6 + $0xac0] sm:$0xff]  ;;  %989 = vst [vmem:[%s2852_s7 + $0x2a8] sm:$0xff] %v988_v21 }
  0x68   : > { %991 = vst [vmem:[%s2852_s7 + $0x2b0] sm:$0xff] %v990_v22  ;;  %v992_v23 = vld [vmem:[%s2844_s6 + $0xae0] sm:$0xff] }
  0x69   : > { %v994_v24 = vld [vmem:[%s2844_s6 + $0xb00] sm:$0xff]  ;;  %993 = vst [vmem:[%s2852_s7 + $0x2b8] sm:$0xff] %v992_v23 }
  0x6a   : > { %v996_v25 = vld [vmem:[%s2844_s6 + $0xb20] sm:$0xff]  ;;  %995 = vst [vmem:[%s2852_s7 + $0x2c0] sm:$0xff] %v994_v24 }
  0x6b   : > { %997 = vst [vmem:[%s2852_s7 + $0x2c8] sm:$0xff] %v996_v25  ;;  %v998_v26 = vld [vmem:[%s2844_s6 + $0xb40] sm:$0xff] }
  0x6c   : > { %v1000_v27 = vld [vmem:[%s2844_s6 + $0xb60] sm:$0xff]  ;;  %999 = vst [vmem:[%s2852_s7 + $0x2d0] sm:$0xff] %v998_v26 }
  0x6d   : > { %v1002_v28 = vld [vmem:[%s2844_s6 + $0xb80] sm:$0xff]  ;;  %1001 = vst [vmem:[%s2852_s7 + $0x2d8] sm:$0xff] %v1000_v27 }
  0x6e   : > { %1003 = vst [vmem:[%s2852_s7 + $0x2e0] sm:$0xff] %v1002_v28  ;;  %v1004_v29 = vld [vmem:[%s2844_s6 + $0xba0] sm:$0xff] }
  0x6f   : > { %v1006_v30 = vld [vmem:[%s2844_s6 + $0xbc0] sm:$0xff]  ;;  %1005 = vst [vmem:[%s2852_s7 + $0x2e8] sm:$0xff] %v1004_v29 }
  0x70   : > { %v1008_v31 = vld [vmem:[%s2844_s6 + $0xbe0] sm:$0xff]  ;;  %1007 = vst [vmem:[%s2852_s7 + $0x2f0] sm:$0xff] %v1006_v30 }
  0x71   : > { %1009 = vst [vmem:[%s2852_s7 + $0x2f8] sm:$0xff] %v1008_v31  ;;  %v1010_v32 = vld [vmem:[%s2844_s6 + $0xc00] sm:$0xff] }
  0x72   : > { %v1012_v33 = vld [vmem:[%s2844_s6 + $0xc20] sm:$0xff]  ;;  %1011 = vst [vmem:[%s2852_s7 + $0x300] sm:$0xff] %v1010_v32 }
  0x73   : > { %v1014_v34 = vld [vmem:[%s2844_s6 + $0xc40] sm:$0xff]  ;;  %1013 = vst [vmem:[%s2852_s7 + $0x308] sm:$0xff] %v1012_v33 }
  0x74   : > { %1015 = vst [vmem:[%s2852_s7 + $0x310] sm:$0xff] %v1014_v34  ;;  %v1016_v35 = vld [vmem:[%s2844_s6 + $0xc60] sm:$0xff] }
  0x75   : > { %v1018_v36 = vld [vmem:[%s2844_s6 + $0xc80] sm:$0xff]  ;;  %1017 = vst [vmem:[%s2852_s7 + $0x318] sm:$0xff] %v1016_v35 }
  0x76   : > { %v1020_v37 = vld [vmem:[%s2844_s6 + $0xca0] sm:$0xff]  ;;  %1019 = vst [vmem:[%s2852_s7 + $0x320] sm:$0xff] %v1018_v36 }
  0x77   : > { %1021 = vst [vmem:[%s2852_s7 + $0x328] sm:$0xff] %v1020_v37  ;;  %v1022_v38 = vld [vmem:[%s2844_s6 + $0xcc0] sm:$0xff] }
  0x78   : > { %v1024_v39 = vld [vmem:[%s2844_s6 + $0xce0] sm:$0xff]  ;;  %1023 = vst [vmem:[%s2852_s7 + $0x330] sm:$0xff] %v1022_v38 }
  0x79   : > { %v1026_v40 = vld [vmem:[%s2844_s6 + $0xd00] sm:$0xff]  ;;  %1025 = vst [vmem:[%s2852_s7 + $0x338] sm:$0xff] %v1024_v39 }
  0x7a   : > { %1027 = vst [vmem:[%s2852_s7 + $0x340] sm:$0xff] %v1026_v40  ;;  %v1028_v41 = vld [vmem:[%s2844_s6 + $0xd20] sm:$0xff] }
  0x7b   : > { %v1030_v42 = vld [vmem:[%s2844_s6 + $0xd40] sm:$0xff]  ;;  %1029 = vst [vmem:[%s2852_s7 + $0x348] sm:$0xff] %v1028_v41 }
  0x7c   : > { %v1032_v43 = vld [vmem:[%s2844_s6 + $0xd60] sm:$0xff]  ;;  %1031 = vst [vmem:[%s2852_s7 + $0x350] sm:$0xff] %v1030_v42 }
  0x7d   : > { %1033 = vst [vmem:[%s2852_s7 + $0x358] sm:$0xff] %v1032_v43  ;;  %v1034_v44 = vld [vmem:[%s2844_s6 + $0xd80] sm:$0xff] }
  0x7e   : > { %v1036_v45 = vld [vmem:[%s2844_s6 + $0xda0] sm:$0xff]  ;;  %1035 = vst [vmem:[%s2852_s7 + $0x360] sm:$0xff] %v1034_v44 }
  0x7f   : > { %v1038_v46 = vld [vmem:[%s2844_s6 + $0xdc0] sm:$0xff]  ;;  %1037 = vst [vmem:[%s2852_s7 + $0x368] sm:$0xff] %v1036_v45 }
  0x80   : > { %1039 = vst [vmem:[%s2852_s7 + $0x370] sm:$0xff] %v1038_v46  ;;  %v1040_v47 = vld [vmem:[%s2844_s6 + $0xde0] sm:$0xff] }
  0x81   : > { %v1042_v48 = vld [vmem:[%s2844_s6 + $0xe00] sm:$0xff]  ;;  %1041 = vst [vmem:[%s2852_s7 + $0x378] sm:$0xff] %v1040_v47 }
  0x82   : > { %v1044_v49 = vld [vmem:[%s2844_s6 + $0xe20] sm:$0xff]  ;;  %1043 = vst [vmem:[%s2852_s7 + $0x380] sm:$0xff] %v1042_v48 }
  0x83   : > { %1045 = vst [vmem:[%s2852_s7 + $0x388] sm:$0xff] %v1044_v49  ;;  %v1046_v50 = vld [vmem:[%s2844_s6 + $0xe40] sm:$0xff] }
  0x84   : > { %v1048_v51 = vld [vmem:[%s2844_s6 + $0xe60] sm:$0xff]  ;;  %1047 = vst [vmem:[%s2852_s7 + $0x390] sm:$0xff] %v1046_v50 }
  0x85   : > { %v1050_v52 = vld [vmem:[%s2844_s6 + $0xe80] sm:$0xff]  ;;  %1049 = vst [vmem:[%s2852_s7 + $0x398] sm:$0xff] %v1048_v51 }
  0x86   : > { %1051 = vst [vmem:[%s2852_s7 + $0x3a0] sm:$0xff] %v1050_v52  ;;  %v1052_v53 = vld [vmem:[%s2844_s6 + $0xea0] sm:$0xff] }
  0x87   : > { %v1054_v54 = vld [vmem:[%s2844_s6 + $0xec0] sm:$0xff]  ;;  %1053 = vst [vmem:[%s2852_s7 + $0x3a8] sm:$0xff] %v1052_v53 }
  0x88   : > { %v1056_v55 = vld [vmem:[%s2844_s6 + $0xee0] sm:$0xff]  ;;  %1055 = vst [vmem:[%s2852_s7 + $0x3b0] sm:$0xff] %v1054_v54 }
  0x89   : > { %1057 = vst [vmem:[%s2852_s7 + $0x3b8] sm:$0xff] %v1056_v55  ;;  %v1058_v56 = vld [vmem:[%s2844_s6 + $0xf00] sm:$0xff] }
  0x8a   : > { %v1060_v57 = vld [vmem:[%s2844_s6 + $0xf20] sm:$0xff]  ;;  %1059 = vst [vmem:[%s2852_s7 + $0x3c0] sm:$0xff] %v1058_v56 }
  0x8b   : > { %v1062_v58 = vld [vmem:[%s2844_s6 + $0xf40] sm:$0xff]  ;;  %1061 = vst [vmem:[%s2852_s7 + $0x3c8] sm:$0xff] %v1060_v57 }
  0x8c   : > { %1063 = vst [vmem:[%s2852_s7 + $0x3d0] sm:$0xff] %v1062_v58  ;;  %v1064_v59 = vld [vmem:[%s2844_s6 + $0xf60] sm:$0xff] }
  0x8d   : > { %v1066_v60 = vld [vmem:[%s2844_s6 + $0xf80] sm:$0xff]  ;;  %1065 = vst [vmem:[%s2852_s7 + $0x3d8] sm:$0xff] %v1064_v59 }
  0x8e   : > { %v1068_v61 = vld [vmem:[%s2844_s6 + $0xfa0] sm:$0xff]  ;;  %1067 = vst [vmem:[%s2852_s7 + $0x3e0] sm:$0xff] %v1066_v60 }
  0x8f   : > { %1069 = vst [vmem:[%s2852_s7 + $0x3e8] sm:$0xff] %v1068_v61  ;;  %v1070_v62 = vld [vmem:[%s2844_s6 + $0xfc0] sm:$0xff] }
  0x90   : > { %v1072_v63 = vld [vmem:[%s2844_s6 + $0xfe0] sm:$0xff]  ;;  %1071 = vst [vmem:[%s2852_s7 + $0x3f0] sm:$0xff] %v1070_v62 }
  0x91   : > { %v1074_v0 = vld [vmem:[%s2844_s6 + $0x1000] sm:$0xff]  ;;  %1073 = vst [vmem:[%s2852_s7 + $0x3f8] sm:$0xff] %v1072_v63 }
  0x92   : > { %1075 = vst [vmem:[%s2852_s7 + $0x400] sm:$0xff] %v1074_v0  ;;  %v1076_v1 = vld [vmem:[%s2844_s6 + $0x1020] sm:$0xff] }
  0x93   : > { %v1078_v2 = vld [vmem:[%s2844_s6 + $0x1040] sm:$0xff]  ;;  %1077 = vst [vmem:[%s2852_s7 + $0x408] sm:$0xff] %v1076_v1 }
  0x94   : > { %v1080_v3 = vld [vmem:[%s2844_s6 + $0x1060] sm:$0xff]  ;;  %1079 = vst [vmem:[%s2852_s7 + $0x410] sm:$0xff] %v1078_v2 }
  0x95   : > { %1081 = vst [vmem:[%s2852_s7 + $0x418] sm:$0xff] %v1080_v3  ;;  %v1082_v4 = vld [vmem:[%s2844_s6 + $0x1080] sm:$0xff] }
  0x96   : > { %v1084_v5 = vld [vmem:[%s2844_s6 + $0x10a0] sm:$0xff]  ;;  %1083 = vst [vmem:[%s2852_s7 + $0x420] sm:$0xff] %v1082_v4 }
  0x97   : > { %v1086_v6 = vld [vmem:[%s2844_s6 + $0x10c0] sm:$0xff]  ;;  %1085 = vst [vmem:[%s2852_s7 + $0x428] sm:$0xff] %v1084_v5 }
  0x98   : > { %1087 = vst [vmem:[%s2852_s7 + $0x430] sm:$0xff] %v1086_v6  ;;  %v1088_v7 = vld [vmem:[%s2844_s6 + $0x10e0] sm:$0xff] }
  0x99   : > { %v1090_v8 = vld [vmem:[%s2844_s6 + $0x1100] sm:$0xff]  ;;  %1089 = vst [vmem:[%s2852_s7 + $0x438] sm:$0xff] %v1088_v7 }
  0x9a   : > { %v1092_v9 = vld [vmem:[%s2844_s6 + $0x1120] sm:$0xff]  ;;  %1091 = vst [vmem:[%s2852_s7 + $0x440] sm:$0xff] %v1090_v8 }
  0x9b   : > { %1093 = vst [vmem:[%s2852_s7 + $0x448] sm:$0xff] %v1092_v9  ;;  %v1094_v10 = vld [vmem:[%s2844_s6 + $0x1140] sm:$0xff] }
  0x9c   : > { %v1096_v11 = vld [vmem:[%s2844_s6 + $0x1160] sm:$0xff]  ;;  %1095 = vst [vmem:[%s2852_s7 + $0x450] sm:$0xff] %v1094_v10 }
  0x9d   : > { %v1098_v12 = vld [vmem:[%s2844_s6 + $0x1180] sm:$0xff]  ;;  %1097 = vst [vmem:[%s2852_s7 + $0x458] sm:$0xff] %v1096_v11 }
  0x9e   : > { %1099 = vst [vmem:[%s2852_s7 + $0x460] sm:$0xff] %v1098_v12  ;;  %v1100_v13 = vld [vmem:[%s2844_s6 + $0x11a0] sm:$0xff] }
  0x9f   : > { %v1102_v14 = vld [vmem:[%s2844_s6 + $0x11c0] sm:$0xff]  ;;  %1101 = vst [vmem:[%s2852_s7 + $0x468] sm:$0xff] %v1100_v13 }
  0xa0   : > { %v1104_v15 = vld [vmem:[%s2844_s6 + $0x11e0] sm:$0xff]  ;;  %1103 = vst [vmem:[%s2852_s7 + $0x470] sm:$0xff] %v1102_v14 }
  0xa1   : > { %1105 = vst [vmem:[%s2852_s7 + $0x478] sm:$0xff] %v1104_v15  ;;  %v1106_v16 = vld [vmem:[%s2844_s6 + $0x1200] sm:$0xff] }
  0xa2   : > { %v1108_v17 = vld [vmem:[%s2844_s6 + $0x1220] sm:$0xff]  ;;  %1107 = vst [vmem:[%s2852_s7 + $0x480] sm:$0xff] %v1106_v16 }
  0xa3   : > { %v1110_v18 = vld [vmem:[%s2844_s6 + $0x1240] sm:$0xff]  ;;  %1109 = vst [vmem:[%s2852_s7 + $0x488] sm:$0xff] %v1108_v17 }
  0xa4   : > { %1111 = vst [vmem:[%s2852_s7 + $0x490] sm:$0xff] %v1110_v18  ;;  %v1112_v19 = vld [vmem:[%s2844_s6 + $0x1260] sm:$0xff] }
  0xa5   : > { %v1114_v20 = vld [vmem:[%s2844_s6 + $0x1280] sm:$0xff]  ;;  %1113 = vst [vmem:[%s2852_s7 + $0x498] sm:$0xff] %v1112_v19 }
  0xa6   : > { %v1116_v21 = vld [vmem:[%s2844_s6 + $0x12a0] sm:$0xff]  ;;  %1115 = vst [vmem:[%s2852_s7 + $0x4a0] sm:$0xff] %v1114_v20 }
  0xa7   : > { %1117 = vst [vmem:[%s2852_s7 + $0x4a8] sm:$0xff] %v1116_v21  ;;  %v1118_v22 = vld [vmem:[%s2844_s6 + $0x12c0] sm:$0xff] }
  0xa8   : > { %v1120_v23 = vld [vmem:[%s2844_s6 + $0x12e0] sm:$0xff]  ;;  %1119 = vst [vmem:[%s2852_s7 + $0x4b0] sm:$0xff] %v1118_v22 }
  0xa9   : > { %v1122_v24 = vld [vmem:[%s2844_s6 + $0x1300] sm:$0xff]  ;;  %1121 = vst [vmem:[%s2852_s7 + $0x4b8] sm:$0xff] %v1120_v23 }
  0xaa   : > { %1123 = vst [vmem:[%s2852_s7 + $0x4c0] sm:$0xff] %v1122_v24  ;;  %v1124_v25 = vld [vmem:[%s2844_s6 + $0x1320] sm:$0xff] }
  0xab   : > { %v1126_v26 = vld [vmem:[%s2844_s6 + $0x1340] sm:$0xff]  ;;  %1125 = vst [vmem:[%s2852_s7 + $0x4c8] sm:$0xff] %v1124_v25 }
  0xac   : > { %v1128_v27 = vld [vmem:[%s2844_s6 + $0x1360] sm:$0xff]  ;;  %1127 = vst [vmem:[%s2852_s7 + $0x4d0] sm:$0xff] %v1126_v26 }
  0xad   : > { %1129 = vst [vmem:[%s2852_s7 + $0x4d8] sm:$0xff] %v1128_v27  ;;  %v1130_v28 = vld [vmem:[%s2844_s6 + $0x1380] sm:$0xff] }
  0xae   : > { %v1132_v29 = vld [vmem:[%s2844_s6 + $0x13a0] sm:$0xff]  ;;  %1131 = vst [vmem:[%s2852_s7 + $0x4e0] sm:$0xff] %v1130_v28 }
  0xaf   : > { %v1134_v30 = vld [vmem:[%s2844_s6 + $0x13c0] sm:$0xff]  ;;  %1133 = vst [vmem:[%s2852_s7 + $0x4e8] sm:$0xff] %v1132_v29 }
  0xb0   : > { %1135 = vst [vmem:[%s2852_s7 + $0x4f0] sm:$0xff] %v1134_v30  ;;  %v1136_v31 = vld [vmem:[%s2844_s6 + $0x13e0] sm:$0xff] }
  0xb1   : > { %v1138_v32 = vld [vmem:[%s2844_s6 + $0x1400] sm:$0xff]  ;;  %1137 = vst [vmem:[%s2852_s7 + $0x4f8] sm:$0xff] %v1136_v31 }
  0xb2   : > { %v1140_v33 = vld [vmem:[%s2844_s6 + $0x1420] sm:$0xff]  ;;  %1139 = vst [vmem:[%s2852_s7 + $0x500] sm:$0xff] %v1138_v32 }
  0xb3   : > { %1141 = vst [vmem:[%s2852_s7 + $0x508] sm:$0xff] %v1140_v33  ;;  %v1142_v34 = vld [vmem:[%s2844_s6 + $0x1440] sm:$0xff] }
  0xb4   : > { %v1144_v35 = vld [vmem:[%s2844_s6 + $0x1460] sm:$0xff]  ;;  %1143 = vst [vmem:[%s2852_s7 + $0x510] sm:$0xff] %v1142_v34 }
  0xb5   : > { %v1146_v36 = vld [vmem:[%s2844_s6 + $0x1480] sm:$0xff]  ;;  %1145 = vst [vmem:[%s2852_s7 + $0x518] sm:$0xff] %v1144_v35 }
  0xb6   : > { %1147 = vst [vmem:[%s2852_s7 + $0x520] sm:$0xff] %v1146_v36  ;;  %v1148_v37 = vld [vmem:[%s2844_s6 + $0x14a0] sm:$0xff] }
  0xb7   : > { %v1150_v38 = vld [vmem:[%s2844_s6 + $0x14c0] sm:$0xff]  ;;  %1149 = vst [vmem:[%s2852_s7 + $0x528] sm:$0xff] %v1148_v37 }
  0xb8   : > { %v1152_v39 = vld [vmem:[%s2844_s6 + $0x14e0] sm:$0xff]  ;;  %1151 = vst [vmem:[%s2852_s7 + $0x530] sm:$0xff] %v1150_v38 }
  0xb9   : > { %1153 = vst [vmem:[%s2852_s7 + $0x538] sm:$0xff] %v1152_v39  ;;  %v1154_v40 = vld [vmem:[%s2844_s6 + $0x1500] sm:$0xff] }
  0xba   : > { %v1156_v41 = vld [vmem:[%s2844_s6 + $0x1520] sm:$0xff]  ;;  %1155 = vst [vmem:[%s2852_s7 + $0x540] sm:$0xff] %v1154_v40 }
  0xbb   : > { %v1158_v42 = vld [vmem:[%s2844_s6 + $0x1540] sm:$0xff]  ;;  %1157 = vst [vmem:[%s2852_s7 + $0x548] sm:$0xff] %v1156_v41 }
  0xbc   : > { %1159 = vst [vmem:[%s2852_s7 + $0x550] sm:$0xff] %v1158_v42  ;;  %v1160_v43 = vld [vmem:[%s2844_s6 + $0x1560] sm:$0xff] }
  0xbd   : > { %v1162_v44 = vld [vmem:[%s2844_s6 + $0x1580] sm:$0xff]  ;;  %1161 = vst [vmem:[%s2852_s7 + $0x558] sm:$0xff] %v1160_v43 }
  0xbe   : > { %v1164_v45 = vld [vmem:[%s2844_s6 + $0x15a0] sm:$0xff]  ;;  %1163 = vst [vmem:[%s2852_s7 + $0x560] sm:$0xff] %v1162_v44 }
  0xbf   : > { %1165 = vst [vmem:[%s2852_s7 + $0x568] sm:$0xff] %v1164_v45  ;;  %v1166_v46 = vld [vmem:[%s2844_s6 + $0x15c0] sm:$0xff] }
  0xc0   : > { %v1168_v47 = vld [vmem:[%s2844_s6 + $0x15e0] sm:$0xff]  ;;  %1167 = vst [vmem:[%s2852_s7 + $0x570] sm:$0xff] %v1166_v46 }
  0xc1   : > { %v1170_v48 = vld [vmem:[%s2844_s6 + $0x1600] sm:$0xff]  ;;  %1169 = vst [vmem:[%s2852_s7 + $0x578] sm:$0xff] %v1168_v47 }
  0xc2   : > { %1171 = vst [vmem:[%s2852_s7 + $0x580] sm:$0xff] %v1170_v48  ;;  %v1172_v49 = vld [vmem:[%s2844_s6 + $0x1620] sm:$0xff] }
  0xc3   : > { %v1174_v50 = vld [vmem:[%s2844_s6 + $0x1640] sm:$0xff]  ;;  %1173 = vst [vmem:[%s2852_s7 + $0x588] sm:$0xff] %v1172_v49 }
  0xc4   : > { %v1176_v51 = vld [vmem:[%s2844_s6 + $0x1660] sm:$0xff]  ;;  %1175 = vst [vmem:[%s2852_s7 + $0x590] sm:$0xff] %v1174_v50 }
  0xc5   : > { %1177 = vst [vmem:[%s2852_s7 + $0x598] sm:$0xff] %v1176_v51  ;;  %v1178_v52 = vld [vmem:[%s2844_s6 + $0x1680] sm:$0xff] }
  0xc6   : > { %v1180_v53 = vld [vmem:[%s2844_s6 + $0x16a0] sm:$0xff]  ;;  %1179 = vst [vmem:[%s2852_s7 + $0x5a0] sm:$0xff] %v1178_v52 }
  0xc7   : > { %v1182_v54 = vld [vmem:[%s2844_s6 + $0x16c0] sm:$0xff]  ;;  %1181 = vst [vmem:[%s2852_s7 + $0x5a8] sm:$0xff] %v1180_v53 }
  0xc8   : > { %1183 = vst [vmem:[%s2852_s7 + $0x5b0] sm:$0xff] %v1182_v54  ;;  %v1184_v55 = vld [vmem:[%s2844_s6 + $0x16e0] sm:$0xff] }
  0xc9   : > { %v1186_v56 = vld [vmem:[%s2844_s6 + $0x1700] sm:$0xff]  ;;  %1185 = vst [vmem:[%s2852_s7 + $0x5b8] sm:$0xff] %v1184_v55 }
  0xca   : > { %v1188_v57 = vld [vmem:[%s2844_s6 + $0x1720] sm:$0xff]  ;;  %1187 = vst [vmem:[%s2852_s7 + $0x5c0] sm:$0xff] %v1186_v56 }
  0xcb   : > { %1189 = vst [vmem:[%s2852_s7 + $0x5c8] sm:$0xff] %v1188_v57  ;;  %v1190_v58 = vld [vmem:[%s2844_s6 + $0x1740] sm:$0xff] }
  0xcc   : > { %v1192_v59 = vld [vmem:[%s2844_s6 + $0x1760] sm:$0xff]  ;;  %1191 = vst [vmem:[%s2852_s7 + $0x5d0] sm:$0xff] %v1190_v58 }
  0xcd   : > { %v1194_v60 = vld [vmem:[%s2844_s6 + $0x1780] sm:$0xff]  ;;  %1193 = vst [vmem:[%s2852_s7 + $0x5d8] sm:$0xff] %v1192_v59 }
  0xce   : > { %1195 = vst [vmem:[%s2852_s7 + $0x5e0] sm:$0xff] %v1194_v60  ;;  %v1196_v61 = vld [vmem:[%s2844_s6 + $0x17a0] sm:$0xff] }
  0xcf   : > { %v1198_v62 = vld [vmem:[%s2844_s6 + $0x17c0] sm:$0xff]  ;;  %1197 = vst [vmem:[%s2852_s7 + $0x5e8] sm:$0xff] %v1196_v61 }
  0xd0   : > { %v1200_v63 = vld [vmem:[%s2844_s6 + $0x17e0] sm:$0xff]  ;;  %1199 = vst [vmem:[%s2852_s7 + $0x5f0] sm:$0xff] %v1198_v62 }
  0xd1   : > { %1201 = vst [vmem:[%s2852_s7 + $0x5f8] sm:$0xff] %v1200_v63  ;;  %v1202_v0 = vld [vmem:[%s2844_s6 + $0x1800] sm:$0xff] }
  0xd2   : > { %v1204_v1 = vld [vmem:[%s2844_s6 + $0x1820] sm:$0xff]  ;;  %1203 = vst [vmem:[%s2852_s7 + $0x600] sm:$0xff] %v1202_v0 }
  0xd3   : > { %v1206_v2 = vld [vmem:[%s2844_s6 + $0x1840] sm:$0xff]  ;;  %1205 = vst [vmem:[%s2852_s7 + $0x608] sm:$0xff] %v1204_v1 }
  0xd4   : > { %1207 = vst [vmem:[%s2852_s7 + $0x610] sm:$0xff] %v1206_v2  ;;  %v1208_v3 = vld [vmem:[%s2844_s6 + $0x1860] sm:$0xff] }
  0xd5   : > { %v1210_v4 = vld [vmem:[%s2844_s6 + $0x1880] sm:$0xff]  ;;  %1209 = vst [vmem:[%s2852_s7 + $0x618] sm:$0xff] %v1208_v3 }
  0xd6   : > { %v1212_v5 = vld [vmem:[%s2844_s6 + $0x18a0] sm:$0xff]  ;;  %1211 = vst [vmem:[%s2852_s7 + $0x620] sm:$0xff] %v1210_v4 }
  0xd7   : > { %1213 = vst [vmem:[%s2852_s7 + $0x628] sm:$0xff] %v1212_v5  ;;  %v1214_v6 = vld [vmem:[%s2844_s6 + $0x18c0] sm:$0xff] }
  0xd8   : > { %v1216_v7 = vld [vmem:[%s2844_s6 + $0x18e0] sm:$0xff]  ;;  %1215 = vst [vmem:[%s2852_s7 + $0x630] sm:$0xff] %v1214_v6 }
  0xd9   : > { %v1218_v8 = vld [vmem:[%s2844_s6 + $0x1900] sm:$0xff]  ;;  %1217 = vst [vmem:[%s2852_s7 + $0x638] sm:$0xff] %v1216_v7 }
  0xda   : > { %1219 = vst [vmem:[%s2852_s7 + $0x640] sm:$0xff] %v1218_v8  ;;  %v1220_v9 = vld [vmem:[%s2844_s6 + $0x1920] sm:$0xff] }
  0xdb   : > { %v1222_v10 = vld [vmem:[%s2844_s6 + $0x1940] sm:$0xff]  ;;  %1221 = vst [vmem:[%s2852_s7 + $0x648] sm:$0xff] %v1220_v9 }
  0xdc   : > { %v1224_v11 = vld [vmem:[%s2844_s6 + $0x1960] sm:$0xff]  ;;  %1223 = vst [vmem:[%s2852_s7 + $0x650] sm:$0xff] %v1222_v10 }
  0xdd   : > { %1225 = vst [vmem:[%s2852_s7 + $0x658] sm:$0xff] %v1224_v11  ;;  %v1226_v12 = vld [vmem:[%s2844_s6 + $0x1980] sm:$0xff] }
  0xde   : > { %v1228_v13 = vld [vmem:[%s2844_s6 + $0x19a0] sm:$0xff]  ;;  %1227 = vst [vmem:[%s2852_s7 + $0x660] sm:$0xff] %v1226_v12 }
  0xdf   : > { %v1230_v14 = vld [vmem:[%s2844_s6 + $0x19c0] sm:$0xff]  ;;  %1229 = vst [vmem:[%s2852_s7 + $0x668] sm:$0xff] %v1228_v13 }
  0xe0   : > { %1231 = vst [vmem:[%s2852_s7 + $0x670] sm:$0xff] %v1230_v14  ;;  %v1232_v15 = vld [vmem:[%s2844_s6 + $0x19e0] sm:$0xff] }
  0xe1   : > { %v1234_v16 = vld [vmem:[%s2844_s6 + $0x1a00] sm:$0xff]  ;;  %1233 = vst [vmem:[%s2852_s7 + $0x678] sm:$0xff] %v1232_v15 }
  0xe2   : > { %v1236_v17 = vld [vmem:[%s2844_s6 + $0x1a20] sm:$0xff]  ;;  %1235 = vst [vmem:[%s2852_s7 + $0x680] sm:$0xff] %v1234_v16 }
  0xe3   : > { %1237 = vst [vmem:[%s2852_s7 + $0x688] sm:$0xff] %v1236_v17  ;;  %v1238_v18 = vld [vmem:[%s2844_s6 + $0x1a40] sm:$0xff] }
  0xe4   : > { %v1240_v19 = vld [vmem:[%s2844_s6 + $0x1a60] sm:$0xff]  ;;  %1239 = vst [vmem:[%s2852_s7 + $0x690] sm:$0xff] %v1238_v18 }
  0xe5   : > { %v1242_v20 = vld [vmem:[%s2844_s6 + $0x1a80] sm:$0xff]  ;;  %1241 = vst [vmem:[%s2852_s7 + $0x698] sm:$0xff] %v1240_v19 }
  0xe6   : > { %1243 = vst [vmem:[%s2852_s7 + $0x6a0] sm:$0xff] %v1242_v20  ;;  %v1244_v21 = vld [vmem:[%s2844_s6 + $0x1aa0] sm:$0xff] }
  0xe7   : > { %v1246_v22 = vld [vmem:[%s2844_s6 + $0x1ac0] sm:$0xff]  ;;  %1245 = vst [vmem:[%s2852_s7 + $0x6a8] sm:$0xff] %v1244_v21 }
  0xe8   : > { %v1248_v23 = vld [vmem:[%s2844_s6 + $0x1ae0] sm:$0xff]  ;;  %1247 = vst [vmem:[%s2852_s7 + $0x6b0] sm:$0xff] %v1246_v22 }
  0xe9   : > { %1249 = vst [vmem:[%s2852_s7 + $0x6b8] sm:$0xff] %v1248_v23  ;;  %v1250_v24 = vld [vmem:[%s2844_s6 + $0x1b00] sm:$0xff] }
  0xea   : > { %v1252_v25 = vld [vmem:[%s2844_s6 + $0x1b20] sm:$0xff]  ;;  %1251 = vst [vmem:[%s2852_s7 + $0x6c0] sm:$0xff] %v1250_v24 }
  0xeb   : > { %v1254_v26 = vld [vmem:[%s2844_s6 + $0x1b40] sm:$0xff]  ;;  %1253 = vst [vmem:[%s2852_s7 + $0x6c8] sm:$0xff] %v1252_v25 }
  0xec   : > { %1255 = vst [vmem:[%s2852_s7 + $0x6d0] sm:$0xff] %v1254_v26  ;;  %v1256_v27 = vld [vmem:[%s2844_s6 + $0x1b60] sm:$0xff] }
  0xed   : > { %v1258_v28 = vld [vmem:[%s2844_s6 + $0x1b80] sm:$0xff]  ;;  %1257 = vst [vmem:[%s2852_s7 + $0x6d8] sm:$0xff] %v1256_v27 }
  0xee   : > { %v1260_v29 = vld [vmem:[%s2844_s6 + $0x1ba0] sm:$0xff]  ;;  %1259 = vst [vmem:[%s2852_s7 + $0x6e0] sm:$0xff] %v1258_v28 }
  0xef   : > { %1261 = vst [vmem:[%s2852_s7 + $0x6e8] sm:$0xff] %v1260_v29  ;;  %v1262_v30 = vld [vmem:[%s2844_s6 + $0x1bc0] sm:$0xff] }
  0xf0   : > { %v1264_v31 = vld [vmem:[%s2844_s6 + $0x1be0] sm:$0xff]  ;;  %1263 = vst [vmem:[%s2852_s7 + $0x6f0] sm:$0xff] %v1262_v30 }
  0xf1   : > { %v1266_v32 = vld [vmem:[%s2844_s6 + $0x1c00] sm:$0xff]  ;;  %1265 = vst [vmem:[%s2852_s7 + $0x6f8] sm:$0xff] %v1264_v31 }
  0xf2   : > { %1267 = vst [vmem:[%s2852_s7 + $0x700] sm:$0xff] %v1266_v32  ;;  %v1268_v33 = vld [vmem:[%s2844_s6 + $0x1c20] sm:$0xff] }
  0xf3   : > { %v1270_v34 = vld [vmem:[%s2844_s6 + $0x1c40] sm:$0xff]  ;;  %1269 = vst [vmem:[%s2852_s7 + $0x708] sm:$0xff] %v1268_v33 }
  0xf4   : > { %v1272_v35 = vld [vmem:[%s2844_s6 + $0x1c60] sm:$0xff]  ;;  %1271 = vst [vmem:[%s2852_s7 + $0x710] sm:$0xff] %v1270_v34 }
  0xf5   : > { %1273 = vst [vmem:[%s2852_s7 + $0x718] sm:$0xff] %v1272_v35  ;;  %v1274_v36 = vld [vmem:[%s2844_s6 + $0x1c80] sm:$0xff] }
  0xf6   : > { %v1276_v37 = vld [vmem:[%s2844_s6 + $0x1ca0] sm:$0xff]  ;;  %1275 = vst [vmem:[%s2852_s7 + $0x720] sm:$0xff] %v1274_v36 }
  0xf7   : > { %v1278_v38 = vld [vmem:[%s2844_s6 + $0x1cc0] sm:$0xff]  ;;  %1277 = vst [vmem:[%s2852_s7 + $0x728] sm:$0xff] %v1276_v37 }
  0xf8   : > { %1279 = vst [vmem:[%s2852_s7 + $0x730] sm:$0xff] %v1278_v38  ;;  %v1280_v39 = vld [vmem:[%s2844_s6 + $0x1ce0] sm:$0xff] }
  0xf9   : > { %v1282_v40 = vld [vmem:[%s2844_s6 + $0x1d00] sm:$0xff]  ;;  %1281 = vst [vmem:[%s2852_s7 + $0x738] sm:$0xff] %v1280_v39 }
  0xfa   : > { %v1284_v41 = vld [vmem:[%s2844_s6 + $0x1d20] sm:$0xff]  ;;  %1283 = vst [vmem:[%s2852_s7 + $0x740] sm:$0xff] %v1282_v40 }
  0xfb   : > { %1285 = vst [vmem:[%s2852_s7 + $0x748] sm:$0xff] %v1284_v41  ;;  %v1286_v42 = vld [vmem:[%s2844_s6 + $0x1d40] sm:$0xff] }
  0xfc   : > { %v1288_v43 = vld [vmem:[%s2844_s6 + $0x1d60] sm:$0xff]  ;;  %1287 = vst [vmem:[%s2852_s7 + $0x750] sm:$0xff] %v1286_v42 }
  0xfd   : > { %v1290_v44 = vld [vmem:[%s2844_s6 + $0x1d80] sm:$0xff]  ;;  %1289 = vst [vmem:[%s2852_s7 + $0x758] sm:$0xff] %v1288_v43 }
  0xfe   : > { %1291 = vst [vmem:[%s2852_s7 + $0x760] sm:$0xff] %v1290_v44  ;;  %v1292_v45 = vld [vmem:[%s2844_s6 + $0x1da0] sm:$0xff] }
  0xff   : > { %v1294_v46 = vld [vmem:[%s2844_s6 + $0x1dc0] sm:$0xff]  ;;  %1293 = vst [vmem:[%s2852_s7 + $0x768] sm:$0xff] %v1292_v45 }
 0x100   : > { %v1296_v47 = vld [vmem:[%s2844_s6 + $0x1de0] sm:$0xff]  ;;  %1295 = vst [vmem:[%s2852_s7 + $0x770] sm:$0xff] %v1294_v46 }
 0x101   : > { %1297 = vst [vmem:[%s2852_s7 + $0x778] sm:$0xff] %v1296_v47  ;;  %v1298_v48 = vld [vmem:[%s2844_s6 + $0x1e00] sm:$0xff] }
 0x102   : > { %v1300_v49 = vld [vmem:[%s2844_s6 + $0x1e20] sm:$0xff]  ;;  %1299 = vst [vmem:[%s2852_s7 + $0x780] sm:$0xff] %v1298_v48 }
 0x103   : > { %v1302_v50 = vld [vmem:[%s2844_s6 + $0x1e40] sm:$0xff]  ;;  %1301 = vst [vmem:[%s2852_s7 + $0x788] sm:$0xff] %v1300_v49 }
 0x104   : > { %1303 = vst [vmem:[%s2852_s7 + $0x790] sm:$0xff] %v1302_v50  ;;  %v1304_v51 = vld [vmem:[%s2844_s6 + $0x1e60] sm:$0xff] }
 0x105   : > { %v1306_v52 = vld [vmem:[%s2844_s6 + $0x1e80] sm:$0xff]  ;;  %1305 = vst [vmem:[%s2852_s7 + $0x798] sm:$0xff] %v1304_v51 }
 0x106   : > { %v1308_v53 = vld [vmem:[%s2844_s6 + $0x1ea0] sm:$0xff]  ;;  %1307 = vst [vmem:[%s2852_s7 + $0x7a0] sm:$0xff] %v1306_v52 }
 0x107   : > { %1309 = vst [vmem:[%s2852_s7 + $0x7a8] sm:$0xff] %v1308_v53  ;;  %v1310_v54 = vld [vmem:[%s2844_s6 + $0x1ec0] sm:$0xff] }
 0x108   : > { %v1312_v55 = vld [vmem:[%s2844_s6 + $0x1ee0] sm:$0xff]  ;;  %1311 = vst [vmem:[%s2852_s7 + $0x7b0] sm:$0xff] %v1310_v54 }
 0x109   : > { %v1314_v56 = vld [vmem:[%s2844_s6 + $0x1f00] sm:$0xff]  ;;  %1313 = vst [vmem:[%s2852_s7 + $0x7b8] sm:$0xff] %v1312_v55 }
 0x10a   : > { %1315 = vst [vmem:[%s2852_s7 + $0x7c0] sm:$0xff] %v1314_v56  ;;  %v1316_v57 = vld [vmem:[%s2844_s6 + $0x1f20] sm:$0xff] }
 0x10b   : > { %v1318_v58 = vld [vmem:[%s2844_s6 + $0x1f40] sm:$0xff]  ;;  %1317 = vst [vmem:[%s2852_s7 + $0x7c8] sm:$0xff] %v1316_v57 }
 0x10c   : > { %v1320_v59 = vld [vmem:[%s2844_s6 + $0x1f60] sm:$0xff]  ;;  %1319 = vst [vmem:[%s2852_s7 + $0x7d0] sm:$0xff] %v1318_v58 }
 0x10d   : > { %1321 = vst [vmem:[%s2852_s7 + $0x7d8] sm:$0xff] %v1320_v59  ;;  %v1322_v60 = vld [vmem:[%s2844_s6 + $0x1f80] sm:$0xff] }
 0x10e   : > { %v1324_v61 = vld [vmem:[%s2844_s6 + $0x1fa0] sm:$0xff]  ;;  %1323 = vst [vmem:[%s2852_s7 + $0x7e0] sm:$0xff] %v1322_v60 }
 0x10f   : > { %v1326_v62 = vld [vmem:[%s2844_s6 + $0x1fc0] sm:$0xff]  ;;  %1325 = vst [vmem:[%s2852_s7 + $0x7e8] sm:$0xff] %v1324_v61 }
 0x110   : > { %1327 = vst [vmem:[%s2852_s7 + $0x7f0] sm:$0xff] %v1326_v62  ;;  %v1328_v63 = vld [vmem:[%s2844_s6 + $0x1fe0] sm:$0xff] }
 0x111   : > { %v1330_v0 = vld [vmem:[%s2844_s6 + $0x2000] sm:$0xff]  ;;  %1329 = vst [vmem:[%s2852_s7 + $0x7f8] sm:$0xff] %v1328_v63 }
 0x112   : > { %v1332_v1 = vld [vmem:[%s2844_s6 + $0x2020] sm:$0xff]  ;;  %1331 = vst [vmem:[%s2852_s7 + $0x800] sm:$0xff] %v1330_v0 }
 0x113   : > { %1333 = vst [vmem:[%s2852_s7 + $0x808] sm:$0xff] %v1332_v1  ;;  %v1334_v2 = vld [vmem:[%s2844_s6 + $0x2040] sm:$0xff] }
 0x114   : > { %v1336_v3 = vld [vmem:[%s2844_s6 + $0x2060] sm:$0xff]  ;;  %1335 = vst [vmem:[%s2852_s7 + $0x810] sm:$0xff] %v1334_v2 }
 0x115   : > { %v1338_v4 = vld [vmem:[%s2844_s6 + $0x2080] sm:$0xff]  ;;  %1337 = vst [vmem:[%s2852_s7 + $0x818] sm:$0xff] %v1336_v3 }
 0x116   : > { %1339 = vst [vmem:[%s2852_s7 + $0x820] sm:$0xff] %v1338_v4  ;;  %v1340_v5 = vld [vmem:[%s2844_s6 + $0x20a0] sm:$0xff] }
 0x117   : > { %v1342_v6 = vld [vmem:[%s2844_s6 + $0x20c0] sm:$0xff]  ;;  %1341 = vst [vmem:[%s2852_s7 + $0x828] sm:$0xff] %v1340_v5 }
 0x118   : > { %v1344_v7 = vld [vmem:[%s2844_s6 + $0x20e0] sm:$0xff]  ;;  %1343 = vst [vmem:[%s2852_s7 + $0x830] sm:$0xff] %v1342_v6 }
 0x119   : > { %1345 = vst [vmem:[%s2852_s7 + $0x838] sm:$0xff] %v1344_v7  ;;  %v1346_v8 = vld [vmem:[%s2844_s6 + $0x2100] sm:$0xff] }
 0x11a   : > { %v1348_v9 = vld [vmem:[%s2844_s6 + $0x2120] sm:$0xff]  ;;  %1347 = vst [vmem:[%s2852_s7 + $0x840] sm:$0xff] %v1346_v8 }
 0x11b   : > { %v1350_v10 = vld [vmem:[%s2844_s6 + $0x2140] sm:$0xff]  ;;  %1349 = vst [vmem:[%s2852_s7 + $0x848] sm:$0xff] %v1348_v9 }
 0x11c   : > { %1351 = vst [vmem:[%s2852_s7 + $0x850] sm:$0xff] %v1350_v10  ;;  %v1352_v11 = vld [vmem:[%s2844_s6 + $0x2160] sm:$0xff] }
 0x11d   : > { %v1354_v12 = vld [vmem:[%s2844_s6 + $0x2180] sm:$0xff]  ;;  %1353 = vst [vmem:[%s2852_s7 + $0x858] sm:$0xff] %v1352_v11 }
 0x11e   : > { %v1356_v13 = vld [vmem:[%s2844_s6 + $0x21a0] sm:$0xff]  ;;  %1355 = vst [vmem:[%s2852_s7 + $0x860] sm:$0xff] %v1354_v12 }
 0x11f   : > { %1357 = vst [vmem:[%s2852_s7 + $0x868] sm:$0xff] %v1356_v13  ;;  %v1358_v14 = vld [vmem:[%s2844_s6 + $0x21c0] sm:$0xff] }
 0x120   : > { %v1360_v15 = vld [vmem:[%s2844_s6 + $0x21e0] sm:$0xff]  ;;  %1359 = vst [vmem:[%s2852_s7 + $0x870] sm:$0xff] %v1358_v14 }
 0x121   : > { %v1362_v16 = vld [vmem:[%s2844_s6 + $0x2200] sm:$0xff]  ;;  %1361 = vst [vmem:[%s2852_s7 + $0x878] sm:$0xff] %v1360_v15 }
 0x122   : > { %1363 = vst [vmem:[%s2852_s7 + $0x880] sm:$0xff] %v1362_v16  ;;  %v1364_v17 = vld [vmem:[%s2844_s6 + $0x2220] sm:$0xff] }
 0x123   : > { %v1366_v18 = vld [vmem:[%s2844_s6 + $0x2240] sm:$0xff]  ;;  %1365 = vst [vmem:[%s2852_s7 + $0x888] sm:$0xff] %v1364_v17 }
 0x124   : > { %v1368_v19 = vld [vmem:[%s2844_s6 + $0x2260] sm:$0xff]  ;;  %1367 = vst [vmem:[%s2852_s7 + $0x890] sm:$0xff] %v1366_v18 }
 0x125   : > { %1369 = vst [vmem:[%s2852_s7 + $0x898] sm:$0xff] %v1368_v19  ;;  %v1370_v20 = vld [vmem:[%s2844_s6 + $0x2280] sm:$0xff] }
 0x126   : > { %v1372_v21 = vld [vmem:[%s2844_s6 + $0x22a0] sm:$0xff]  ;;  %1371 = vst [vmem:[%s2852_s7 + $0x8a0] sm:$0xff] %v1370_v20 }
 0x127   : > { %v1374_v22 = vld [vmem:[%s2844_s6 + $0x22c0] sm:$0xff]  ;;  %1373 = vst [vmem:[%s2852_s7 + $0x8a8] sm:$0xff] %v1372_v21 }
 0x128   : > { %1375 = vst [vmem:[%s2852_s7 + $0x8b0] sm:$0xff] %v1374_v22  ;;  %v1376_v23 = vld [vmem:[%s2844_s6 + $0x22e0] sm:$0xff] }
 0x129   : > { %v1378_v24 = vld [vmem:[%s2844_s6 + $0x2300] sm:$0xff]  ;;  %1377 = vst [vmem:[%s2852_s7 + $0x8b8] sm:$0xff] %v1376_v23 }
 0x12a   : > { %v1380_v25 = vld [vmem:[%s2844_s6 + $0x2320] sm:$0xff]  ;;  %1379 = vst [vmem:[%s2852_s7 + $0x8c0] sm:$0xff] %v1378_v24 }
 0x12b   : > { %1381 = vst [vmem:[%s2852_s7 + $0x8c8] sm:$0xff] %v1380_v25  ;;  %v1382_v26 = vld [vmem:[%s2844_s6 + $0x2340] sm:$0xff] }
 0x12c   : > { %v1384_v27 = vld [vmem:[%s2844_s6 + $0x2360] sm:$0xff]  ;;  %1383 = vst [vmem:[%s2852_s7 + $0x8d0] sm:$0xff] %v1382_v26 }
 0x12d   : > { %v1386_v28 = vld [vmem:[%s2844_s6 + $0x2380] sm:$0xff]  ;;  %1385 = vst [vmem:[%s2852_s7 + $0x8d8] sm:$0xff] %v1384_v27 }
 0x12e   : > { %1387 = vst [vmem:[%s2852_s7 + $0x8e0] sm:$0xff] %v1386_v28  ;;  %v1388_v29 = vld [vmem:[%s2844_s6 + $0x23a0] sm:$0xff] }
 0x12f   : > { %v1390_v30 = vld [vmem:[%s2844_s6 + $0x23c0] sm:$0xff]  ;;  %1389 = vst [vmem:[%s2852_s7 + $0x8e8] sm:$0xff] %v1388_v29 }
 0x130   : > { %v1392_v31 = vld [vmem:[%s2844_s6 + $0x23e0] sm:$0xff]  ;;  %1391 = vst [vmem:[%s2852_s7 + $0x8f0] sm:$0xff] %v1390_v30 }
 0x131   : > { %1393 = vst [vmem:[%s2852_s7 + $0x8f8] sm:$0xff] %v1392_v31 }
 0x132 PF: > { %p2485_p6 = scmp.ge.s32.totalorder %s2769_s22, 1  ;;  %p1416_p7 = scmp.lt.s32.totalorder %s2769_s22, 5 }
 0x134   : > { %p1417_p8 = pnand %p2485_p6, %p1416_p7 }
 0x135   : > { %s1423_s8 = sand.u32 (!%p1417_p8), 1, %s2753_s18   ;;  %v1491_v32 = vld [vmem:[%s3797_s0 + $0x8] sm:$0xff] (!%p1417_p8)  ;;  %v1493_v33 = vld [vmem:[%s3797_s0 + $0x18] sm:$0xff] (!%p1417_p8)  ;;  %p1472_p9 = scmp.lt.s32.totalorder (!%p1417_p8), %s2761_s20, 3 }
 0x136   : > { %1420 = sbr.rel (%p1417_p8) target bundleno = 700 (0x2bc), region = 74  ;;  %v1509_v34 = vmax.f32 (!%p1417_p8), %v1491_v32, 0.0  ;;  %v1511_v35 = vmax.f32 (!%p1417_p8), %v1493_v33, 0.0 }
 0x137   : > { %s2690_s13 = smul.u32 (!%p1417_p8), 2304, %s1423_s8 }
 0x138   : > { %v1527_v36 = vpack.c.bf16 (!%p1417_p8), %v1509_v34, %v1509_v34  ;;  %v1529_v37 = vpack.c.bf16 (!%p1417_p8), %v1511_v35, %v1511_v35 }
 0x139   : > { %s3433_s14 = scalar_lea.vmem (!%p1417_p8), [#allocation2], %s2690_s13 }
 0x13a   : > { %v1560_v38 = vld [vmem:[%s3433_s14 + $0x80] sm:$0xff] (!%p1417_p8)  ;;  %v1561_v39 = vld [vmem:[%s3433_s14 + $0x88] sm:$0xff] (!%p1417_p8)  ;;  %2008 = vmatprep.mubr.bf16.mxu0 (!%p1417_p8), %v1527_v36  ;;  %2048 = vmatprep.mubr.bf16.mxu1 (!%p1417_p8), %v1529_v37  ;;  %v1562_v49 = vld [vmem:[%s3433_s14 + $0x90] sm:$0xff] (!%p1417_p8) }
 0x13b   : > { %v1592_v40 = vld [vmem:[%s3433_s14 + $0x180] sm:$0xff] (!%p1417_p8)  ;;  %v1840_v41 = vpack.c.bf16 (!%p1417_p8), %v1561_v39, %v1560_v38  ;;  %v1593_v42 = vld [vmem:[%s3433_s14 + $0x188] sm:$0xff] (!%p1417_p8)  ;;  %v1563_v51 = vld [vmem:[%s3433_s14 + $0x98] sm:$0xff] (!%p1417_p8) }
 0x13c   : > { %v1544_v43 = vld [vmem:[%s3433_s14] sm:$0xff] (!%p1417_p8)  ;;  %v1545_v44 = vld [vmem:[%s3433_s14 + $0x8] sm:$0xff] (!%p1417_p8)  ;;  %v1856_v45 = vpack.c.bf16 (!%p1417_p8), %v1593_v42, %v1592_v40  ;;  %v1594_v52 = vld [vmem:[%s3433_s14 + $0x190] sm:$0xff] (!%p1417_p8)  ;;  %v1841_v54 = vpack.c.bf16 (!%p1417_p8), %v1563_v51, %v1562_v49 }
 0x13d   : > { %v1832_v46 = vpack.c.bf16 %v1545_v44, %v1544_v43  ;;  %v1576_v47 = vld [vmem:[%s3433_s14 + $0x100] sm:$0xff]  ;;  %v1577_v48 = vld [vmem:[%s3433_s14 + $0x108] sm:$0xff]  ;;  %2491 = vmatprep.subr.bf16.mxu0 %v1840_v41  ;;  %v1595_v53 = vld [vmem:[%s3433_s14 + $0x198] sm:$0xff]  ;;  %s3810_s20 = smov (!%p1472_p9, %s2761_s20), 3 }
 0x13e   : > { %v1848_v50 = vpack.c.bf16 %v1577_v48, %v1576_v47  ;;  %2513 = vmatprep.subr.bf16.mxu1 %v1856_v45  ;;  %v1857_v55 = vpack.c.bf16 %v1595_v53, %v1594_v52  ;;  %v1546_v56 = vld [vmem:[%s3433_s14 + $0x10] sm:$0xff]  ;;  %v1547_v57 = vld [vmem:[%s3433_s14 + $0x18] sm:$0xff]  ;;  %v1564_v61 = vld [vmem:[%s3433_s14 + $0xa0] sm:$0xff]  ;;  %s1474_s9 = scalar_lea.vmem %s3799_s2, %s3810_s20  ;;  %s1477_s12 = scalar_lea.vmem %s3800_s3, %s3810_s20 }
 0x13f   : > { %2492 = vmatpush3.bf16.msra.mxu0 %v1832_v46  ;;  %v1578_v58 = vld [vmem:[%s3433_s14 + $0x110] sm:$0xff]  ;;  %v1833_v59 = vpack.c.bf16 %v1547_v57, %v1546_v56  ;;  %v1579_v60 = vld [vmem:[%s3433_s14 + $0x118] sm:$0xff]  ;;  %v1565_v62 = vld [vmem:[%s3433_s14 + $0xa8] sm:$0xff]  ;;  %s2486_s13 = sshll.u32 %s3810_s20, 3 }
 0x140   : > { %2514 = vmatpush3.bf16.msra.mxu1 %v1848_v50  ;;  %2493 = vmatprep.subr.bf16.mxu0 %v1841_v54  ;;  %v1849_v63 = vpack.c.bf16 %v1579_v60, %v1578_v58  ;;  %v1842_v0 = vpack.c.bf16 %v1565_v62, %v1564_v61  ;;  %v1596_v1 = vld [vmem:[%s3433_s14 + $0x1a0] sm:$0xff]  ;;  %v1597_v2 = vld [vmem:[%s3433_s14 + $0x1a8] sm:$0xff]  ;;  %v1566_v9 = vld [vmem:[%s3433_s14 + $0xb0] sm:$0xff]  ;;  %s1488_s17 = scalar_lea.vmem %s3802_s5, %s2486_s13 }
 0x141   : > { %2515 = vmatprep.subr.bf16.mxu1 %v1857_v55  ;;  %v1548_v3 = vld [vmem:[%s3433_s14 + $0x20] sm:$0xff]  ;;  %v1858_v4 = vpack.c.bf16 %v1597_v2, %v1596_v1  ;;  %v1549_v5 = vld [vmem:[%s3433_s14 + $0x28] sm:$0xff]  ;;  %v1567_v10 = vld [vmem:[%s3433_s14 + $0xb8] sm:$0xff] }
 0x142   : > { %v1580_v6 = vld [vmem:[%s3433_s14 + $0x120] sm:$0xff]  ;;  %v1581_v7 = vld [vmem:[%s3433_s14 + $0x128] sm:$0xff]  ;;  %v1834_v8 = vpack.c.bf16 %v1549_v5, %v1548_v3  ;;  %v1598_v11 = vld [vmem:[%s3433_s14 + $0x1b0] sm:$0xff]  ;;  %v1843_v13 = vpack.c.bf16 %v1567_v10, %v1566_v9 }
 0x143   : > { %2494 = vmatpush3.bf16.msra.mxu0 %v1833_v59  ;;  %v1850_v12 = vpack.c.bf16 %v1581_v7, %v1580_v6  ;;  %v1599_v14 = vld [vmem:[%s3433_s14 + $0x1b8] sm:$0xff]  ;;  %v1550_v15 = vld [vmem:[%s3433_s14 + $0x30] sm:$0xff]  ;;  %v1568_v20 = vld [vmem:[%s3433_s14 + $0xc0] sm:$0xff] }
 0x144   : > { %2516 = vmatpush3.bf16.msra.mxu1 %v1849_v63  ;;  %2495 = vmatprep.subr.bf16.mxu0 %v1842_v0  ;;  %v1551_v16 = vld [vmem:[%s3433_s14 + $0x38] sm:$0xff]  ;;  %v1859_v17 = vpack.c.bf16 %v1599_v14, %v1598_v11  ;;  %v1582_v18 = vld [vmem:[%s3433_s14 + $0x130] sm:$0xff]  ;;  %v1569_v21 = vld [vmem:[%s3433_s14 + $0xc8] sm:$0xff] }
 0x145   : > { %2517 = vmatprep.subr.bf16.mxu1 %v1858_v4  ;;  %v1583_v19 = vld [vmem:[%s3433_s14 + $0x138] sm:$0xff]  ;;  %v1600_v22 = vld [vmem:[%s3433_s14 + $0x1c0] sm:$0xff]  ;;  %v1601_v23 = vld [vmem:[%s3433_s14 + $0x1c8] sm:$0xff]  ;;  %v1835_v24 = vpack.c.bf16 %v1551_v16, %v1550_v15  ;;  %v1844_v26 = vpack.c.bf16 %v1569_v21, %v1568_v20 }
 0x146   : > { %v1851_v25 = vpack.c.bf16 %v1583_v19, %v1582_v18  ;;  %v1552_v27 = vld [vmem:[%s3433_s14 + $0x40] sm:$0xff]  ;;  %v1553_v28 = vld [vmem:[%s3433_s14 + $0x48] sm:$0xff]  ;;  %v1860_v30 = vpack.c.bf16 %v1601_v23, %v1600_v22  ;;  %v1570_v32 = vld [vmem:[%s3433_s14 + $0xd0] sm:$0xff] }
 0x147   : > { %2496 = vmatpush3.bf16.msra.mxu0 %v1834_v8  ;;  %v1584_v29 = vld [vmem:[%s3433_s14 + $0x140] sm:$0xff]  ;;  %v1585_v31 = vld [vmem:[%s3433_s14 + $0x148] sm:$0xff]  ;;  %v1571_v33 = vld [vmem:[%s3433_s14 + $0xd8] sm:$0xff]  ;;  %v1836_v36 = vpack.c.bf16 %v1553_v28, %v1552_v27 }
 0x148   : > { %2518 = vmatpush3.bf16.msra.mxu1 %v1850_v12  ;;  %2497 = vmatprep.subr.bf16.mxu0 %v1843_v13  ;;  %v1602_v34 = vld [vmem:[%s3433_s14 + $0x1d0] sm:$0xff]  ;;  %v1603_v35 = vld [vmem:[%s3433_s14 + $0x1d8] sm:$0xff]  ;;  %v1852_v37 = vpack.c.bf16 %v1585_v31, %v1584_v29  ;;  %v1845_v38 = vpack.c.bf16 %v1571_v33, %v1570_v32  ;;  %v1572_v44 = vld [vmem:[%s3433_s14 + $0xe0] sm:$0xff] }
 0x149   : > { %2519 = vmatprep.subr.bf16.mxu1 %v1859_v17  ;;  %v1554_v39 = vld [vmem:[%s3433_s14 + $0x50] sm:$0xff]  ;;  %v1555_v40 = vld [vmem:[%s3433_s14 + $0x58] sm:$0xff]  ;;  %v1861_v42 = vpack.c.bf16 %v1603_v35, %v1602_v34  ;;  %v1573_v45 = vld [vmem:[%s3433_s14 + $0xe8] sm:$0xff] }
 0x14a   : > { %v1586_v41 = vld [vmem:[%s3433_s14 + $0x150] sm:$0xff]  ;;  %v1587_v43 = vld [vmem:[%s3433_s14 + $0x158] sm:$0xff]  ;;  %v1604_v46 = vld [vmem:[%s3433_s14 + $0x1e0] sm:$0xff]  ;;  %v1837_v48 = vpack.c.bf16 %v1555_v40, %v1554_v39  ;;  %v1846_v50 = vpack.c.bf16 %v1573_v45, %v1572_v44 }
 0x14b   : > { %2498 = vmatpush3.bf16.msra.mxu0 %v1835_v24  ;;  %v1605_v47 = vld [vmem:[%s3433_s14 + $0x1e8] sm:$0xff]  ;;  %v1853_v49 = vpack.c.bf16 %v1587_v43, %v1586_v41  ;;  %v1556_v51 = vld [vmem:[%s3433_s14 + $0x60] sm:$0xff]  ;;  %v1574_v56 = vld [vmem:[%s3433_s14 + $0xf0] sm:$0xff] }
 0x14c   : > { %2520 = vmatpush3.bf16.msra.mxu1 %v1851_v25  ;;  %2499 = vmatprep.subr.bf16.mxu0 %v1844_v26  ;;  %v1557_v52 = vld [vmem:[%s3433_s14 + $0x68] sm:$0xff]  ;;  %v1588_v53 = vld [vmem:[%s3433_s14 + $0x160] sm:$0xff]  ;;  %v1862_v54 = vpack.c.bf16 %v1605_v47, %v1604_v46  ;;  %v1575_v57 = vld [vmem:[%s3433_s14 + $0xf8] sm:$0xff] }
 0x14d   : > { %2521 = vmatprep.subr.bf16.mxu1 %v1860_v30  ;;  %v1589_v55 = vld [vmem:[%s3433_s14 + $0x168] sm:$0xff]  ;;  %v1606_v58 = vld [vmem:[%s3433_s14 + $0x1f0] sm:$0xff]  ;;  %v1607_v59 = vld [vmem:[%s3433_s14 + $0x1f8] sm:$0xff]  ;;  %v1838_v60 = vpack.c.bf16 %v1557_v52, %v1556_v51  ;;  %v1847_v0 = vpack.c.bf16 %v1575_v57, %v1574_v56 }
 0x14e   : > { %v1490_v61 = vld [vmem:[%s3797_s0] sm:$0xff]  ;;  %v1492_v62 = vld [vmem:[%s3797_s0 + $0x10] sm:$0xff]  ;;  %v1854_v63 = vpack.c.bf16 %v1589_v55, %v1588_v53  ;;  %v1559_v2 = vld [vmem:[%s3433_s14 + $0x78] sm:$0xff]  ;;  %v1863_v4 = vpack.c.bf16 %v1607_v59, %v1606_v58 }
 0x14f   : > { %2500 = vmatpush3.bf16.msra.mxu0 %v1836_v36  ;;  %v1558_v1 = vld [vmem:[%s3433_s14 + $0x70] sm:$0xff]  ;;  %v1591_v5 = vld [vmem:[%s3433_s14 + $0x178] sm:$0xff]  ;;  %v1624_v6 = vld [vmem:[%s3433_s14 + $0x280] sm:$0xff]  ;;  %v1508_v8 = vmax.f32 %v1490_v61, 0.0  ;;  %v1510_v13 = vmax.f32 %v1492_v62, 0.0 }
 0x150   : > { %2522 = vmatpush3.bf16.msra.mxu1 %v1852_v37  ;;  %2501 = vmatprep.subr.bf16.mxu0 %v1845_v38  ;;  %v1590_v3 = vld [vmem:[%s3433_s14 + $0x170] sm:$0xff]  ;;  %v1625_v7 = vld [vmem:[%s3433_s14 + $0x288] sm:$0xff]  ;;  %v1656_v9 = vld [vmem:[%s3433_s14 + $0x380] sm:$0xff]  ;;  %v1839_v12 = vpack.c.bf16 %v1559_v2, %v1558_v1 }
 0x151   : > { %2523 = vmatprep.subr.bf16.mxu1 %v1861_v42  ;;  %v1657_v10 = vld [vmem:[%s3433_s14 + $0x388] sm:$0xff]  ;;  %v1497_v14 = vld [vmem:[%s3797_s0 + $0x38] sm:$0xff]  ;;  %v1855_v15 = vpack.c.bf16 %v1591_v5, %v1590_v3  ;;  %v1872_v16 = vpack.c.bf16 %v1625_v7, %v1624_v6  ;;  %v1608_v17 = vld [vmem:[%s3433_s14 + $0x200] sm:$0xff]  ;;  %v1526_v25 = vpack.c.bf16 %v1508_v8, %v1508_v8  ;;  %v1528_v29 = vpack.c.bf16 %v1510_v13, %v1510_v13 }
 0x152   : > { %v1495_v11 = vld [vmem:[%s3797_s0 + $0x28] sm:$0xff]  ;;  %v1640_v19 = vld [vmem:[%s3433_s14 + $0x300] sm:$0xff]  ;;  %v1888_v20 = vpack.c.bf16 %v1657_v10, %v1656_v9  ;;  %v1626_v22 = vld [vmem:[%s3433_s14 + $0x290] sm:$0xff]  ;;  %v1515_v28 = vmax.f32 %v1497_v14, 0.0 }
 0x153   : > { %2502 = vmatpush3.bf16.msra.mxu0 %v1837_v48  ;;  %v1609_v18 = vld [vmem:[%s3433_s14 + $0x208] sm:$0xff]  ;;  %v1627_v23 = vld [vmem:[%s3433_s14 + $0x298] sm:$0xff]  ;;  %v1513_v24 = vmax.f32 %v1495_v11, 0.0  ;;  %v1658_v26 = vld [vmem:[%s3433_s14 + $0x390] sm:$0xff] }
 0x154   : > { %2524 = vmatpush3.bf16.msra.mxu1 %v1853_v49  ;;  %2503 = vmatprep.subr.bf16.mxu0 %v1846_v50  ;;  %v1641_v21 = vld [vmem:[%s3433_s14 + $0x308] sm:$0xff]  ;;  %v1659_v27 = vld [vmem:[%s3433_s14 + $0x398] sm:$0xff]  ;;  %v1864_v30 = vpack.c.bf16 %v1609_v18, %v1608_v17  ;;  %v1873_v32 = vpack.c.bf16 %v1627_v23, %v1626_v22  ;;  %v1610_v33 = vld [vmem:[%s3433_s14 + $0x210] sm:$0xff]  ;;  %v1533_v43 = vpack.c.bf16 %v1515_v28, %v1515_v28 }
 0x155   : > { %2525 = vmatprep.subr.bf16.mxu1 %v1862_v54  ;;  %v1880_v31 = vpack.c.bf16 %v1641_v21, %v1640_v19  ;;  %v1611_v34 = vld [vmem:[%s3433_s14 + $0x218] sm:$0xff]  ;;  %v1642_v35 = vld [vmem:[%s3433_s14 + $0x310] sm:$0xff]  ;;  %v1889_v36 = vpack.c.bf16 %v1659_v27, %v1658_v26  ;;  %v1628_v38 = vld [vmem:[%s3433_s14 + $0x2a0] sm:$0xff]  ;;  %v1531_v40 = vpack.c.bf16 %v1513_v24, %v1513_v24 }
 0x156   : > { %v1643_v37 = vld [vmem:[%s3433_s14 + $0x318] sm:$0xff]  ;;  %v1629_v39 = vld [vmem:[%s3433_s14 + $0x2a8] sm:$0xff]  ;;  %v1660_v41 = vld [vmem:[%s3433_s14 + $0x3a0] sm:$0xff]  ;;  %v1865_v44 = vpack.c.bf16 %v1611_v34, %v1610_v33 }
 0x157   : > { %2504 = vmatpush3.bf16.msra.mxu0 %v1838_v60  ;;  %v1661_v42 = vld [vmem:[%s3433_s14 + $0x3a8] sm:$0xff]  ;;  %v1881_v45 = vpack.c.bf16 %v1643_v37, %v1642_v35  ;;  %v1874_v46 = vpack.c.bf16 %v1629_v39, %v1628_v38  ;;  %v1612_v47 = vld [vmem:[%s3433_s14 + $0x220] sm:$0xff]  ;;  %v1630_v52 = vld [vmem:[%s3433_s14 + $0x2b0] sm:$0xff] }
 0x158   : > { %2526 = vmatpush3.bf16.msra.mxu1 %v1854_v63  ;;  %2505 = vmatprep.subr.bf16.mxu0 %v1847_v0  ;;  %v1613_v48 = vld [vmem:[%s3433_s14 + $0x228] sm:$0xff]  ;;  %v1644_v49 = vld [vmem:[%s3433_s14 + $0x320] sm:$0xff]  ;;  %v1890_v50 = vpack.c.bf16 %v1661_v42, %v1660_v41  ;;  %v1631_v53 = vld [vmem:[%s3433_s14 + $0x2b8] sm:$0xff] }
 0x159   : > { %2527 = vmatprep.subr.bf16.mxu1 %v1863_v4  ;;  %v1645_v51 = vld [vmem:[%s3433_s14 + $0x328] sm:$0xff]  ;;  %v1662_v54 = vld [vmem:[%s3433_s14 + $0x3b0] sm:$0xff]  ;;  %v1663_v55 = vld [vmem:[%s3433_s14 + $0x3b8] sm:$0xff]  ;;  %v1866_v56 = vpack.c.bf16 %v1613_v48, %v1612_v47  ;;  %v1875_v58 = vpack.c.bf16 %v1631_v53, %v1630_v52 }
 0x15a   : > { %v1882_v57 = vpack.c.bf16 %v1645_v51, %v1644_v49  ;;  %v1614_v59 = vld [vmem:[%s3433_s14 + $0x230] sm:$0xff]  ;;  %v1615_v60 = vld [vmem:[%s3433_s14 + $0x238] sm:$0xff]  ;;  %v1891_v62 = vpack.c.bf16 %v1663_v55, %v1662_v54  ;;  %v1632_v0 = vld [vmem:[%s3433_s14 + $0x2c0] sm:$0xff] }
 0x15b   : > { %2506 = vmatpush3.bf16.msra.mxu0 %v1839_v12  ;;  %v1646_v61 = vld [vmem:[%s3433_s14 + $0x330] sm:$0xff]  ;;  %v1647_v63 = vld [vmem:[%s3433_s14 + $0x338] sm:$0xff]  ;;  %v1633_v1 = vld [vmem:[%s3433_s14 + $0x2c8] sm:$0xff]  ;;  %v1867_v4 = vpack.c.bf16 %v1615_v60, %v1614_v59 }
 0x15c   : > { %2528 = vmatpush3.bf16.msra.mxu1 %v1855_v15  ;;  %2535 = vmatprep.subr.bf16.mxu0 %v1872_v16  ;;  %v1664_v2 = vld [vmem:[%s3433_s14 + $0x3c0] sm:$0xff]  ;;  %v1665_v3 = vld [vmem:[%s3433_s14 + $0x3c8] sm:$0xff]  ;;  %v1883_v5 = vpack.c.bf16 %v1647_v63, %v1646_v61  ;;  %v1876_v6 = vpack.c.bf16 %v1633_v1, %v1632_v0  ;;  %v1634_v12 = vld [vmem:[%s3433_s14 + $0x2d0] sm:$0xff] }
 0x15d   : > { %2557 = vmatprep.subr.bf16.mxu1 %v1888_v20  ;;  %v1616_v7 = vld [vmem:[%s3433_s14 + $0x240] sm:$0xff]  ;;  %v1617_v8 = vld [vmem:[%s3433_s14 + $0x248] sm:$0xff]  ;;  %v1892_v10 = vpack.c.bf16 %v1665_v3, %v1664_v2  ;;  %v1635_v13 = vld [vmem:[%s3433_s14 + $0x2d8] sm:$0xff] }
 0x15e   : > { %2009 = vmatmul.mubr.bf16.vlgmr.msra.gmra.mrb[0].mxu0 %v1526_v25  ;;  %v1648_v9 = vld [vmem:[%s3433_s14 + $0x340] sm:$0xff]  ;;  %v1649_v11 = vld [vmem:[%s3433_s14 + $0x348] sm:$0xff]  ;;  %v1666_v14 = vld [vmem:[%s3433_s14 + $0x3d0] sm:$0xff]  ;;  %v1868_v16 = vpack.c.bf16 %v1617_v8, %v1616_v7  ;;  %v1877_v18 = vpack.c.bf16 %v1635_v13, %v1634_v12 }
 0x15f   : > { %2049 = vmatmul.mubr.bf16.vlgmr.msra.gmra.mrb[0].mxu1 %v1528_v29  ;;  %2536 = vmatpush3.bf16.msra.mxu0 %v1864_v30  ;;  %v1667_v15 = vld [vmem:[%s3433_s14 + $0x3d8] sm:$0xff]  ;;  %v1884_v17 = vpack.c.bf16 %v1649_v11, %v1648_v9  ;;  %v1618_v19 = vld [vmem:[%s3433_s14 + $0x250] sm:$0xff]  ;;  %v1636_v24 = vld [vmem:[%s3433_s14 + $0x2e0] sm:$0xff] }
 0x160   : > { %2558 = vmatpush3.bf16.msra.mxu1 %v1880_v31  ;;  %2537 = vmatprep.subr.bf16.mxu0 %v1873_v32  ;;  %v1619_v20 = vld [vmem:[%s3433_s14 + $0x258] sm:$0xff]  ;;  %v1650_v21 = vld [vmem:[%s3433_s14 + $0x350] sm:$0xff]  ;;  %v1893_v22 = vpack.c.bf16 %v1667_v15, %v1666_v14  ;;  %v1637_v25 = vld [vmem:[%s3433_s14 + $0x2e8] sm:$0xff] }
 0x161   : > { %2559 = vmatprep.subr.bf16.mxu1 %v1889_v36  ;;  %2088 = vmatprep.mubr.bf16.mxu0 %v1531_v40  ;;  %v1651_v23 = vld [vmem:[%s3433_s14 + $0x358] sm:$0xff]  ;;  %v1668_v26 = vld [vmem:[%s3433_s14 + $0x3e0] sm:$0xff]  ;;  %v1669_v27 = vld [vmem:[%s3433_s14 + $0x3e8] sm:$0xff]  ;;  %v1869_v28 = vpack.c.bf16 %v1619_v20, %v1618_v19  ;;  %v1878_v30 = vpack.c.bf16 %v1637_v25, %v1636_v24 }
 0x162   : > { %2128 = vmatprep.mubr.bf16.mxu1 %v1533_v43  ;;  %v1885_v29 = vpack.c.bf16 %v1651_v23, %v1650_v21  ;;  %v1620_v31 = vld [vmem:[%s3433_s14 + $0x260] sm:$0xff]  ;;  %v1621_v32 = vld [vmem:[%s3433_s14 + $0x268] sm:$0xff]  ;;  %v1894_v34 = vpack.c.bf16 %v1669_v27, %v1668_v26  ;;  %v1638_v36 = vld [vmem:[%s3433_s14 + $0x2f0] sm:$0xff] }
 0x163   : > { %2538 = vmatpush3.bf16.msra.mxu0 %v1865_v44  ;;  %v1652_v33 = vld [vmem:[%s3433_s14 + $0x360] sm:$0xff]  ;;  %v1653_v35 = vld [vmem:[%s3433_s14 + $0x368] sm:$0xff]  ;;  %v1639_v37 = vld [vmem:[%s3433_s14 + $0x2f8] sm:$0xff]  ;;  %v1870_v40 = vpack.c.bf16 %v1621_v32, %v1620_v31 }
 0x164   : > { %2560 = vmatpush3.bf16.msra.mxu1 %v1881_v45  ;;  %2539 = vmatprep.subr.bf16.mxu0 %v1874_v46  ;;  %v1670_v38 = vld [vmem:[%s3433_s14 + $0x3f0] sm:$0xff]  ;;  %v1671_v39 = vld [vmem:[%s3433_s14 + $0x3f8] sm:$0xff]  ;;  %v1494_v41 = vld [vmem:[%s3797_s0 + $0x20] sm:$0xff]  ;;  %v1886_v43 = vpack.c.bf16 %v1653_v35, %v1652_v33  ;;  %v1879_v44 = vpack.c.bf16 %v1639_v37, %v1638_v36 }
 0x165   : > { %2561 = vmatprep.subr.bf16.mxu1 %v1890_v50  ;;  %v1496_v42 = vld [vmem:[%s3797_s0 + $0x30] sm:$0xff]  ;;  %v1623_v46 = vld [vmem:[%s3433_s14 + $0x278] sm:$0xff]  ;;  %v1895_v48 = vpack.c.bf16 %v1671_v39, %v1670_v38  ;;  %v1688_v50 = vld [vmem:[%s3433_s14 + $0x480] sm:$0xff]  ;;  %v1512_v52 = vmax.f32 %v1494_v41, 0.0 }
 0x166   : > { %v1622_v45 = vld [vmem:[%s3433_s14 + $0x270] sm:$0xff]  ;;  %v1655_v49 = vld [vmem:[%s3433_s14 + $0x378] sm:$0xff]  ;;  %v1689_v51 = vld [vmem:[%s3433_s14 + $0x488] sm:$0xff] }
 0x167   : > { %2540 = vmatpush3.bf16.msra.mxu0 %v1866_v56  ;;  %v1654_v47 = vld [vmem:[%s3433_s14 + $0x370] sm:$0xff]  ;;  %v1720_v53 = vld [vmem:[%s3433_s14 + $0x580] sm:$0xff]  ;;  %v1721_v54 = vld [vmem:[%s3433_s14 + $0x588] sm:$0xff]  ;;  %v1871_v56 = vpack.c.bf16 %v1623_v46, %v1622_v45  ;;  %v1904_v60 = vpack.c.bf16 %v1689_v51, %v1688_v50 }
 0x168   : > { %2562 = vmatpush3.bf16.msra.mxu1 %v1882_v57  ;;  %2541 = vmatprep.subr.bf16.mxu0 %v1875_v58  ;;  %v1499_v55 = vld [vmem:[%s3797_s0 + $0x48] sm:$0xff]  ;;  %v1514_v57 = vmax.f32 %v1496_v42, 0.0  ;;  %v1501_v58 = vld [vmem:[%s3797_s0 + $0x58] sm:$0xff]  ;;  %v1887_v59 = vpack.c.bf16 %v1655_v49, %v1654_v47  ;;  %v1672_v61 = vld [vmem:[%s3433_s14 + $0x400] sm:$0xff]  ;;  %v1920_v0 = vpack.c.bf16 %v1721_v54, %v1720_v53 }
 0x169   : > { %2563 = vmatprep.subr.bf16.mxu1 %v1891_v62  ;;  %v1673_v62 = vld [vmem:[%s3433_s14 + $0x408] sm:$0xff]  ;;  %v1704_v63 = vld [vmem:[%s3433_s14 + $0x500] sm:$0xff]  ;;  %v1690_v2 = vld [vmem:[%s3433_s14 + $0x490] sm:$0xff]  ;;  %v1519_v8 = vmax.f32 %v1501_v58, 0.0 }
 0x16a   : > { %v1705_v1 = vld [vmem:[%s3433_s14 + $0x508] sm:$0xff]  ;;  %v1691_v3 = vld [vmem:[%s3433_s14 + $0x498] sm:$0xff]  ;;  %v1896_v9 = vpack.c.bf16 %v1673_v62, %v1672_v61  ;;  %v1674_v13 = vld [vmem:[%s3433_s14 + $0x410] sm:$0xff] }
 0x16b   : > { %2542 = vmatpush3.bf16.msra.mxu0 %v1867_v4  ;;  %v1517_v4 = vmax.f32 %v1499_v55, 0.0  ;;  %v1723_v7 = vld [vmem:[%s3433_s14 + $0x598] sm:$0xff]  ;;  %v1912_v11 = vpack.c.bf16 %v1705_v1, %v1704_v63  ;;  %v1905_v12 = vpack.c.bf16 %v1691_v3, %v1690_v2  ;;  %v1706_v15 = vld [vmem:[%s3433_s14 + $0x510] sm:$0xff]  ;;  %v1693_v19 = vld [vmem:[%s3433_s14 + $0x4a8] sm:$0xff]  ;;  %v1537_v23 = vpack.c.bf16 %v1519_v8, %v1519_v8 }
 0x16c   : > { %2564 = vmatpush3.bf16.msra.mxu1 %v1883_v5  ;;  %2543 = vmatprep.subr.bf16.mxu0 %v1876_v6  ;;  %v1530_v5 = vpack.c.bf16 %v1512_v52, %v1512_v52  ;;  %v1722_v6 = vld [vmem:[%s3433_s14 + $0x590] sm:$0xff]  ;;  %v1675_v14 = vld [vmem:[%s3433_s14 + $0x418] sm:$0xff]  ;;  %v1724_v21 = vld [vmem:[%s3433_s14 + $0x5a0] sm:$0xff] }
 0x16d   : > { %2565 = vmatprep.subr.bf16.mxu1 %v1892_v10  ;;  %v1532_v10 = vpack.c.bf16 %v1514_v57, %v1514_v57  ;;  %v1535_v20 = vpack.c.bf16 %v1517_v4, %v1517_v4  ;;  %v1897_v24 = vpack.c.bf16 %v1675_v14, %v1674_v13  ;;  %v1676_v27 = vld [vmem:[%s3433_s14 + $0x420] sm:$0xff]  ;;  %v1709_v31 = vld [vmem:[%s3433_s14 + $0x528] sm:$0xff]  ;;  %v1694_v32 = vld [vmem:[%s3433_s14 + $0x4b0] sm:$0xff] }
 0x16e   : > { %v1695_v33 = vld [vmem:[%s3433_s14 + $0x4b8] sm:$0xff]  ;;  %v1678_v39 = vld [vmem:[%s3433_s14 + $0x430] sm:$0xff]  ;;  %v1697_v45 = vld [vmem:[%s3433_s14 + $0x4c8] sm:$0xff] }
 0x16f   : > { %2544 = vmatpush3.bf16.msra.mxu0 %v1868_v16  ;;  %v1921_v16 = vpack.c.bf16 %v1723_v7, %v1722_v6  ;;  %v1727_v35 = vld [vmem:[%s3433_s14 + $0x5b8] sm:$0xff]  ;;  %v1907_v38 = vpack.c.bf16 %v1695_v33, %v1694_v32  ;;  %v1710_v41 = vld [vmem:[%s3433_s14 + $0x530] sm:$0xff]  ;;  %v1728_v46 = vld [vmem:[%s3433_s14 + $0x5c0] sm:$0xff] }
 0x170   : > { %2566 = vmatpush3.bf16.msra.mxu1 %v1884_v17  ;;  %2545 = vmatprep.subr.bf16.mxu0 %v1877_v18  ;;  %v1707_v17 = vld [vmem:[%s3433_s14 + $0x518] sm:$0xff]  ;;  %v1692_v18 = vld [vmem:[%s3433_s14 + $0x4a0] sm:$0xff]  ;;  %v1729_v47 = vld [vmem:[%s3433_s14 + $0x5c8] sm:$0xff] }
 0x171   : > { %2567 = vmatprep.subr.bf16.mxu1 %v1893_v22  ;;  %v1725_v22 = vld [vmem:[%s3433_s14 + $0x5a8] sm:$0xff]  ;;  %v1913_v25 = vpack.c.bf16 %v1707_v17, %v1706_v15  ;;  %v1906_v26 = vpack.c.bf16 %v1693_v19, %v1692_v18  ;;  %v1680_v51 = vld [vmem:[%s3433_s14 + $0x440] sm:$0xff]  ;;  %v1924_v54 = vpack.c.bf16 %v1729_v47, %v1728_v46  ;;  %v1699_v57 = vld [vmem:[%s3433_s14 + $0x4d8] sm:$0xff] }
 0x172   : > { %v1681_v52 = vld [vmem:[%s3433_s14 + $0x448] sm:$0xff]  ;;  %v1712_v53 = vld [vmem:[%s3433_s14 + $0x540] sm:$0xff]  ;;  %v1730_v58 = vld [vmem:[%s3433_s14 + $0x5d0] sm:$0xff] }
 0x173   : > { %2546 = vmatpush3.bf16.msra.mxu0 %v1869_v28  ;;  %v1677_v28 = vld [vmem:[%s3433_s14 + $0x428] sm:$0xff]  ;;  %v1682_v63 = vld [vmem:[%s3433_s14 + $0x450] sm:$0xff]  ;;  %v1715_v3 = vld [vmem:[%s3433_s14 + $0x558] sm:$0xff] }
 0x174   : > { %2568 = vmatpush3.bf16.msra.mxu1 %v1885_v29  ;;  %2547 = vmatprep.subr.bf16.mxu0 %v1878_v30  ;;  %v1708_v29 = vld [vmem:[%s3433_s14 + $0x520] sm:$0xff]  ;;  %v1922_v30 = vpack.c.bf16 %v1725_v22, %v1724_v21  ;;  %v1898_v36 = vpack.c.bf16 %v1677_v28, %v1676_v27  ;;  %v1713_v55 = vld [vmem:[%s3433_s14 + $0x548] sm:$0xff]  ;;  %v1714_v1 = vld [vmem:[%s3433_s14 + $0x550] sm:$0xff] }
 0x175   : > { %2569 = vmatprep.subr.bf16.mxu1 %v1894_v34  ;;  %v1726_v34 = vld [vmem:[%s3433_s14 + $0x5b0] sm:$0xff]  ;;  %v1914_v37 = vpack.c.bf16 %v1709_v31, %v1708_v29  ;;  %v1916_v61 = vpack.c.bf16 %v1713_v55, %v1712_v53  ;;  %v1700_v4 = vld [vmem:[%s3433_s14 + $0x4e0] sm:$0xff]  ;;  %v1733_v7 = vld [vmem:[%s3433_s14 + $0x5e8] sm:$0xff] }
 0x176   : > { %v1923_v42 = vpack.c.bf16 %v1727_v35, %v1726_v34  ;;  %v1732_v6 = vld [vmem:[%s3433_s14 + $0x5e0] sm:$0xff]  ;;  %v1717_v15 = vld [vmem:[%s3433_s14 + $0x568] sm:$0xff]  ;;  %v1703_v17 = vld [vmem:[%s3433_s14 + $0x4f8] sm:$0xff] }
 0x177   : > { %2548 = vmatpush3.bf16.msra.mxu0 %v1870_v40  ;;  %v1679_v40 = vld [vmem:[%s3433_s14 + $0x438] sm:$0xff]  ;;  %v1716_v13 = vld [vmem:[%s3433_s14 + $0x560] sm:$0xff]  ;;  %v1926_v14 = vpack.c.bf16 %v1733_v7, %v1732_v6  ;;  %v1734_v18 = vld [vmem:[%s3433_s14 + $0x5f0] sm:$0xff] }
 0x178   : > { %2570 = vmatpush3.bf16.msra.mxu1 %v1886_v43  ;;  %2549 = vmatprep.subr.bf16.mxu0 %v1879_v44  ;;  %v1711_v43 = vld [vmem:[%s3433_s14 + $0x538] sm:$0xff]  ;;  %v1696_v44 = vld [vmem:[%s3433_s14 + $0x4c0] sm:$0xff]  ;;  %v1686_v21 = vld [vmem:[%s3433_s14 + $0x470] sm:$0xff] }
 0x179   : > { %2571 = vmatprep.subr.bf16.mxu1 %v1895_v48  ;;  %v1899_v48 = vpack.c.bf16 %v1679_v40, %v1678_v39  ;;  %v1915_v49 = vpack.c.bf16 %v1711_v43, %v1710_v41  ;;  %v1908_v50 = vpack.c.bf16 %v1697_v45, %v1696_v44  ;;  %v1735_v19 = vld [vmem:[%s3433_s14 + $0x5f8] sm:$0xff]  ;;  %v1498_v22 = vld [vmem:[%s3797_s0 + $0x40] sm:$0xff]  ;;  %v1500_v27 = vld [vmem:[%s3797_s0 + $0x50] sm:$0xff] }
 0x17a   : > { %v1927_v28 = vpack.c.bf16 %v1735_v19, %v1734_v18  ;;  %v1719_v29 = vld [vmem:[%s3433_s14 + $0x578] sm:$0xff]  ;;  %v1753_v31 = vld [vmem:[%s3433_s14 + $0x688] sm:$0xff]  ;;  %v1516_v32 = vmax.f32 %v1498_v22, 0.0  ;;  %v1784_v33 = vld [vmem:[%s3433_s14 + $0x780] sm:$0xff] }
 0x17b   : > { %2550 = vmatpush3.bf16.msra.mxu0 %v1871_v56  ;;  %v1698_v56 = vld [vmem:[%s3433_s14 + $0x4d0] sm:$0xff]  ;;  %v1785_v34 = vld [vmem:[%s3433_s14 + $0x788] sm:$0xff]  ;;  %v1736_v41 = vld [vmem:[%s3433_s14 + $0x600] sm:$0xff] }
 0x17c   : > { %2572 = vmatpush3.bf16.msra.mxu1 %v1887_v59  ;;  %2579 = vmatprep.subr.bf16.mxu0 %v1904_v60  ;;  %v1731_v59 = vld [vmem:[%s3433_s14 + $0x5d8] sm:$0xff]  ;;  %v1900_v60 = vpack.c.bf16 %v1681_v52, %v1680_v51  ;;  %v1909_v62 = vpack.c.bf16 %v1699_v57, %v1698_v56  ;;  %v1503_v35 = vld [vmem:[%s3797_s0 + $0x68] sm:$0xff]  ;;  %v1768_v43 = vld [vmem:[%s3433_s14 + $0x700] sm:$0xff]  ;;  %v1952_v44 = vpack.c.bf16 %v1785_v34, %v1784_v33 }
 0x17d   : > { %2601 = vmatprep.subr.bf16.mxu1 %v1920_v0  ;;  %v1683_v0 = vld [vmem:[%s3433_s14 + $0x458] sm:$0xff]  ;;  %v1925_v2 = vpack.c.bf16 %v1731_v59, %v1730_v58  ;;  %v1769_v45 = vld [vmem:[%s3433_s14 + $0x708] sm:$0xff]  ;;  %v1754_v46 = vld [vmem:[%s3433_s14 + $0x690] sm:$0xff] }
 0x17e   : > { %2089 = vmatmul.mubr.bf16.vlgmr.msra.gmra.mrb[4].mxu0 %v1530_v5  ;;  %v1701_v5 = vld [vmem:[%s3433_s14 + $0x4e8] sm:$0xff]  ;;  %v1901_v8 = vpack.c.bf16 %v1683_v0, %v1682_v63  ;;  %v1755_v47 = vld [vmem:[%s3433_s14 + $0x698] sm:$0xff]  ;;  %v1944_v55 = vpack.c.bf16 %v1769_v45, %v1768_v43  ;;  %v1738_v57 = vld [vmem:[%s3433_s14 + $0x610] sm:$0xff] }
 0x17f   : > { %2580 = vmatpush3.bf16.msra.mxu0 %v1896_v9  ;;  %2129 = vmatmul.mubr.bf16.vlgmr.msra.gmra.mrb[4].mxu1 %v1532_v10  ;;  %v1917_v9 = vpack.c.bf16 %v1715_v3, %v1714_v1  ;;  %v1910_v10 = vpack.c.bf16 %v1701_v5, %v1700_v4  ;;  %v1787_v51 = vld [vmem:[%s3433_s14 + $0x798] sm:$0xff]  ;;  %v1937_v56 = vpack.c.bf16 %v1755_v47, %v1754_v46  ;;  %v1770_v59 = vld [vmem:[%s3433_s14 + $0x710] sm:$0xff]  ;;  %v1757_v63 = vld [vmem:[%s3433_s14 + $0x6a8] sm:$0xff] }
 0x180   : > { %2602 = vmatpush3.bf16.msra.mxu1 %v1912_v11  ;;  %2581 = vmatprep.subr.bf16.mxu0 %v1905_v12  ;;  %v1684_v11 = vld [vmem:[%s3433_s14 + $0x460] sm:$0xff]  ;;  %v1685_v12 = vld [vmem:[%s3433_s14 + $0x468] sm:$0xff]  ;;  %v1739_v58 = vld [vmem:[%s3433_s14 + $0x618] sm:$0xff] }
 0x181   : > { %2603 = vmatprep.subr.bf16.mxu1 %v1921_v16  ;;  %2168 = vmatprep.mubr.bf16.mxu0 %v1535_v20  ;;  %v1702_v16 = vld [vmem:[%s3433_s14 + $0x4f0] sm:$0xff]  ;;  %v1902_v20 = vpack.c.bf16 %v1685_v12, %v1684_v11  ;;  %v1788_v1 = vld [vmem:[%s3433_s14 + $0x7a0] sm:$0xff]  ;;  %v1929_v4 = vpack.c.bf16 %v1739_v58, %v1738_v57  ;;  %v1773_v11 = vld [vmem:[%s3433_s14 + $0x728] sm:$0xff] }
 0x182   : > { %2208 = vmatprep.mubr.bf16.mxu1 %v1537_v23  ;;  %v1918_v23 = vpack.c.bf16 %v1717_v15, %v1716_v13  ;;  %v1740_v7 = vld [vmem:[%s3433_s14 + $0x620] sm:$0xff]  ;;  %v1758_v12 = vld [vmem:[%s3433_s14 + $0x6b0] sm:$0xff]  ;;  %v1759_v13 = vld [vmem:[%s3433_s14 + $0x6b8] sm:$0xff] }
 0x183   : > { %2582 = vmatpush3.bf16.msra.mxu0 %v1897_v24  ;;  %v1911_v24 = vpack.c.bf16 %v1703_v17, %v1702_v16  ;;  %v1791_v15 = vld [vmem:[%s3433_s14 + $0x7b8] sm:$0xff]  ;;  %v1939_v18 = vpack.c.bf16 %v1759_v13, %v1758_v12  ;;  %v1742_v19 = vld [vmem:[%s3433_s14 + $0x630] sm:$0xff]  ;;  %v1776_v33 = vld [vmem:[%s3433_s14 + $0x740] sm:$0xff] }
 0x184   : > { %2604 = vmatpush3.bf16.msra.mxu1 %v1913_v25  ;;  %2583 = vmatprep.subr.bf16.mxu0 %v1906_v26  ;;  %v1687_v25 = vld [vmem:[%s3433_s14 + $0x478] sm:$0xff]  ;;  %v1718_v26 = vld [vmem:[%s3433_s14 + $0x570] sm:$0xff]  ;;  %v1780_v57 = vld [vmem:[%s3433_s14 + $0x760] sm:$0xff] }
 0x185   : > { %2605 = vmatprep.subr.bf16.mxu1 %v1922_v30  ;;  %v1752_v30 = vld [vmem:[%s3433_s14 + $0x680] sm:$0xff]  ;;  %v1919_v39 = vpack.c.bf16 %v1719_v29, %v1718_v26  ;;  %v1746_v43 = vld [vmem:[%s3433_s14 + $0x650] sm:$0xff]  ;;  %v1779_v47 = vld [vmem:[%s3433_s14 + $0x758] sm:$0xff] }
 0x186   : > { %v1936_v40 = vpack.c.bf16 %v1753_v31, %v1752_v30  ;;  %v1792_v26 = vld [vmem:[%s3433_s14 + $0x7c0] sm:$0xff]  ;;  %v1778_v45 = vld [vmem:[%s3433_s14 + $0x750] sm:$0xff]  ;;  %v1507_v12 = vld [vmem:[%s3797_s0 + $0x88] sm:$0xff] }
 0x187   : > { %2584 = vmatpush3.bf16.msra.mxu0 %v1898_v36  ;;  %v1903_v36 = vpack.c.bf16 %v1687_v25, %v1686_v21  ;;  %v1774_v21 = vld [vmem:[%s3433_s14 + $0x730] sm:$0xff]  ;;  %v1761_v25 = vld [vmem:[%s3433_s14 + $0x6c8] sm:$0xff]  ;;  %v1744_v31 = vld [vmem:[%s3433_s14 + $0x640] sm:$0xff] }
 0x188   : > { %2606 = vmatpush3.bf16.msra.mxu1 %v1914_v37  ;;  %2585 = vmatprep.subr.bf16.mxu0 %v1907_v38  ;;  %v1518_v37 = vmax.f32 %v1500_v27, 0.0  ;;  %v1505_v38 = vld [vmem:[%s3797_s0 + $0x78] sm:$0xff]  ;;  %v1793_v27 = vld [vmem:[%s3433_s14 + $0x7c8] sm:$0xff] }
 0x189   : > { %2607 = vmatprep.subr.bf16.mxu1 %v1923_v42  ;;  %v1737_v42 = vld [vmem:[%s3433_s14 + $0x608] sm:$0xff]  ;;  %v1523_v52 = vmax.f32 %v1505_v38, 0.0  ;;  %v1956_v34 = vpack.c.bf16 %v1793_v27, %v1792_v26  ;;  %v1794_v38 = vld [vmem:[%s3433_s14 + $0x7d0] sm:$0xff] }
 0x18a   : > { %v1928_v53 = vpack.c.bf16 %v1737_v42, %v1736_v41  ;;  %v1802_v27 = vld [vmem:[%s3433_s14 + $0x810] sm:$0xff] }
 0x18b   : > { %2586 = vmatpush3.bf16.msra.mxu0 %v1899_v48  ;;  %v1521_v48 = vmax.f32 %v1503_v35, 0.0  ;;  %v1541_v3 = vpack.c.bf16 %v1523_v52, %v1523_v52  ;;  %v1777_v35 = vld [vmem:[%s3433_s14 + $0x748] sm:$0xff] }
 0x18c   : > { %2608 = vmatpush3.bf16.msra.mxu1 %v1915_v49  ;;  %2587 = vmatprep.subr.bf16.mxu0 %v1908_v50  ;;  %v1534_v49 = vpack.c.bf16 %v1516_v32, %v1516_v32  ;;  %v1786_v50 = vld [vmem:[%s3433_s14 + $0x790] sm:$0xff]  ;;  %v1745_v32 = vld [vmem:[%s3433_s14 + $0x648] sm:$0xff]  ;;  %v1948_v41 = vpack.c.bf16 %v1777_v35, %v1776_v33 }
 0x18d   : > { %2609 = vmatprep.subr.bf16.mxu1 %v1924_v54  ;;  %v1536_v54 = vpack.c.bf16 %v1518_v37, %v1518_v37  ;;  %v1539_v0 = vpack.c.bf16 %v1521_v48, %v1521_v48  ;;  %v1763_v37 = vld [vmem:[%s3433_s14 + $0x6d8] sm:$0xff]  ;;  %v1764_v48 = vld [vmem:[%s3433_s14 + $0x6e0] sm:$0xff]  ;;  %v1805_v35 = vld [vmem:[%s3433_s14 + $0x828] sm:$0xff] }
 0x18f   : > { %2588 = vmatpush3.bf16.msra.mxu0 %v1900_v60  ;;  %v1953_v60 = vpack.c.bf16 %v1787_v51, %v1786_v50  ;;  %v1796_v50 = vld [vmem:[%s3433_s14 + $0x7e0] sm:$0xff]  ;;  %v1797_v51 = vld [vmem:[%s3433_s14 + $0x7e8] sm:$0xff] }
 0x190   : > { %2610 = vmatpush3.bf16.msra.mxu1 %v1916_v61  ;;  %2589 = vmatprep.subr.bf16.mxu0 %v1909_v62  ;;  %v1771_v61 = vld [vmem:[%s3433_s14 + $0x718] sm:$0xff]  ;;  %v1756_v62 = vld [vmem:[%s3433_s14 + $0x6a0] sm:$0xff]  ;;  %v1958_v58 = vpack.c.bf16 %v1797_v51, %v1796_v50 }
 0x191   : > { %2611 = vmatprep.subr.bf16.mxu1 %v1925_v2  ;;  %v1789_v2 = vld [vmem:[%s3433_s14 + $0x7a8] sm:$0xff]  ;;  %v1945_v5 = vpack.c.bf16 %v1771_v61, %v1770_v59  ;;  %v1938_v6 = vpack.c.bf16 %v1757_v63, %v1756_v62  ;;  %v1767_v61 = vld [vmem:[%s3433_s14 + $0x6f8] sm:$0xff]  ;;  %v1798_v62 = vld [vmem:[%s3433_s14 + $0x7f0] sm:$0xff] }
 0x192   : > { %v1781_v59 = vld [vmem:[%s3433_s14 + $0x768] sm:$0xff]  ;;  %v1799_v63 = vld [vmem:[%s3433_s14 + $0x7f8] sm:$0xff] }
 0x193   : > { %2590 = vmatpush3.bf16.msra.mxu0 %v1901_v8  ;;  %v1741_v8 = vld [vmem:[%s3433_s14 + $0x628] sm:$0xff] }
 0x194   : > { %2612 = vmatpush3.bf16.msra.mxu1 %v1917_v9  ;;  %2591 = vmatprep.subr.bf16.mxu0 %v1910_v10  ;;  %v1772_v9 = vld [vmem:[%s3433_s14 + $0x720] sm:$0xff]  ;;  %v1954_v10 = vpack.c.bf16 %v1789_v2, %v1788_v1  ;;  %v1930_v16 = vpack.c.bf16 %v1741_v8, %v1740_v7  ;;  %v1750_v1 = vld [vmem:[%s3433_s14 + $0x670] sm:$0xff]  ;;  %v1751_v2 = vld [vmem:[%s3433_s14 + $0x678] sm:$0xff] }
 0x195   : > { %2613 = vmatprep.subr.bf16.mxu1 %v1926_v14  ;;  %v1790_v14 = vld [vmem:[%s3433_s14 + $0x7b0] sm:$0xff]  ;;  %v1946_v17 = vpack.c.bf16 %v1773_v11, %v1772_v9  ;;  %v1783_v7 = vld [vmem:[%s3433_s14 + $0x778] sm:$0xff]  ;;  %v1959_v9 = vpack.c.bf16 %v1799_v63, %v1798_v62  ;;  %v1817_v11 = vld [vmem:[%s3433_s14 + $0x888] sm:$0xff] }
 0x196   : > { %v1955_v22 = vpack.c.bf16 %v1791_v15, %v1790_v14  ;;  %v1504_v8 = vld [vmem:[%s3797_s0 + $0x70] sm:$0xff]  ;;  %v1935_v14 = vpack.c.bf16 %v1751_v2, %v1750_v1  ;;  %v1506_v63 = vld [vmem:[%s3797_s0 + $0x80] sm:$0xff]  ;;  %v1815_v2 = vld [vmem:[%s3433_s14 + $0x878] sm:$0xff] }
 0x197   : > { %2592 = vmatpush3.bf16.msra.mxu0 %v1902_v20  ;;  %v1743_v20 = vld [vmem:[%s3433_s14 + $0x638] sm:$0xff]  ;;  %v1522_v15 = vmax.f32 %v1504_v8, 0.0  ;;  %v1814_v1 = vld [vmem:[%s3433_s14 + $0x870] sm:$0xff] }
 0x198   : > { %2614 = vmatpush3.bf16.msra.mxu1 %v1918_v23  ;;  %2593 = vmatprep.subr.bf16.mxu0 %v1911_v24  ;;  %v1775_v23 = vld [vmem:[%s3433_s14 + $0x738] sm:$0xff]  ;;  %v1760_v24 = vld [vmem:[%s3433_s14 + $0x6c0] sm:$0xff] }
 0x199   : > { %2615 = vmatprep.subr.bf16.mxu1 %v1927_v28  ;;  %v1931_v28 = vpack.c.bf16 %v1743_v20, %v1742_v19  ;;  %v1947_v29 = vpack.c.bf16 %v1775_v23, %v1774_v21  ;;  %v1940_v30 = vpack.c.bf16 %v1761_v25, %v1760_v24  ;;  %v1801_v19 = vld [vmem:[%s3433_s14 + $0x808] sm:$0xff]  ;;  %v1525_v20 = vmax.f32 %v1507_v12, 0.0  ;;  %v1818_v21 = vld [vmem:[%s3433_s14 + $0x890] sm:$0xff] }
 0x19a   : > { %v1540_v25 = vpack.c.bf16 %v1522_v15, %v1522_v15 }
 0x19b   : > { %2594 = vmatpush3.bf16.msra.mxu0 %v1903_v36  ;;  %v1762_v36 = vld [vmem:[%s3433_s14 + $0x6d0] sm:$0xff] }
 0x19c   : > { %2616 = vmatpush3.bf16.msra.mxu1 %v1919_v39  ;;  %2623 = vmatprep.subr.bf16.mxu0 %v1936_v40  ;;  %v1795_v39 = vld [vmem:[%s3433_s14 + $0x7d8] sm:$0xff]  ;;  %v1932_v40 = vpack.c.bf16 %v1745_v32, %v1744_v31  ;;  %v1941_v42 = vpack.c.bf16 %v1763_v37, %v1762_v36  ;;  %v1821_v31 = vld [vmem:[%s3433_s14 + $0x8a8] sm:$0xff]  ;;  %v1822_v36 = vld [vmem:[%s3433_s14 + $0x8b0] sm:$0xff] }
 0x19d   : > { %2645 = vmatprep.subr.bf16.mxu1 %v1952_v44  ;;  %v1747_v44 = vld [vmem:[%s3433_s14 + $0x658] sm:$0xff]  ;;  %v1957_v46 = vpack.c.bf16 %v1795_v39, %v1794_v38 }
 0x19e   : > { %2169 = vmatmul.mubr.bf16.vlgmr.msra.gmra.mrb[8].mxu0 %v1534_v49  ;;  %v1765_v49 = vld [vmem:[%s3433_s14 + $0x6e8] sm:$0xff]  ;;  %v1933_v52 = vpack.c.bf16 %v1747_v44, %v1746_v43  ;;  %v1823_v37 = vld [vmem:[%s3433_s14 + $0x8b8] sm:$0xff] }
 0x19f   : > { %2624 = vmatpush3.bf16.msra.mxu0 %v1928_v53  ;;  %2209 = vmatmul.mubr.bf16.vlgmr.msra.gmra.mrb[8].mxu1 %v1536_v54  ;;  %v1949_v53 = vpack.c.bf16 %v1779_v47, %v1778_v45  ;;  %v1942_v54 = vpack.c.bf16 %v1765_v49, %v1764_v48  ;;  %v1971_v39 = vpack.c.bf16 %v1823_v37, %v1822_v36  ;;  %v1825_v43 = vld [vmem:[%s3433_s14 + $0x8c8] sm:$0xff]  ;;  %v1826_v48 = vld [vmem:[%s3433_s14 + $0x8d0] sm:$0xff]  ;;  %v1827_v49 = vld [vmem:[%s3433_s14 + $0x8d8] sm:$0xff] }
 0x1a0   : > { %2646 = vmatpush3.bf16.msra.mxu1 %v1944_v55  ;;  %2625 = vmatprep.subr.bf16.mxu0 %v1937_v56  ;;  %v1748_v55 = vld [vmem:[%s3433_s14 + $0x660] sm:$0xff]  ;;  %v1749_v56 = vld [vmem:[%s3433_s14 + $0x668] sm:$0xff]  ;;  %v1973_v51 = vpack.c.bf16 %v1827_v49, %v1826_v48 }
 0x1a1   : > { %2647 = vmatprep.subr.bf16.mxu1 %v1953_v60  ;;  %2248 = vmatprep.mubr.bf16.mxu0 %v1539_v0  ;;  %v1766_v60 = vld [vmem:[%s3433_s14 + $0x6f0] sm:$0xff]  ;;  %v1934_v0 = vpack.c.bf16 %v1749_v56, %v1748_v55  ;;  %v1809_v47 = vld [vmem:[%s3433_s14 + $0x848] sm:$0xff] }
 0x1a2   : > { %2288 = vmatprep.mubr.bf16.mxu1 %v1541_v3  ;;  %v1502_v3 = vld [vmem:[%s3797_s0 + $0x60] sm:$0xff]  ;;  %v1829_v55 = vld [vmem:[%s3433_s14 + $0x8e8] sm:$0xff] }
 0x1a3   : > { %2626 = vmatpush3.bf16.msra.mxu0 %v1929_v4  ;;  %v1950_v4 = vpack.c.bf16 %v1781_v59, %v1780_v57  ;;  %v1520_v13 = vmax.f32 %v1502_v3, 0.0  ;;  %v1813_v59 = vld [vmem:[%s3433_s14 + $0x868] sm:$0xff]  ;;  %v1524_v3 = vmax.f32 %v1506_v63, 0.0 }
 0x1a4   : > { %2648 = vmatpush3.bf16.msra.mxu1 %v1945_v5  ;;  %2627 = vmatprep.subr.bf16.mxu0 %v1938_v6  ;;  %v1943_v5 = vpack.c.bf16 %v1767_v61, %v1766_v60  ;;  %v1782_v6 = vld [vmem:[%s3433_s14 + $0x770] sm:$0xff]  ;;  %v1831_v61 = vld [vmem:[%s3433_s14 + $0x8f8] sm:$0xff] }
 0x1a5   : > { %2649 = vmatprep.subr.bf16.mxu1 %v1954_v10  ;;  %v1816_v10 = vld [vmem:[%s3433_s14 + $0x880] sm:$0xff]  ;;  %v1538_v23 = vpack.c.bf16 %v1520_v13, %v1520_v13  ;;  %v1830_v60 = vld [vmem:[%s3433_s14 + $0x8f0] sm:$0xff] }
 0x1a7   : > { %2628 = vmatpush3.bf16.msra.mxu0 %v1930_v16  ;;  %v1951_v16 = vpack.c.bf16 %v1783_v7, %v1782_v6 }
 0x1a8   : > { %2650 = vmatpush3.bf16.msra.mxu1 %v1946_v17  ;;  %2629 = vmatprep.subr.bf16.mxu0 %v1939_v18  ;;  %v1968_v17 = vpack.c.bf16 %v1817_v11, %v1816_v10  ;;  %v1800_v18 = vld [vmem:[%s3433_s14 + $0x800] sm:$0xff] }
 0x1a9   : > { %2651 = vmatprep.subr.bf16.mxu1 %v1955_v22  ;;  %v1819_v22 = vld [vmem:[%s3433_s14 + $0x898] sm:$0xff]  ;;  %v1960_v24 = vpack.c.bf16 %v1801_v19, %v1800_v18 }
 0x1aa   : > { %v1969_v26 = vpack.c.bf16 %v1819_v22, %v1818_v21 }
 0x1ab   : > { %2630 = vmatpush3.bf16.msra.mxu0 %v1931_v28  ;;  %v1803_v28 = vld [vmem:[%s3433_s14 + $0x818] sm:$0xff] }
 0x1ac   : > { %2652 = vmatpush3.bf16.msra.mxu1 %v1947_v29  ;;  %2631 = vmatprep.subr.bf16.mxu0 %v1940_v30  ;;  %v1543_v29 = vpack.c.bf16 %v1525_v20, %v1525_v20  ;;  %v1820_v30 = vld [vmem:[%s3433_s14 + $0x8a0] sm:$0xff]  ;;  %v1961_v32 = vpack.c.bf16 %v1803_v28, %v1802_v27 }
 0x1ad   : > { %2653 = vmatprep.subr.bf16.mxu1 %v1956_v34  ;;  %v1970_v33 = vpack.c.bf16 %v1821_v31, %v1820_v30  ;;  %v1804_v34 = vld [vmem:[%s3433_s14 + $0x820] sm:$0xff] }
 0x1ae   : > { %v1962_v38 = vpack.c.bf16 %v1805_v35, %v1804_v34 }
 0x1af   : > { %2632 = vmatpush3.bf16.msra.mxu0 %v1932_v40  ;;  %v1806_v40 = vld [vmem:[%s3433_s14 + $0x830] sm:$0xff] }
 0x1b0   : > { %2654 = vmatpush3.bf16.msra.mxu1 %v1948_v41  ;;  %2633 = vmatprep.subr.bf16.mxu0 %v1941_v42  ;;  %v1807_v41 = vld [vmem:[%s3433_s14 + $0x838] sm:$0xff]  ;;  %v1824_v42 = vld [vmem:[%s3433_s14 + $0x8c0] sm:$0xff] }
 0x1b1   : > { %2655 = vmatprep.subr.bf16.mxu1 %v1957_v46  ;;  %v1963_v44 = vpack.c.bf16 %v1807_v41, %v1806_v40  ;;  %v1972_v45 = vpack.c.bf16 %v1825_v43, %v1824_v42  ;;  %v1808_v46 = vld [vmem:[%s3433_s14 + $0x840] sm:$0xff] }
 0x1b2   : > { %v1964_v50 = vpack.c.bf16 %v1809_v47, %v1808_v46 }
 0x1b3   : > { %2634 = vmatpush3.bf16.msra.mxu0 %v1933_v52  ;;  %v1810_v52 = vld [vmem:[%s3433_s14 + $0x850] sm:$0xff] }
 0x1b4   : > { %2656 = vmatpush3.bf16.msra.mxu1 %v1949_v53  ;;  %2635 = vmatprep.subr.bf16.mxu0 %v1942_v54  ;;  %v1811_v53 = vld [vmem:[%s3433_s14 + $0x858] sm:$0xff]  ;;  %v1828_v54 = vld [vmem:[%s3433_s14 + $0x8e0] sm:$0xff] }
 0x1b5   : > { %2657 = vmatprep.subr.bf16.mxu1 %v1958_v58  ;;  %v1965_v56 = vpack.c.bf16 %v1811_v53, %v1810_v52  ;;  %v1974_v57 = vpack.c.bf16 %v1829_v55, %v1828_v54  ;;  %v1812_v58 = vld [vmem:[%s3433_s14 + $0x860] sm:$0xff] }
 0x1b6   : > { %v1966_v62 = vpack.c.bf16 %v1813_v59, %v1812_v58 }
 0x1b7   : > { %2636 = vmatpush3.bf16.msra.mxu0 %v1934_v0  ;;  %v1975_v0 = vpack.c.bf16 %v1831_v61, %v1830_v60  ;;  %v2488_v60 = vld [vmem:[%s1477_s12] ss:$0 sm:$0xff] }
 0x1b8   : > { %2658 = vmatpush3.bf16.msra.mxu1 %v1950_v4  ;;  %2637 = vmatprep.subr.bf16.mxu0 %v1943_v5  ;;  %v1967_v4 = vpack.c.bf16 %v1815_v2, %v1814_v1  ;;  %v1542_v5 = vpack.c.bf16 %v1524_v3, %v1524_v3 }
 0x1b9   : > { %2659 = vmatprep.subr.bf16.mxu1 %v1959_v9 }
 0x1bb   : > { %2638 = vmatpush3.bf16.msra.mxu0 %v1935_v14 }
 0x1bc   : > { %2660 = vmatpush3.bf16.msra.mxu1 %v1951_v16  ;;  %2667 = vmatprep.subr.bf16.mxu0 %v1968_v17 }
 0x1be   : > { %2249 = vmatmul.mubr.bf16.vlgmr.msra.gmra.mrb[12].mxu0 %v1538_v23 }
 0x1bf   : > { %2668 = vmatpush3.bf16.msra.mxu0 %v1960_v24  ;;  %2289 = vmatmul.mubr.bf16.vlgmr.msra.gmra.mrb[12].mxu1 %v1540_v25 }
 0x1c0   : > { %2669 = vmatprep.subr.bf16.mxu0 %v1969_v26  ;;  %2328 = vmatprep.mubr.bf16.mxu0 %v1543_v29 }
 0x1c3   : > { %2670 = vmatpush3.bf16.msra.mxu0 %v1961_v32 }
 0x1c4   : > { %2671 = vmatprep.subr.bf16.mxu0 %v1970_v33 }
 0x1c7   : > { %2672 = vmatpush3.bf16.msra.mxu0 %v1962_v38 }
 0x1c8   : > { %2673 = vmatprep.subr.bf16.mxu0 %v1971_v39 }
 0x1cb   : > { %2674 = vmatpush3.bf16.msra.mxu0 %v1963_v44 }
 0x1cc   : > { %2675 = vmatprep.subr.bf16.mxu0 %v1972_v45 }
 0x1cf   : > { %2676 = vmatpush3.bf16.msra.mxu0 %v1964_v50 }
 0x1d0   : > { %2677 = vmatprep.subr.bf16.mxu0 %v1973_v51 }
 0x1d3   : > { %2678 = vmatpush3.bf16.msra.mxu0 %v1965_v56 }
 0x1d4   : > { %2679 = vmatprep.subr.bf16.mxu0 %v1974_v57  ;;  %v2487_v57 = vld [vmem:[%s1474_s9] ss:$0 sm:$0xff] }
 0x1d7   : > { %2680 = vmatpush3.bf16.msra.mxu0 %v1966_v62 }
 0x1d8   : > { %2681 = vmatprep.subr.bf16.mxu0 %v1975_v0 }
 0x1db   : > { %2682 = vmatpush3.bf16.msra.mxu0 %v1967_v4 }
 0x1de   : > { %2329 = vmatmul.mubr.bf16.vlgmr.msra.gmra.mrb[16].mxu0 %v1542_v5 }
 0x231   : > { %v2507_v6 = vpop.f32.mrb[0].mxu0 }
 0x232   : > { %v2529_v7 = vpop.f32.mrb[0].mxu1  ;;  %v2508_v8 = vpop.f32.mrb[1].mxu0 }
 0x233   : > { %v2509_v9 = vadd.f32 %v2508_v8, %v2507_v6  ;;  %v2530_v10 = vpop.f32.mrb[1].mxu1  ;;  %v2510_v11 = vpop.f32.mrb[2].mxu0 }
 0x234   : > { %v2531_v12 = vadd.f32 %v2530_v10, %v2529_v7  ;;  %v2511_v13 = vpop.f32.mrb[3].mxu0  ;;  %v2532_v14 = vpop.f32.mrb[2].mxu1 }
 0x235   : > { %v2533_v15 = vpop.f32.mrb[3].mxu1 }
 0x236   : > { %v2051_v16 = vadd.f32 %v2531_v12, %v2509_v9 }
 0x251   : > { %v2551_v17 = vpop.f32.mrb[4].mxu0 }
 0x252   : > { %v2552_v18 = vpop.f32.mrb[5].mxu0  ;;  %v2573_v19 = vpop.f32.mrb[4].mxu1 }
 0x253   : > { %v2553_v20 = vadd.f32 %v2552_v18, %v2551_v17  ;;  %v2554_v21 = vpop.f32.mrb[6].mxu0  ;;  %v2574_v22 = vpop.f32.mrb[5].mxu1 }
 0x254   : > { %v2555_v23 = vpop.f32.mrb[7].mxu0  ;;  %v2575_v24 = vadd.f32 %v2574_v22, %v2573_v19  ;;  %v2576_v25 = vpop.f32.mrb[6].mxu1 }
 0x255   : > { %v2091_v26 = vadd.f32 %v2553_v20, %v2051_v16  ;;  %v2577_v27 = vpop.f32.mrb[7].mxu1 }
 0x257   : > { %v2131_v28 = vadd.f32 %v2575_v24, %v2091_v26 }
 0x271   : > { %v2595_v29 = vpop.f32.mrb[8].mxu0 }
 0x272   : > { %v2596_v30 = vpop.f32.mrb[9].mxu0  ;;  %v2617_v31 = vpop.f32.mrb[8].mxu1 }
 0x273   : > { %v2597_v32 = vadd.f32 %v2596_v30, %v2595_v29  ;;  %v2598_v33 = vpop.f32.mrb[10].mxu0  ;;  %v2618_v34 = vpop.f32.mrb[9].mxu1 }
 0x274   : > { %v2599_v35 = vpop.f32.mrb[11].mxu0  ;;  %v2619_v36 = vadd.f32 %v2618_v34, %v2617_v31  ;;  %v2620_v37 = vpop.f32.mrb[10].mxu1 }
 0x275   : > { %v2171_v38 = vadd.f32 %v2597_v32, %v2131_v28  ;;  %v2621_v39 = vpop.f32.mrb[11].mxu1 }
 0x277   : > { %v2211_v40 = vadd.f32 %v2619_v36, %v2171_v38 }
 0x291   : > { %v2639_v41 = vpop.f32.mrb[12].mxu0 }
 0x292   : > { %v2640_v42 = vpop.f32.mrb[13].mxu0  ;;  %v2661_v43 = vpop.f32.mrb[12].mxu1 }
 0x293   : > { %v2641_v44 = vadd.f32 %v2640_v42, %v2639_v41  ;;  %v2642_v45 = vpop.f32.mrb[14].mxu0  ;;  %v2662_v46 = vpop.f32.mrb[13].mxu1 }
 0x294   : > { %v2643_v47 = vpop.f32.mrb[15].mxu0  ;;  %v2663_v48 = vadd.f32 %v2662_v46, %v2661_v43  ;;  %v2664_v49 = vpop.f32.mrb[14].mxu1 }
 0x295   : > { %v2251_v50 = vadd.f32 %v2641_v44, %v2211_v40  ;;  %v2665_v51 = vpop.f32.mrb[15].mxu1 }
 0x297   : > { %v2291_v52 = vadd.f32 %v2663_v48, %v2251_v50 }
 0x2b1   : > { %v2683_v53 = vpop.f32.mrb[16].mxu0 }
 0x2b2   : > { %v2684_v54 = vpop.f32.mrb[17].mxu0 }
 0x2b3   : > { %v2685_v55 = vadd.f32 %v2684_v54, %v2683_v53  ;;  %v2686_v56 = vpop.f32.mrb[18].mxu0 }
 0x2b4   : > { %v2687_v58 = vpop.f32.mrb[19].mxu0 }
 0x2b5   : > { %v2331_v59 = vadd.f32 %v2685_v55, %v2291_v52 }
 0x2b7   : > { %v2343_v61 = vmul.f32 %v2487_v57, %v2331_v59 }
 0x2b9   : > { %v2351_v62 = vadd.f32 %v2488_v60, %v2343_v61 }
 0x2bb   : > { %2352 = vst [vmem:[%s1488_s17] sm:$0xff] %v2351_v62 }
 0x2bc PF: > { %s15_s22 = sadd.s32 1, %s2769_s22   ;;  %s3803_s18 = smov %s2757_s19 }
 0x2bd   : > { %p12_p10 = scmp.ge.s32.totalorder %s15_s22, 6   ;;  %s3804_s19 = smov %s2836_s25 }
 0x2be   : > { %s3805_s20 = smov %s2765_s21  ;;  %s3806_s21 = smov %s3808_s4 }
 0x2bf   :  { %14 = sbr.rel (!%p12_p10) target bundleno = 3 (0x3), region = 125 }

// kernel: emg_branch_forward.15
= control target key start
LH: loop header
LB: loop body
LE: loop exit
PB: predicated region body
PF: predicated region fallthrough
CT: control target
= control target key end

     0   :  { %vm13_vm0 = vcmask 58368   ;;  %s154_s0 = inlined_call_operand.vmem [shape: f32[2,2,8], index: 0, kind: input, shape index: {}]   ;;  %s155_s1 = inlined_call_operand.vmem [shape: f32[2,2,1], index: 1, kind: input, shape index: {}]   ;;  %s156_s2 = inlined_call_operand.hbm [shape: f32[2,8], index: 2, kind: output, shape index: {}]  }
   0x1   :  { %v12_v0 = vld [vmem:[%s154_s0] sm:$0x3]  ;;  %v70_v1 = vld [vmem:[%s154_s0 + $0x2] sm:$0x3] }
   0x2   :  { %v14_v2 = vsel %vm13_vm0, %v12_v0, -inf }
   0x3   :  { %7 = vsyncpa [#allocation3], 0  ;;  %15 = vmax.xlane.f32.xlu0 %v14_v2  ;;  %v35_v3 = vsel %vm13_vm0, %v70_v1, -inf  ;;  %v25_v4 = vld [vmem:[%s155_s1] sm:$0x3]  ;;  %v108_v5 = vmov 0  }
   0x4   :  { %74 = vset.pattern.permute.xlu0 %v108_v5  ;;  %75 = vset.pattern.permute.xlu1 %v108_v5  ;;  %v71_v16 = vld [vmem:[%s155_s1 + $0x2] sm:$0x3]  ;;  %s109_s16 = smov [#allocation2]  }
   0x5   :  { %s62_s17 = sshll.u32 %s109_s16, 4  ;;  %s63_s17 = int_to_ptr.vmem [resolvable:$true] %s62_s17 }
   0x6   :  { %s84_s1 = scalar_lea.vmem %s63_s17, 32  ;;  %p89_p1 = scmp.lt.s32.totalorder %s63_s17, %s63_s17 }
   0x7   :  { %36 = vmax.xlane.f32.xlu0 %v35_v3  ;;  %p85_p0 = scmp.ne.s32.totalorder %s63_s17, %s84_s1  ;;  %p90_p2 = scmp.lt.s32.totalorder %s84_s1, %s84_s1 }
   0x9   :  { %p91_p3 = por %p90_p2, %p89_p1 }
   0xb   :  { %p92_p4 = pnand %p91_p3, %p85_p0 }
  0x1d   :  { %28 = vperm.xlu0 %74, %v25_v4  }
  0x90   :  { %v16_v6 = vpop.xlane.xlu0 %15 }
  0x91   :  { %v17_v7 = vsub.f32 %v12_v0, %v16_v6 }
  0x93   :  { %v18_v8 = vmul.f32 1.442695, %v17_v7 }
  0x94   :  { %v37_v9 = vpop.xlane.xlu0 %36 }
  0x95   :  { %76 = vpow2.f32 %v18_v8  ;;  %v38_v10 = vsub.f32 %v70_v1, %v37_v9 }
  0x97   :  { %v39_v11 = vmul.f32 1.442695, %v38_v10 }
  0x99   :  { %78 = vpow2.f32 %v39_v11 }
  0x9c   :  { %v29_v22 = vpop.permute.xlu0 %28 }
  0x9f   :  { %v77_v12 = vpop.eup %76 }
  0xa0   :  { %v20_v13 = vsel %vm13_vm0, %v77_v12, 0.0 }
  0xa1   :  { %21 = vadd.xlane.f32.xlu1 %v20_v13 }
  0xa3   :  { %v79_v14 = vpop.eup %78 }
  0xa4   :  { %v41_v15 = vsel %vm13_vm0, %v79_v14, 0.0 }
  0xa5   :  { %42 = vadd.xlane.f32.xlu1 %v41_v15 }
  0xb6   :  { %50 = vperm.xlu1 %75, %v71_v16  }
 0x12e   :  { %v22_v17 = vpop.xlane.xlu1 %21 }
 0x12f   :  { %80 = vrcp.f32 %v22_v17 }
 0x132   :  { %v43_v18 = vpop.xlane.xlu1 %42 }
 0x133   :  { %82 = vrcp.f32 %v43_v18 }
 0x136   :  { %v51_v23 = vpop.permute.xlu1 %50 }
 0x139   :  { %v81_v19 = vpop.eup %80 }
 0x13a   :  { %v24_v20 = vmul.f32 %v81_v19, %v77_v12 }
 0x13c   :  { %v31_v25 = vmul.f32 %v29_v22, %v24_v20 }
 0x13d   :  { %v83_v21 = vpop.eup %82 }
 0x13e   :  { %v45_v24 = vmul.f32 %v83_v21, %v79_v14 }
 0x140   :  { %v53_v26 = vmul.f32 %v51_v23, %v45_v24 }
 0x142   :  { %v54_v27 = vadd.f32 %v53_v26, %v31_v25 }
 0x144   :  { %55 = vst.msk [vmem:[#allocation2] sm:$0x3] %vm13_vm0, %v54_v27 }
 0x145   :  { %95 = shalt.err (!%p92_p4)
}
 0x146   :  { %s96_s20 = scalar_lea.hbm %s156_s2, 32 }
 0x147   :  { %p97_p5 = scmp.ne.s32.totalorder %s156_s2, %s96_s20  ;;  %p100_p6 = scmp.lt.u32.totalorder %s96_s20, %s156_s2 }
 0x149   :  { %p102_p7 = pnand %p100_p6, %p97_p5 }
 0x14b   :  { %105 = shalt.err (!%p102_p7)
}
 0x14c   :  { %65 = dma.vmem_to_hbm [thread:$0]  %s63_s17, 32, %s156_s2, [#allocation3]  }
 0x14d   :  { %106 = dma.done.wait [#allocation3], 32  }
 0x14e   :  { %107 = vsyncadd [#allocation3], 4294967264 }
 0x14f   :  { %69 = vsyncpa [#allocation3], 1 }

</bundles_post_ra>
